<compile_context>
chip_gen: v7x
topology: tpu7x:2x2x1
jax: 0.10.0
libtpu: 0.0.40
codegen_flags: <defaults>
</compile_context>

<pallas_src>
import functools

import jax
import jax.numpy as jnp
from jax.experimental import pallas as pl
from jax.experimental.pallas import tpu as pltpu


def pointer_decoder_kernel(
    emb_ref, enc_ref, masks_ref, lstm_ref, attn_ref, feat_ref,
    out_ref,
    *, max_len, demb, denc, ddec, precision,
):
    f32 = jnp.float32
    emb = emb_ref[...]            # (Bb, N, demb)
    enc = enc_ref[...]            # (Bb, T, denc)
    masks = masks_ref[...][:, 0, :]   # (Bb, N+T)  [emb_mask | enc_mask]
    lstm_pack = lstm_ref[...]     # (demb+ddec+2, 4*ddec)  [W_ih; W_hh; b_ih+b_hh; go@W_ih]
    attn_T = attn_ref[...]        # (denc, ddec+1)         [W_dt; b_dt].T
    feat_T = feat_ref[...]        # (demb+1, ddec+denc+1)  [W_ft; b_ft].T

    Bb, N, _ = emb.shape
    T = enc.shape[1]
    G = 4 * ddec

    mmul = functools.partial(jnp.dot, preferred_element_type=f32,
                             precision=precision)
    bmm = functools.partial(jnp.einsum, preferred_element_type=f32,
                            precision=precision)

    # ---------------- loop-invariant prologue (all off the per-step chain) ----
    w_ih = lstm_pack[0:demb, :]                              # (demb, 4dd)
    w_hh = lstm_pack[demb:demb + ddec, :]                    # (ddec, 4dd)
    b_lstm = lstm_pack[demb + ddec:demb + ddec + 1, :]       # (1, 4dd)  b_ih+b_hh
    g0 = lstm_pack[demb + ddec + 1:demb + ddec + 2, :]       # (1, 4dd)  go@W_ih

    emb_penalty = (1.0 - masks[:, :N]) * 1e20                # (Bb, N)
    enc_penalty = (1.0 - masks[:, N:]) * 1e20                # (Bb, T)
    cand_iota = jax.lax.broadcasted_iota(jnp.int32, (Bb, N), 1)

    # (1) LSTM input projection of every candidate:  P[b,n,:] = emb[b,n,:] @ W_ih
    P = mmul(emb.reshape(Bb * N, demb), w_ih).reshape(Bb, N, G)          # (Bb,N,4dd)

    # (2) dec_trans folded into enc (plus its bias as an extra column):
    KB = mmul(enc.reshape(Bb * T, denc), attn_T).reshape(Bb, T, ddec + 1)
    K = KB[:, :, :ddec]                                                  # (Bb,T,ddec)
    enc_bias = KB[:, :, ddec] - enc_penalty                              # (Bb,T)

    # (3) feat_lin folded into per-candidate matrices; the extra row n=N is the
    #     constant-1 "picked" column (feat_p), so it rides the same matmuls.
    FA_main = mmul(emb.reshape(Bb * N, demb),
                   feat_T[:demb, :]).reshape(Bb, N, ddec + denc + 1)
    FA_last = jnp.broadcast_to(feat_T[demb:demb + 1, :][None],
                               (Bb, 1, ddec + denc + 1))
    FA = jnp.concatenate([FA_main, FA_last], axis=1)                     # (Bb,N+1,·)
    FAh = FA[:, :, :ddec]                                                # (Bb,N+1,ddec)
    FAc = FA[:, :, ddec:ddec + denc]                                     # (Bb,N+1,denc)
    bias_full = FA[:, :, ddec + denc] - jnp.concatenate(
        [emb_penalty, jnp.zeros((Bb, 1), f32)], axis=1)                  # (Bb,N+1)

    # (4) attention context folded straight into the candidate scores, with a
    #     ones column so the softmax denominator comes out of the same matmul.
    EC = bmm('btd,bnd->btn', enc, FAc)                                   # (Bb,T,N+1)
    EC_aug = jnp.concatenate([EC, jnp.ones((Bb, T, 1), f32)], axis=2)    # (Bb,T,N+2)

    g0b = jnp.broadcast_to(g0 + b_lstm, (Bb, G))                         # step-0 gates

    # ---------------- decode loop (statically unrolled; max_len is small) ----
    h = jnp.zeros((Bb, ddec), f32)
    c = jnp.zeros((Bb, ddec), f32)
    picked = jnp.zeros((Bb, N), f32)
    x_part = None
    scores = []
    for t in range(max_len):
        # single-step LSTM (gate order i, f, g, o); single accumulation
        # expression so v7x can accumulate in the MRB.
        if t == 0:
            gates = g0b
        else:
            gates = mmul(h, w_hh) + x_part + b_lstm
        # activations on the whole 4*ddec slab: 2 transcendental passes, not 4
        sg = jax.nn.sigmoid(gates)
        tg = jnp.tanh(gates)
        i_g = sg[:, 0 * ddec:1 * ddec]
        f_g = sg[:, 1 * ddec:2 * ddec]
        o_g = sg[:, 3 * ddec:4 * ddec]
        g_g = tg[:, 2 * ddec:3 * ddec]
        c = f_g * c + i_g * g_g
        h = o_g * jnp.tanh(c)
        hq = h[:, None, :]

        # masked attention logits (dec_trans already folded into K)
        raw = bmm('bqk,btk->bqt', hq, K)[:, 0, :] + enc_bias             # (Bb,T)
        m = jnp.max(raw, axis=1, keepdims=True)
        p = jnp.exp(raw - m)                                             # unnormalized
        # context -> score contribution and softmax denom in one matmul
        comb = bmm('bqt,btm->bqm', p[:, None, :], EC_aug)[:, 0, :]       # (Bb,N+2)
        s = comb[:, N + 1:N + 2]
        inv_s = pl.reciprocal(s, approx=True)                            # EUP slot
        inv_s = inv_s * (2.0 - s * inv_s)                                # NR -> f32
        # h half of feat_lin folded into FAh; column N is feat_p
        h_part = bmm('bqk,bnk->bqn', hq, FAh)[:, 0, :]                   # (Bb,N+1)
        score_full = h_part + comb[:, :N + 1] * inv_s + bias_full        # (Bb,N+1)
        score = score_full[:, :N] + picked * score_full[:, N:N + 1]      # (Bb,N)
        scores.append(score)

        if t + 1 < max_len:
            # greedy pick (first argmax); next-step LSTM input = onehot @ P
            maxv = jnp.max(score, axis=1, keepdims=True)
            idx = jnp.min(jnp.where(score == maxv, cand_iota, N),
                          axis=1, keepdims=True)
            onehot = (cand_iota == idx).astype(f32)
            picked = jnp.maximum(picked, onehot)
            x_part = bmm('bqn,bnk->bqk', onehot[:, None, :], P)[:, 0, :]  # (Bb,4dd)

    # single store at the end, in the PyTorch (B, max_len, N) layout
    out_ref[...] = jnp.stack(scores, axis=1)


def pointer_decoder_forward(emb, emb_mask, enc, enc_mask, params, max_len,
                            batch_block=None,
                            precision=jax.lax.Precision.HIGHEST):
    B, N, demb = emb.shape
    T, denc = enc.shape[1], enc.shape[2]
    ddec = params["w_hh_t"].shape[0]
    if batch_block is None:
        batch_block = B            # single invocation (best latency on v5e/v6e)
    assert B % batch_block == 0
    nblk = B // batch_block        # use batch_block=B//2 on v7x (2 TCs/chip)

    # ---- one-time weight prep: pack 12 tensors into 4 weight buffers + 2 data
    # buffers (fewer prologue DMAs), pre-fuse the LSTM biases and go@W_ih. ----
    b_lstm = params["b_ih"] + params["b_hh"]                               # (1,4dd)
    g0 = jnp.dot(params["go"], params["w_ih_t"], precision=precision)      # (1,4dd)
    lstm_pack = jnp.concatenate(
        [params["w_ih_t"], params["w_hh_t"], b_lstm, g0], axis=0)          # (demb+ddec+2,4dd)
    attn_T = jnp.concatenate([params["w_dt_t"], params["b_dt"]], axis=0).T  # (denc,ddec+1)
    feat_T = jnp.concatenate([params["w_ft_t"], params["b_ft"]], axis=0).T  # (demb+1,ddec+denc+1)
    masks = jnp.concatenate([emb_mask, enc_mask], axis=1)[:, None, :]       # (B,1,N+T)

    kernel = functools.partial(
        pointer_decoder_kernel,
        max_len=max_len, demb=demb, denc=denc, ddec=ddec, precision=precision)

    out = pl.pallas_call(
        kernel,
        out_shape=jax.ShapeDtypeStruct((B, max_len, N), jnp.float32),
        grid=(nblk,),
        in_specs=[
            pl.BlockSpec((batch_block, N, demb), lambda i: (i, 0, 0)),
            pl.BlockSpec((batch_block, T, denc), lambda i: (i, 0, 0)),
            pl.BlockSpec((batch_block, 1, N + T), lambda i: (i, 0, 0)),
            pl.BlockSpec((demb + ddec + 2, 4 * ddec), lambda i: (0, 0)),
            pl.BlockSpec((denc, ddec + 1), lambda i: (0, 0)),
            pl.BlockSpec((demb + 1, ddec + denc + 1), lambda i: (0, 0)),
        ],
        out_specs=pl.BlockSpec((batch_block, max_len, N), lambda i: (i, 0, 0)),
        compiler_params=pltpu.CompilerParams(
            dimension_semantics=("parallel",)),
    )(emb, enc, masks, lstm_pack, attn_T, feat_T)
    return out  # (B, max_len, N), matches torch layout


def pointer_decoder_reference(emb, emb_mask, enc, enc_mask, params, max_len,
                              precision=jax.lax.Precision.HIGHEST):
    """Pure-JAX reference (same math as the PyTorch module, no Pallas)."""
    B, N, demb = emb.shape
    ddec = params["w_hh_t"].shape[0]
    dot = functools.partial(jnp.dot, precision=precision)
    emb_t = jnp.broadcast_to(params["go"], (B, demb))
    h = jnp.zeros((B, ddec), jnp.float32)
    c = jnp.zeros((B, ddec), jnp.float32)
    picked = jnp.zeros((B, N), jnp.float32)
    scores = []
    for _ in range(max_len):
        gates = (dot(emb_t, params["w_ih_t"]) + params["b_ih"]
                 + dot(h, params["w_hh_t"]) + params["b_hh"])
        i_g = jax.nn.sigmoid(gates[:, 0 * ddec:1 * ddec])
        f_g = jax.nn.sigmoid(gates[:, 1 * ddec:2 * ddec])
        g_g = jnp.tanh(gates[:, 2 * ddec:3 * ddec])
        o_g = jax.nn.sigmoid(gates[:, 3 * ddec:4 * ddec])
        c = f_g * c + i_g * g_g
        h = o_g * jnp.tanh(c)
        q = dot(h, params["w_dt_t"]) + params["b_dt"]
        raw = jnp.sum(enc * q[:, None, :], axis=2) - (1.0 - enc_mask) * 1e20
        w = jax.nn.softmax(raw, axis=1)
        ctx = jnp.sum(w[:, :, None] * enc, axis=1)
        feat = dot(jnp.concatenate([h, ctx], axis=1),
                   params["w_ft_t"]) + params["b_ft"]
        score = (jnp.sum(emb * feat[:, None, :demb], axis=2)
                 + picked * feat[:, demb:demb + 1])
        score = score - (1.0 - emb_mask) * 1e20
        scores.append(score)
        idx = jnp.argmax(score, axis=1)
        onehot = jax.nn.one_hot(idx, N, dtype=jnp.float32)
        picked = jnp.maximum(picked, onehot)
        emb_t = jnp.sum(onehot[:, :, None] * emb, axis=1)
    return jnp.stack(scores, axis=1)


if __name__ == "__main__":
    # Small shapes consistent with the module's forward.
    # (For throughput, batch many problems per call — up to ~128 on v5e and
    #  ~256 on v6e/v7x the per-step latency is nearly flat.)
    B, N_CAND, T_ENC = 2, 8, 8
    DEMB, DENC, DDEC = 32, 32, 32
    MAX_LEN = 5

    key = jax.random.PRNGKey(0)
    ks = jax.random.split(key, 16)
    u = lambda k, shape: jax.random.uniform(k, shape, jnp.float32, -0.1, 0.1)

    # Deterministic parameter init (shapes from __init__; weights pre-transposed
    # so both kernel and reference use plain x @ W).
    params = {
        "go":     u(ks[0], (1, DEMB)),
        "w_ih_t": u(ks[1], (DEMB, 4 * DDEC)),          # LSTM weight_ih.T
        "w_hh_t": u(ks[2], (DDEC, 4 * DDEC)),          # LSTM weight_hh.T
        "b_ih":   u(ks[3], (1, 4 * DDEC)),
        "b_hh":   u(ks[4], (1, 4 * DDEC)),
        "w_dt_t": u(ks[5], (DDEC, DENC)),              # attn.dec_trans weight.T
        "b_dt":   u(ks[6], (1, DENC)),
        "w_ft_t": u(ks[7], (DDEC + DENC, DEMB + 1)),   # feat_lin weight.T ([h, ctx] order)
        "b_ft":   u(ks[8], (1, DEMB + 1)),
    }

    emb = jax.random.normal(ks[9], (B, N_CAND, DEMB), jnp.float32)
    enc = jax.random.normal(ks[10], (B, T_ENC, DENC), jnp.float32)
    emb_mask = jnp.ones((B, N_CAND), jnp.float32).at[1, -1].set(0.0)
    enc_mask = jnp.ones((B, T_ENC), jnp.float32).at[0, -2:].set(0.0)

    ref = pointer_decoder_reference(emb, emb_mask, enc, enc_mask, params, MAX_LEN)

    # Default path: whole batch in one kernel instance (best latency on v5e/v6e).
    scores = pointer_decoder_forward(emb, emb_mask, enc, enc_mask, params, MAX_LEN)
    scores = jax.block_until_ready(scores)
    assert scores.shape == (B, MAX_LEN, N_CAND)
    assert jnp.allclose(scores, ref, rtol=1e-4, atol=1e-3), "mismatch vs reference"

    # Batch-parallel grid path (what you'd use on v7x to light up both TCs).
    scores2 = pointer_decoder_forward(emb, emb_mask, enc, enc_mask, params,
                                      MAX_LEN, batch_block=1)
    scores2 = jax.block_until_ready(scores2)
    assert jnp.allclose(scores2, ref, rtol=1e-4, atol=1e-3), "mismatch (grid path)"

    print("KERNEL_OK")
</pallas_src>

<mosaic_0001>
module attributes {stable_mosaic.version = 11 : i64} {
  func.func @pointer_decoder_kernel(%arg0: i32, %arg1: memref<2x8x32xf32, #tpu.memory_space<vmem>>, %arg2: memref<2x8x32xf32, #tpu.memory_space<vmem>>, %arg3: memref<2x1x16xf32, #tpu.memory_space<vmem>>, %arg4: memref<66x128xf32, #tpu.memory_space<vmem>>, %arg5: memref<32x33xf32, #tpu.memory_space<vmem>>, %arg6: memref<33x65xf32, #tpu.memory_space<vmem>>, %arg7: memref<2x5x8xf32, #tpu.memory_space<vmem>>) attributes {dimension_semantics = [#tpu.dimension_semantics<parallel>], iteration_bounds = array<i64: 1>, scalar_prefetch = 0 : i64, scratch_operands = 0 : i64, tpu.core_type = #tpu.core_type<tc>, window_params = [{transform_indices = @transform_0, window_bounds = array<i64: 2, 8, 32>}, {transform_indices = @transform_1, window_bounds = array<i64: 2, 8, 32>}, {transform_indices = @transform_2, window_bounds = array<i64: 2, 1, 16>}, {pipeline_mode = #tpu.pipeline_mode<synchronous>, transform_indices = @transform_3, window_bounds = array<i64: 66, 128>}, {pipeline_mode = #tpu.pipeline_mode<synchronous>, transform_indices = @transform_4, window_bounds = array<i64: 32, 33>}, {pipeline_mode = #tpu.pipeline_mode<synchronous>, transform_indices = @transform_5, window_bounds = array<i64: 33, 65>}, {transform_indices = @transform_6, window_bounds = array<i64: 2, 5, 8>}]} {
    %c0 = arith.constant 0 : index
    %c0_0 = arith.constant 0 : index
    %c0_1 = arith.constant 0 : index
    %0 = vector.load %arg1[%c0, %c0_0, %c0_1] : memref<2x8x32xf32, #tpu.memory_space<vmem>>, vector<2x8x32xf32>
    %c0_2 = arith.constant 0 : index
    %c0_3 = arith.constant 0 : index
    %c0_4 = arith.constant 0 : index
    %1 = vector.load %arg2[%c0_2, %c0_3, %c0_4] : memref<2x8x32xf32, #tpu.memory_space<vmem>>, vector<2x8x32xf32>
    %c0_5 = arith.constant 0 : index
    %c0_6 = arith.constant 0 : index
    %c0_7 = arith.constant 0 : index
    %2 = vector.load %arg3[%c0_5, %c0_6, %c0_7] : memref<2x1x16xf32, #tpu.memory_space<vmem>>, vector<2x1x16xf32>
    %3 = vector.shape_cast %2 : vector<2x1x16xf32> to vector<2x16xf32>
    %c0_8 = arith.constant 0 : index
    %c0_9 = arith.constant 0 : index
    %4 = vector.load %arg4[%c0_8, %c0_9] : memref<66x128xf32, #tpu.memory_space<vmem>>, vector<66x128xf32>
    %c0_10 = arith.constant 0 : index
    %c0_11 = arith.constant 0 : index
    %5 = vector.load %arg5[%c0_10, %c0_11] : memref<32x33xf32, #tpu.memory_space<vmem>>, vector<32x33xf32>
    %c0_12 = arith.constant 0 : index
    %c0_13 = arith.constant 0 : index
    %6 = vector.load %arg6[%c0_12, %c0_13] : memref<33x65xf32, #tpu.memory_space<vmem>>, vector<33x65xf32>
    %7 = vector.extract_strided_slice %4 {offsets = [0, 0], sizes = [32, 128], strides = [1, 1]} : vector<66x128xf32> to vector<32x128xf32>
    %8 = vector.extract_strided_slice %4 {offsets = [32, 0], sizes = [32, 128], strides = [1, 1]} : vector<66x128xf32> to vector<32x128xf32>
    %9 = vector.extract_strided_slice %4 {offsets = [64, 0], sizes = [1, 128], strides = [1, 1]} : vector<66x128xf32> to vector<1x128xf32>
    %10 = vector.extract_strided_slice %4 {offsets = [65, 0], sizes = [1, 128], strides = [1, 1]} : vector<66x128xf32> to vector<1x128xf32>
    %11 = vector.extract_strided_slice %3 {offsets = [0, 0], sizes = [2, 8], strides = [1, 1]} : vector<2x16xf32> to vector<2x8xf32>
    %cst = arith.constant 1.000000e+00 : f32
    %12 = vector.broadcast %cst : f32 to vector<2x8xf32>
    %13 = arith.subf %12, %11 : vector<2x8xf32>
    %cst_14 = arith.constant 1.000000e+20 : f32
    %14 = vector.broadcast %cst_14 : f32 to vector<2x8xf32>
    %15 = arith.mulf %13, %14 : vector<2x8xf32>
    %16 = vector.extract_strided_slice %3 {offsets = [0, 8], sizes = [2, 8], strides = [1, 1]} : vector<2x16xf32> to vector<2x8xf32>
    %cst_15 = arith.constant 1.000000e+00 : f32
    %17 = vector.broadcast %cst_15 : f32 to vector<2x8xf32>
    %18 = arith.subf %17, %16 : vector<2x8xf32>
    %cst_16 = arith.constant 1.000000e+20 : f32
    %19 = vector.broadcast %cst_16 : f32 to vector<2x8xf32>
    %20 = arith.mulf %18, %19 : vector<2x8xf32>
    %21 = tpu.iota {dimensions = array<i32: 1>} : vector<2x8xi32>
    %22 = vector.shape_cast %0 : vector<2x8x32xf32> to vector<16x32xf32>
    %cst_17 = arith.constant dense<0.000000e+00> : vector<16x128xf32>
    %23 = tpu.matmul %22, %7, %cst_17 {dimension_numbers = #tpu.dot_dimension_numbers<[1], [0], [0], [1], [0, 0, 1, 1], [], []>, precision = #tpu.contract_precision<fp32>} : vector<16x32xf32>, vector<32x128xf32>, vector<16x128xf32> -> vector<16x128xf32>
    %24 = vector.shape_cast %23 : vector<16x128xf32> to vector<2x8x128xf32>
    %25 = vector.shape_cast %1 : vector<2x8x32xf32> to vector<16x32xf32>
    %cst_18 = arith.constant dense<0.000000e+00> : vector<16x33xf32>
    %26 = tpu.matmul %25, %5, %cst_18 {dimension_numbers = #tpu.dot_dimension_numbers<[1], [0], [0], [1], [0, 0, 1, 1], [], []>, precision = #tpu.contract_precision<fp32>} : vector<16x32xf32>, vector<32x33xf32>, vector<16x33xf32> -> vector<16x33xf32>
    %27 = vector.shape_cast %26 : vector<16x33xf32> to vector<2x8x33xf32>
    %28 = vector.extract_strided_slice %27 {offsets = [0, 0, 0], sizes = [2, 8, 32], strides = [1, 1, 1]} : vector<2x8x33xf32> to vector<2x8x32xf32>
    %29 = vector.extract_strided_slice %27 {offsets = [0, 0, 32], sizes = [2, 8, 1], strides = [1, 1, 1]} : vector<2x8x33xf32> to vector<2x8x1xf32>
    %30 = vector.shape_cast %29 : vector<2x8x1xf32> to vector<2x8xf32>
    %31 = arith.subf %30, %20 : vector<2x8xf32>
    %32 = vector.shape_cast %0 : vector<2x8x32xf32> to vector<16x32xf32>
    %33 = vector.extract_strided_slice %6 {offsets = [0, 0], sizes = [32, 65], strides = [1, 1]} : vector<33x65xf32> to vector<32x65xf32>
    %cst_19 = arith.constant dense<0.000000e+00> : vector<16x65xf32>
    %34 = tpu.matmul %32, %33, %cst_19 {dimension_numbers = #tpu.dot_dimension_numbers<[1], [0], [0], [1], [0, 0, 1, 1], [], []>, precision = #tpu.contract_precision<fp32>} : vector<16x32xf32>, vector<32x65xf32>, vector<16x65xf32> -> vector<16x65xf32>
    %35 = vector.shape_cast %34 : vector<16x65xf32> to vector<2x8x65xf32>
    %36 = vector.extract_strided_slice %6 {offsets = [32, 0], sizes = [1, 65], strides = [1, 1]} : vector<33x65xf32> to vector<1x65xf32>
    %37 = vector.shape_cast %36 : vector<1x65xf32> to vector<1x1x65xf32>
    %38 = vector.shape_cast %37 : vector<1x1x65xf32> to vector<1x1x65xf32>
    %39 = vector.broadcast %38 : vector<1x1x65xf32> to vector<2x1x65xf32>
    %40 = tpu.concatenate %35, %39 in 1 : vector<2x8x65xf32>, vector<2x1x65xf32> -> vector<2x9x65xf32>
    %41 = vector.extract_strided_slice %40 {offsets = [0, 0, 0], sizes = [2, 9, 32], strides = [1, 1, 1]} : vector<2x9x65xf32> to vector<2x9x32xf32>
    %42 = vector.extract_strided_slice %40 {offsets = [0, 0, 32], sizes = [2, 9, 32], strides = [1, 1, 1]} : vector<2x9x65xf32> to vector<2x9x32xf32>
    %43 = vector.extract_strided_slice %40 {offsets = [0, 0, 64], sizes = [2, 9, 1], strides = [1, 1, 1]} : vector<2x9x65xf32> to vector<2x9x1xf32>
    %44 = vector.shape_cast %43 : vector<2x9x1xf32> to vector<2x9xf32>
    %cst_20 = arith.constant 0.000000e+00 : f32
    %45 = vector.broadcast %cst_20 : f32 to vector<2x1xf32>
    %46 = tpu.concatenate %15, %45 in 1 : vector<2x8xf32>, vector<2x1xf32> -> vector<2x9xf32>
    %47 = arith.subf %44, %46 : vector<2x9xf32>
    "tpu.trace_start"() <{level = 10 : i32, message = "btd,bnd->btn"}> : () -> ()
    %cst_21 = arith.constant dense<0.000000e+00> : vector<2x8x9xf32>
    %48 = tpu.matmul %1, %42, %cst_21 {dimension_numbers = #tpu.dot_dimension_numbers<[2], [2], [1], [1], [0, 0, 0, 1, 1, 1], [0], [0]>, precision = #tpu.contract_precision<fp32>} : vector<2x8x32xf32>, vector<2x9x32xf32>, vector<2x8x9xf32> -> vector<2x8x9xf32>
    %cst_22 = arith.constant 1.000000e+00 : f32
    "tpu.trace_stop"() : () -> ()
    %49 = vector.broadcast %cst_22 : f32 to vector<2x8x1xf32>
    %50 = tpu.concatenate %48, %49 in 2 : vector<2x8x9xf32>, vector<2x8x1xf32> -> vector<2x8x10xf32>
    %51 = arith.addf %10, %9 : vector<1x128xf32>
    %52 = vector.shape_cast %51 : vector<1x128xf32> to vector<1x128xf32>
    %53 = vector.broadcast %52 : vector<1x128xf32> to vector<2x128xf32>
    %cst_23 = arith.constant 0.000000e+00 : f32
    %54 = vector.broadcast %cst_23 : f32 to vector<2x32xf32>
    %cst_24 = arith.constant 0.000000e+00 : f32
    %55 = vector.broadcast %cst_24 : f32 to vector<2x8xf32>
    %56 = arith.negf %53 : vector<2x128xf32>
    %57 = math.exp %56 : vector<2x128xf32>
    %cst_25 = arith.constant 1.000000e+00 : f32
    %58 = vector.broadcast %cst_25 : f32 to vector<2x128xf32>
    %59 = arith.addf %58, %57 : vector<2x128xf32>
    %60 = arith.divf %58, %59 : vector<2x128xf32>
    %61 = math.tanh %53 : vector<2x128xf32>
    %62 = vector.extract_strided_slice %60 {offsets = [0, 0], sizes = [2, 32], strides = [1, 1]} : vector<2x128xf32> to vector<2x32xf32>
    %63 = vector.extract_strided_slice %60 {offsets = [0, 32], sizes = [2, 32], strides = [1, 1]} : vector<2x128xf32> to vector<2x32xf32>
    %64 = vector.extract_strided_slice %60 {offsets = [0, 96], sizes = [2, 32], strides = [1, 1]} : vector<2x128xf32> to vector<2x32xf32>
    %65 = vector.extract_strided_slice %61 {offsets = [0, 64], sizes = [2, 32], strides = [1, 1]} : vector<2x128xf32> to vector<2x32xf32>
    %66 = arith.mulf %63, %54 : vector<2x32xf32>
    %67 = arith.mulf %62, %65 : vector<2x32xf32>
    %68 = arith.addf %66, %67 : vector<2x32xf32>
    %69 = math.tanh %68 : vector<2x32xf32>
    %70 = arith.mulf %64, %69 : vector<2x32xf32>
    %71 = vector.shape_cast %70 : vector<2x32xf32> to vector<2x1x32xf32>
    "tpu.trace_start"() <{level = 10 : i32, message = "bqk,btk->bqt"}> : () -> ()
    %cst_26 = arith.constant dense<0.000000e+00> : vector<2x1x8xf32>
    %72 = tpu.matmul %71, %28, %cst_26 {dimension_numbers = #tpu.dot_dimension_numbers<[2], [2], [1], [1], [0, 0, 0, 1, 1, 1], [0], [0]>, precision = #tpu.contract_precision<fp32>} : vector<2x1x32xf32>, vector<2x8x32xf32>, vector<2x1x8xf32> -> vector<2x1x8xf32>
    "tpu.trace_stop"() : () -> ()
    %73 = vector.shape_cast %72 : vector<2x1x8xf32> to vector<2x8xf32>
    %74 = arith.addf %73, %31 : vector<2x8xf32>
    %cst_27 = arith.constant dense<0xFF800000> : vector<2xf32>
    %75 = vector.multi_reduction <maximumf>, %74, %cst_27 [1] : vector<2x8xf32> to vector<2xf32>
    %76 = vector.shape_cast %75 : vector<2xf32> to vector<2x1xf32>
    %77 = vector.broadcast %76 : vector<2x1xf32> to vector<2x8xf32>
    %78 = arith.subf %74, %77 : vector<2x8xf32>
    %79 = math.exp %78 : vector<2x8xf32>
    %80 = vector.shape_cast %79 : vector<2x8xf32> to vector<2x1x8xf32>
    "tpu.trace_start"() <{level = 10 : i32, message = "bqt,btm->bqm"}> : () -> ()
    %cst_28 = arith.constant dense<0.000000e+00> : vector<2x1x10xf32>
    %81 = tpu.matmul %80, %50, %cst_28 {dimension_numbers = #tpu.dot_dimension_numbers<[2], [1], [1], [2], [0, 0, 0, 1, 1, 2], [0], [0]>, precision = #tpu.contract_precision<fp32>} : vector<2x1x8xf32>, vector<2x8x10xf32>, vector<2x1x10xf32> -> vector<2x1x10xf32>
    "tpu.trace_stop"() : () -> ()
    %82 = vector.shape_cast %81 : vector<2x1x10xf32> to vector<2x10xf32>
    %83 = vector.extract_strided_slice %82 {offsets = [0, 9], sizes = [2, 1], strides = [1, 1]} : vector<2x10xf32> to vector<2x1xf32>
    %84 = tpu.reciprocal %83 {approx = true} : vector<2x1xf32> -> vector<2x1xf32>
    %85 = arith.mulf %83, %84 : vector<2x1xf32>
    %cst_29 = arith.constant 2.000000e+00 : f32
    %86 = vector.broadcast %cst_29 : f32 to vector<2x1xf32>
    %87 = arith.subf %86, %85 : vector<2x1xf32>
    %88 = arith.mulf %84, %87 : vector<2x1xf32>
    "tpu.trace_start"() <{level = 10 : i32, message = "bqk,bnk->bqn"}> : () -> ()
    %cst_30 = arith.constant dense<0.000000e+00> : vector<2x1x9xf32>
    %89 = tpu.matmul %71, %41, %cst_30 {dimension_numbers = #tpu.dot_dimension_numbers<[2], [2], [1], [1], [0, 0, 0, 1, 1, 1], [0], [0]>, precision = #tpu.contract_precision<fp32>} : vector<2x1x32xf32>, vector<2x9x32xf32>, vector<2x1x9xf32> -> vector<2x1x9xf32>
    "tpu.trace_stop"() : () -> ()
    %90 = vector.shape_cast %89 : vector<2x1x9xf32> to vector<2x9xf32>
    %91 = vector.extract_strided_slice %82 {offsets = [0, 0], sizes = [2, 9], strides = [1, 1]} : vector<2x10xf32> to vector<2x9xf32>
    %92 = vector.broadcast %88 : vector<2x1xf32> to vector<2x9xf32>
    %93 = arith.mulf %91, %92 : vector<2x9xf32>
    %94 = arith.addf %90, %93 : vector<2x9xf32>
    %95 = arith.addf %94, %47 : vector<2x9xf32>
    %96 = vector.extract_strided_slice %95 {offsets = [0, 0], sizes = [2, 8], strides = [1, 1]} : vector<2x9xf32> to vector<2x8xf32>
    %97 = vector.extract_strided_slice %95 {offsets = [0, 8], sizes = [2, 1], strides = [1, 1]} : vector<2x9xf32> to vector<2x1xf32>
    %98 = vector.broadcast %97 : vector<2x1xf32> to vector<2x8xf32>
    %99 = arith.mulf %55, %98 : vector<2x8xf32>
    %100 = arith.addf %96, %99 : vector<2x8xf32>
    %cst_31 = arith.constant dense<0xFF800000> : vector<2xf32>
    %101 = vector.multi_reduction <maximumf>, %100, %cst_31 [1] : vector<2x8xf32> to vector<2xf32>
    %102 = vector.shape_cast %101 : vector<2xf32> to vector<2x1xf32>
    %103 = vector.broadcast %102 : vector<2x1xf32> to vector<2x8xf32>
    %104 = arith.cmpf oeq, %100, %103 : vector<2x8xf32>
    %c8_i32 = arith.constant 8 : i32
    %105 = vector.broadcast %c8_i32 : i32 to vector<2x8xi32>
    %106 = arith.select %104, %21, %105 : vector<2x8xi1>, vector<2x8xi32>
    %cst_32 = arith.constant dense<2147483647> : vector<2xi32>
    %107 = vector.multi_reduction <minsi>, %106, %cst_32 [1] : vector<2x8xi32> to vector<2xi32>
    %108 = vector.shape_cast %107 : vector<2xi32> to vector<2x1xi32>
    %109 = vector.broadcast %108 : vector<2x1xi32> to vector<2x8xi32>
    %110 = arith.cmpi eq, %21, %109 : vector<2x8xi32>
    %111 = arith.extui %110 : vector<2x8xi1> to vector<2x8xi32>
    %112 = arith.sitofp %111 : vector<2x8xi32> to vector<2x8xf32>
    %113 = arith.maximumf %55, %112 : vector<2x8xf32>
    %114 = vector.shape_cast %112 : vector<2x8xf32> to vector<2x1x8xf32>
    "tpu.trace_start"() <{level = 10 : i32, message = "bqn,bnk->bqk"}> : () -> ()
    %cst_33 = arith.constant dense<0.000000e+00> : vector<2x1x128xf32>
    %115 = tpu.matmul %114, %24, %cst_33 {dimension_numbers = #tpu.dot_dimension_numbers<[2], [1], [1], [2], [0, 0, 0, 1, 1, 2], [0], [0]>, precision = #tpu.contract_precision<fp32>} : vector<2x1x8xf32>, vector<2x8x128xf32>, vector<2x1x128xf32> -> vector<2x1x128xf32>
    "tpu.trace_stop"() : () -> ()
    %116 = vector.shape_cast %115 : vector<2x1x128xf32> to vector<2x128xf32>
    %cst_34 = arith.constant dense<0.000000e+00> : vector<2x128xf32>
    %117 = tpu.matmul %70, %8, %cst_34 {dimension_numbers = #tpu.dot_dimension_numbers<[1], [0], [0], [1], [0, 0, 1, 1], [], []>, precision = #tpu.contract_precision<fp32>} : vector<2x32xf32>, vector<32x128xf32>, vector<2x128xf32> -> vector<2x128xf32>
    %118 = arith.addf %117, %116 : vector<2x128xf32>
    %119 = vector.broadcast %9 : vector<1x128xf32> to vector<2x128xf32>
    %120 = arith.addf %118, %119 : vector<2x128xf32>
    %121 = arith.negf %120 : vector<2x128xf32>
    %122 = math.exp %121 : vector<2x128xf32>
    %cst_35 = arith.constant 1.000000e+00 : f32
    %123 = vector.broadcast %cst_35 : f32 to vector<2x128xf32>
    %124 = arith.addf %123, %122 : vector<2x128xf32>
    %125 = arith.divf %123, %124 : vector<2x128xf32>
    %126 = math.tanh %120 : vector<2x128xf32>
    %127 = vector.extract_strided_slice %125 {offsets = [0, 0], sizes = [2, 32], strides = [1, 1]} : vector<2x128xf32> to vector<2x32xf32>
    %128 = vector.extract_strided_slice %125 {offsets = [0, 32], sizes = [2, 32], strides = [1, 1]} : vector<2x128xf32> to vector<2x32xf32>
    %129 = vector.extract_strided_slice %125 {offsets = [0, 96], sizes = [2, 32], strides = [1, 1]} : vector<2x128xf32> to vector<2x32xf32>
    %130 = vector.extract_strided_slice %126 {offsets = [0, 64], sizes = [2, 32], strides = [1, 1]} : vector<2x128xf32> to vector<2x32xf32>
    %131 = arith.mulf %128, %68 : vector<2x32xf32>
    %132 = arith.mulf %127, %130 : vector<2x32xf32>
    %133 = arith.addf %131, %132 : vector<2x32xf32>
    %134 = math.tanh %133 : vector<2x32xf32>
    %135 = arith.mulf %129, %134 : vector<2x32xf32>
    %136 = vector.shape_cast %135 : vector<2x32xf32> to vector<2x1x32xf32>
    "tpu.trace_start"() <{level = 10 : i32, message = "bqk,btk->bqt"}> : () -> ()
    %cst_36 = arith.constant dense<0.000000e+00> : vector<2x1x8xf32>
    %137 = tpu.matmul %136, %28, %cst_36 {dimension_numbers = #tpu.dot_dimension_numbers<[2], [2], [1], [1], [0, 0, 0, 1, 1, 1], [0], [0]>, precision = #tpu.contract_precision<fp32>} : vector<2x1x32xf32>, vector<2x8x32xf32>, vector<2x1x8xf32> -> vector<2x1x8xf32>
    "tpu.trace_stop"() : () -> ()
    %138 = vector.shape_cast %137 : vector<2x1x8xf32> to vector<2x8xf32>
    %139 = arith.addf %138, %31 : vector<2x8xf32>
    %cst_37 = arith.constant dense<0xFF800000> : vector<2xf32>
    %140 = vector.multi_reduction <maximumf>, %139, %cst_37 [1] : vector<2x8xf32> to vector<2xf32>
    %141 = vector.shape_cast %140 : vector<2xf32> to vector<2x1xf32>
    %142 = vector.broadcast %141 : vector<2x1xf32> to vector<2x8xf32>
    %143 = arith.subf %139, %142 : vector<2x8xf32>
    %144 = math.exp %143 : vector<2x8xf32>
    %145 = vector.shape_cast %144 : vector<2x8xf32> to vector<2x1x8xf32>
    "tpu.trace_start"() <{level = 10 : i32, message = "bqt,btm->bqm"}> : () -> ()
    %cst_38 = arith.constant dense<0.000000e+00> : vector<2x1x10xf32>
    %146 = tpu.matmul %145, %50, %cst_38 {dimension_numbers = #tpu.dot_dimension_numbers<[2], [1], [1], [2], [0, 0, 0, 1, 1, 2], [0], [0]>, precision = #tpu.contract_precision<fp32>} : vector<2x1x8xf32>, vector<2x8x10xf32>, vector<2x1x10xf32> -> vector<2x1x10xf32>
    "tpu.trace_stop"() : () -> ()
    %147 = vector.shape_cast %146 : vector<2x1x10xf32> to vector<2x10xf32>
    %148 = vector.extract_strided_slice %147 {offsets = [0, 9], sizes = [2, 1], strides = [1, 1]} : vector<2x10xf32> to vector<2x1xf32>
    %149 = tpu.reciprocal %148 {approx = true} : vector<2x1xf32> -> vector<2x1xf32>
    %150 = arith.mulf %148, %149 : vector<2x1xf32>
    %cst_39 = arith.constant 2.000000e+00 : f32
    %151 = vector.broadcast %cst_39 : f32 to vector<2x1xf32>
    %152 = arith.subf %151, %150 : vector<2x1xf32>
    %153 = arith.mulf %149, %152 : vector<2x1xf32>
    "tpu.trace_start"() <{level = 10 : i32, message = "bqk,bnk->bqn"}> : () -> ()
    %cst_40 = arith.constant dense<0.000000e+00> : vector<2x1x9xf32>
    %154 = tpu.matmul %136, %41, %cst_40 {dimension_numbers = #tpu.dot_dimension_numbers<[2], [2], [1], [1], [0, 0, 0, 1, 1, 1], [0], [0]>, precision = #tpu.contract_precision<fp32>} : vector<2x1x32xf32>, vector<2x9x32xf32>, vector<2x1x9xf32> -> vector<2x1x9xf32>
    "tpu.trace_stop"() : () -> ()
    %155 = vector.shape_cast %154 : vector<2x1x9xf32> to vector<2x9xf32>
    %156 = vector.extract_strided_slice %147 {offsets = [0, 0], sizes = [2, 9], strides = [1, 1]} : vector<2x10xf32> to vector<2x9xf32>
    %157 = vector.broadcast %153 : vector<2x1xf32> to vector<2x9xf32>
    %158 = arith.mulf %156, %157 : vector<2x9xf32>
    %159 = arith.addf %155, %158 : vector<2x9xf32>
    %160 = arith.addf %159, %47 : vector<2x9xf32>
    %161 = vector.extract_strided_slice %160 {offsets = [0, 0], sizes = [2, 8], strides = [1, 1]} : vector<2x9xf32> to vector<2x8xf32>
    %162 = vector.extract_strided_slice %160 {offsets = [0, 8], sizes = [2, 1], strides = [1, 1]} : vector<2x9xf32> to vector<2x1xf32>
    %163 = vector.broadcast %162 : vector<2x1xf32> to vector<2x8xf32>
    %164 = arith.mulf %113, %163 : vector<2x8xf32>
    %165 = arith.addf %161, %164 : vector<2x8xf32>
    %cst_41 = arith.constant dense<0xFF800000> : vector<2xf32>
    %166 = vector.multi_reduction <maximumf>, %165, %cst_41 [1] : vector<2x8xf32> to vector<2xf32>
    %167 = vector.shape_cast %166 : vector<2xf32> to vector<2x1xf32>
    %168 = vector.broadcast %167 : vector<2x1xf32> to vector<2x8xf32>
    %169 = arith.cmpf oeq, %165, %168 : vector<2x8xf32>
    %c8_i32_42 = arith.constant 8 : i32
    %170 = vector.broadcast %c8_i32_42 : i32 to vector<2x8xi32>
    %171 = arith.select %169, %21, %170 : vector<2x8xi1>, vector<2x8xi32>
    %cst_43 = arith.constant dense<2147483647> : vector<2xi32>
    %172 = vector.multi_reduction <minsi>, %171, %cst_43 [1] : vector<2x8xi32> to vector<2xi32>
    %173 = vector.shape_cast %172 : vector<2xi32> to vector<2x1xi32>
    %174 = vector.broadcast %173 : vector<2x1xi32> to vector<2x8xi32>
    %175 = arith.cmpi eq, %21, %174 : vector<2x8xi32>
    %176 = arith.extui %175 : vector<2x8xi1> to vector<2x8xi32>
    %177 = arith.sitofp %176 : vector<2x8xi32> to vector<2x8xf32>
    %178 = arith.maximumf %113, %177 : vector<2x8xf32>
    %179 = vector.shape_cast %177 : vector<2x8xf32> to vector<2x1x8xf32>
    "tpu.trace_start"() <{level = 10 : i32, message = "bqn,bnk->bqk"}> : () -> ()
    %cst_44 = arith.constant dense<0.000000e+00> : vector<2x1x128xf32>
    %180 = tpu.matmul %179, %24, %cst_44 {dimension_numbers = #tpu.dot_dimension_numbers<[2], [1], [1], [2], [0, 0, 0, 1, 1, 2], [0], [0]>, precision = #tpu.contract_precision<fp32>} : vector<2x1x8xf32>, vector<2x8x128xf32>, vector<2x1x128xf32> -> vector<2x1x128xf32>
    "tpu.trace_stop"() : () -> ()
    %181 = vector.shape_cast %180 : vector<2x1x128xf32> to vector<2x128xf32>
    %cst_45 = arith.constant dense<0.000000e+00> : vector<2x128xf32>
    %182 = tpu.matmul %135, %8, %cst_45 {dimension_numbers = #tpu.dot_dimension_numbers<[1], [0], [0], [1], [0, 0, 1, 1], [], []>, precision = #tpu.contract_precision<fp32>} : vector<2x32xf32>, vector<32x128xf32>, vector<2x128xf32> -> vector<2x128xf32>
    %183 = arith.addf %182, %181 : vector<2x128xf32>
    %184 = vector.broadcast %9 : vector<1x128xf32> to vector<2x128xf32>
    %185 = arith.addf %183, %184 : vector<2x128xf32>
    %186 = arith.negf %185 : vector<2x128xf32>
    %187 = math.exp %186 : vector<2x128xf32>
    %cst_46 = arith.constant 1.000000e+00 : f32
    %188 = vector.broadcast %cst_46 : f32 to vector<2x128xf32>
    %189 = arith.addf %188, %187 : vector<2x128xf32>
    %190 = arith.divf %188, %189 : vector<2x128xf32>
    %191 = math.tanh %185 : vector<2x128xf32>
    %192 = vector.extract_strided_slice %190 {offsets = [0, 0], sizes = [2, 32], strides = [1, 1]} : vector<2x128xf32> to vector<2x32xf32>
    %193 = vector.extract_strided_slice %190 {offsets = [0, 32], sizes = [2, 32], strides = [1, 1]} : vector<2x128xf32> to vector<2x32xf32>
    %194 = vector.extract_strided_slice %190 {offsets = [0, 96], sizes = [2, 32], strides = [1, 1]} : vector<2x128xf32> to vector<2x32xf32>
    %195 = vector.extract_strided_slice %191 {offsets = [0, 64], sizes = [2, 32], strides = [1, 1]} : vector<2x128xf32> to vector<2x32xf32>
    %196 = arith.mulf %193, %133 : vector<2x32xf32>
    %197 = arith.mulf %192, %195 : vector<2x32xf32>
    %198 = arith.addf %196, %197 : vector<2x32xf32>
    %199 = math.tanh %198 : vector<2x32xf32>
    %200 = arith.mulf %194, %199 : vector<2x32xf32>
    %201 = vector.shape_cast %200 : vector<2x32xf32> to vector<2x1x32xf32>
    "tpu.trace_start"() <{level = 10 : i32, message = "bqk,btk->bqt"}> : () -> ()
    %cst_47 = arith.constant dense<0.000000e+00> : vector<2x1x8xf32>
    %202 = tpu.matmul %201, %28, %cst_47 {dimension_numbers = #tpu.dot_dimension_numbers<[2], [2], [1], [1], [0, 0, 0, 1, 1, 1], [0], [0]>, precision = #tpu.contract_precision<fp32>} : vector<2x1x32xf32>, vector<2x8x32xf32>, vector<2x1x8xf32> -> vector<2x1x8xf32>
    "tpu.trace_stop"() : () -> ()
    %203 = vector.shape_cast %202 : vector<2x1x8xf32> to vector<2x8xf32>
    %204 = arith.addf %203, %31 : vector<2x8xf32>
    %cst_48 = arith.constant dense<0xFF800000> : vector<2xf32>
    %205 = vector.multi_reduction <maximumf>, %204, %cst_48 [1] : vector<2x8xf32> to vector<2xf32>
    %206 = vector.shape_cast %205 : vector<2xf32> to vector<2x1xf32>
    %207 = vector.broadcast %206 : vector<2x1xf32> to vector<2x8xf32>
    %208 = arith.subf %204, %207 : vector<2x8xf32>
    %209 = math.exp %208 : vector<2x8xf32>
    %210 = vector.shape_cast %209 : vector<2x8xf32> to vector<2x1x8xf32>
    "tpu.trace_start"() <{level = 10 : i32, message = "bqt,btm->bqm"}> : () -> ()
    %cst_49 = arith.constant dense<0.000000e+00> : vector<2x1x10xf32>
    %211 = tpu.matmul %210, %50, %cst_49 {dimension_numbers = #tpu.dot_dimension_numbers<[2], [1], [1], [2], [0, 0, 0, 1, 1, 2], [0], [0]>, precision = #tpu.contract_precision<fp32>} : vector<2x1x8xf32>, vector<2x8x10xf32>, vector<2x1x10xf32> -> vector<2x1x10xf32>
    "tpu.trace_stop"() : () -> ()
    %212 = vector.shape_cast %211 : vector<2x1x10xf32> to vector<2x10xf32>
    %213 = vector.extract_strided_slice %212 {offsets = [0, 9], sizes = [2, 1], strides = [1, 1]} : vector<2x10xf32> to vector<2x1xf32>
    %214 = tpu.reciprocal %213 {approx = true} : vector<2x1xf32> -> vector<2x1xf32>
    %215 = arith.mulf %213, %214 : vector<2x1xf32>
    %cst_50 = arith.constant 2.000000e+00 : f32
    %216 = vector.broadcast %cst_50 : f32 to vector<2x1xf32>
    %217 = arith.subf %216, %215 : vector<2x1xf32>
    %218 = arith.mulf %214, %217 : vector<2x1xf32>
    "tpu.trace_start"() <{level = 10 : i32, message = "bqk,bnk->bqn"}> : () -> ()
    %cst_51 = arith.constant dense<0.000000e+00> : vector<2x1x9xf32>
    %219 = tpu.matmul %201, %41, %cst_51 {dimension_numbers = #tpu.dot_dimension_numbers<[2], [2], [1], [1], [0, 0, 0, 1, 1, 1], [0], [0]>, precision = #tpu.contract_precision<fp32>} : vector<2x1x32xf32>, vector<2x9x32xf32>, vector<2x1x9xf32> -> vector<2x1x9xf32>
    "tpu.trace_stop"() : () -> ()
    %220 = vector.shape_cast %219 : vector<2x1x9xf32> to vector<2x9xf32>
    %221 = vector.extract_strided_slice %212 {offsets = [0, 0], sizes = [2, 9], strides = [1, 1]} : vector<2x10xf32> to vector<2x9xf32>
    %222 = vector.broadcast %218 : vector<2x1xf32> to vector<2x9xf32>
    %223 = arith.mulf %221, %222 : vector<2x9xf32>
    %224 = arith.addf %220, %223 : vector<2x9xf32>
    %225 = arith.addf %224, %47 : vector<2x9xf32>
    %226 = vector.extract_strided_slice %225 {offsets = [0, 0], sizes = [2, 8], strides = [1, 1]} : vector<2x9xf32> to vector<2x8xf32>
    %227 = vector.extract_strided_slice %225 {offsets = [0, 8], sizes = [2, 1], strides = [1, 1]} : vector<2x9xf32> to vector<2x1xf32>
    %228 = vector.broadcast %227 : vector<2x1xf32> to vector<2x8xf32>
    %229 = arith.mulf %178, %228 : vector<2x8xf32>
    %230 = arith.addf %226, %229 : vector<2x8xf32>
    %cst_52 = arith.constant dense<0xFF800000> : vector<2xf32>
    %231 = vector.multi_reduction <maximumf>, %230, %cst_52 [1] : vector<2x8xf32> to vector<2xf32>
    %232 = vector.shape_cast %231 : vector<2xf32> to vector<2x1xf32>
    %233 = vector.broadcast %232 : vector<2x1xf32> to vector<2x8xf32>
    %234 = arith.cmpf oeq, %230, %233 : vector<2x8xf32>
    %c8_i32_53 = arith.constant 8 : i32
    %235 = vector.broadcast %c8_i32_53 : i32 to vector<2x8xi32>
    %236 = arith.select %234, %21, %235 : vector<2x8xi1>, vector<2x8xi32>
    %cst_54 = arith.constant dense<2147483647> : vector<2xi32>
    %237 = vector.multi_reduction <minsi>, %236, %cst_54 [1] : vector<2x8xi32> to vector<2xi32>
    %238 = vector.shape_cast %237 : vector<2xi32> to vector<2x1xi32>
    %239 = vector.broadcast %238 : vector<2x1xi32> to vector<2x8xi32>
    %240 = arith.cmpi eq, %21, %239 : vector<2x8xi32>
    %241 = arith.extui %240 : vector<2x8xi1> to vector<2x8xi32>
    %242 = arith.sitofp %241 : vector<2x8xi32> to vector<2x8xf32>
    %243 = arith.maximumf %178, %242 : vector<2x8xf32>
    %244 = vector.shape_cast %242 : vector<2x8xf32> to vector<2x1x8xf32>
    "tpu.trace_start"() <{level = 10 : i32, message = "bqn,bnk->bqk"}> : () -> ()
    %cst_55 = arith.constant dense<0.000000e+00> : vector<2x1x128xf32>
    %245 = tpu.matmul %244, %24, %cst_55 {dimension_numbers = #tpu.dot_dimension_numbers<[2], [1], [1], [2], [0, 0, 0, 1, 1, 2], [0], [0]>, precision = #tpu.contract_precision<fp32>} : vector<2x1x8xf32>, vector<2x8x128xf32>, vector<2x1x128xf32> -> vector<2x1x128xf32>
    "tpu.trace_stop"() : () -> ()
    %246 = vector.shape_cast %245 : vector<2x1x128xf32> to vector<2x128xf32>
    %cst_56 = arith.constant dense<0.000000e+00> : vector<2x128xf32>
    %247 = tpu.matmul %200, %8, %cst_56 {dimension_numbers = #tpu.dot_dimension_numbers<[1], [0], [0], [1], [0, 0, 1, 1], [], []>, precision = #tpu.contract_precision<fp32>} : vector<2x32xf32>, vector<32x128xf32>, vector<2x128xf32> -> vector<2x128xf32>
    %248 = arith.addf %247, %246 : vector<2x128xf32>
    %249 = vector.broadcast %9 : vector<1x128xf32> to vector<2x128xf32>
    %250 = arith.addf %248, %249 : vector<2x128xf32>
    %251 = arith.negf %250 : vector<2x128xf32>
    %252 = math.exp %251 : vector<2x128xf32>
    %cst_57 = arith.constant 1.000000e+00 : f32
    %253 = vector.broadcast %cst_57 : f32 to vector<2x128xf32>
    %254 = arith.addf %253, %252 : vector<2x128xf32>
    %255 = arith.divf %253, %254 : vector<2x128xf32>
    %256 = math.tanh %250 : vector<2x128xf32>
    %257 = vector.extract_strided_slice %255 {offsets = [0, 0], sizes = [2, 32], strides = [1, 1]} : vector<2x128xf32> to vector<2x32xf32>
    %258 = vector.extract_strided_slice %255 {offsets = [0, 32], sizes = [2, 32], strides = [1, 1]} : vector<2x128xf32> to vector<2x32xf32>
    %259 = vector.extract_strided_slice %255 {offsets = [0, 96], sizes = [2, 32], strides = [1, 1]} : vector<2x128xf32> to vector<2x32xf32>
    %260 = vector.extract_strided_slice %256 {offsets = [0, 64], sizes = [2, 32], strides = [1, 1]} : vector<2x128xf32> to vector<2x32xf32>
    %261 = arith.mulf %258, %198 : vector<2x32xf32>
    %262 = arith.mulf %257, %260 : vector<2x32xf32>
    %263 = arith.addf %261, %262 : vector<2x32xf32>
    %264 = math.tanh %263 : vector<2x32xf32>
    %265 = arith.mulf %259, %264 : vector<2x32xf32>
    %266 = vector.shape_cast %265 : vector<2x32xf32> to vector<2x1x32xf32>
    "tpu.trace_start"() <{level = 10 : i32, message = "bqk,btk->bqt"}> : () -> ()
    %cst_58 = arith.constant dense<0.000000e+00> : vector<2x1x8xf32>
    %267 = tpu.matmul %266, %28, %cst_58 {dimension_numbers = #tpu.dot_dimension_numbers<[2], [2], [1], [1], [0, 0, 0, 1, 1, 1], [0], [0]>, precision = #tpu.contract_precision<fp32>} : vector<2x1x32xf32>, vector<2x8x32xf32>, vector<2x1x8xf32> -> vector<2x1x8xf32>
    "tpu.trace_stop"() : () -> ()
    %268 = vector.shape_cast %267 : vector<2x1x8xf32> to vector<2x8xf32>
    %269 = arith.addf %268, %31 : vector<2x8xf32>
    %cst_59 = arith.constant dense<0xFF800000> : vector<2xf32>
    %270 = vector.multi_reduction <maximumf>, %269, %cst_59 [1] : vector<2x8xf32> to vector<2xf32>
    %271 = vector.shape_cast %270 : vector<2xf32> to vector<2x1xf32>
    %272 = vector.broadcast %271 : vector<2x1xf32> to vector<2x8xf32>
    %273 = arith.subf %269, %272 : vector<2x8xf32>
    %274 = math.exp %273 : vector<2x8xf32>
    %275 = vector.shape_cast %274 : vector<2x8xf32> to vector<2x1x8xf32>
    "tpu.trace_start"() <{level = 10 : i32, message = "bqt,btm->bqm"}> : () -> ()
    %cst_60 = arith.constant dense<0.000000e+00> : vector<2x1x10xf32>
    %276 = tpu.matmul %275, %50, %cst_60 {dimension_numbers = #tpu.dot_dimension_numbers<[2], [1], [1], [2], [0, 0, 0, 1, 1, 2], [0], [0]>, precision = #tpu.contract_precision<fp32>} : vector<2x1x8xf32>, vector<2x8x10xf32>, vector<2x1x10xf32> -> vector<2x1x10xf32>
    "tpu.trace_stop"() : () -> ()
    %277 = vector.shape_cast %276 : vector<2x1x10xf32> to vector<2x10xf32>
    %278 = vector.extract_strided_slice %277 {offsets = [0, 9], sizes = [2, 1], strides = [1, 1]} : vector<2x10xf32> to vector<2x1xf32>
    %279 = tpu.reciprocal %278 {approx = true} : vector<2x1xf32> -> vector<2x1xf32>
    %280 = arith.mulf %278, %279 : vector<2x1xf32>
    %cst_61 = arith.constant 2.000000e+00 : f32
    %281 = vector.broadcast %cst_61 : f32 to vector<2x1xf32>
    %282 = arith.subf %281, %280 : vector<2x1xf32>
    %283 = arith.mulf %279, %282 : vector<2x1xf32>
    "tpu.trace_start"() <{level = 10 : i32, message = "bqk,bnk->bqn"}> : () -> ()
    %cst_62 = arith.constant dense<0.000000e+00> : vector<2x1x9xf32>
    %284 = tpu.matmul %266, %41, %cst_62 {dimension_numbers = #tpu.dot_dimension_numbers<[2], [2], [1], [1], [0, 0, 0, 1, 1, 1], [0], [0]>, precision = #tpu.contract_precision<fp32>} : vector<2x1x32xf32>, vector<2x9x32xf32>, vector<2x1x9xf32> -> vector<2x1x9xf32>
    "tpu.trace_stop"() : () -> ()
    %285 = vector.shape_cast %284 : vector<2x1x9xf32> to vector<2x9xf32>
    %286 = vector.extract_strided_slice %277 {offsets = [0, 0], sizes = [2, 9], strides = [1, 1]} : vector<2x10xf32> to vector<2x9xf32>
    %287 = vector.broadcast %283 : vector<2x1xf32> to vector<2x9xf32>
    %288 = arith.mulf %286, %287 : vector<2x9xf32>
    %289 = arith.addf %285, %288 : vector<2x9xf32>
    %290 = arith.addf %289, %47 : vector<2x9xf32>
    %291 = vector.extract_strided_slice %290 {offsets = [0, 0], sizes = [2, 8], strides = [1, 1]} : vector<2x9xf32> to vector<2x8xf32>
    %292 = vector.extract_strided_slice %290 {offsets = [0, 8], sizes = [2, 1], strides = [1, 1]} : vector<2x9xf32> to vector<2x1xf32>
    %293 = vector.broadcast %292 : vector<2x1xf32> to vector<2x8xf32>
    %294 = arith.mulf %243, %293 : vector<2x8xf32>
    %295 = arith.addf %291, %294 : vector<2x8xf32>
    %cst_63 = arith.constant dense<0xFF800000> : vector<2xf32>
    %296 = vector.multi_reduction <maximumf>, %295, %cst_63 [1] : vector<2x8xf32> to vector<2xf32>
    %297 = vector.shape_cast %296 : vector<2xf32> to vector<2x1xf32>
    %298 = vector.broadcast %297 : vector<2x1xf32> to vector<2x8xf32>
    %299 = arith.cmpf oeq, %295, %298 : vector<2x8xf32>
    %c8_i32_64 = arith.constant 8 : i32
    %300 = vector.broadcast %c8_i32_64 : i32 to vector<2x8xi32>
    %301 = arith.select %299, %21, %300 : vector<2x8xi1>, vector<2x8xi32>
    %cst_65 = arith.constant dense<2147483647> : vector<2xi32>
    %302 = vector.multi_reduction <minsi>, %301, %cst_65 [1] : vector<2x8xi32> to vector<2xi32>
    %303 = vector.shape_cast %302 : vector<2xi32> to vector<2x1xi32>
    %304 = vector.broadcast %303 : vector<2x1xi32> to vector<2x8xi32>
    %305 = arith.cmpi eq, %21, %304 : vector<2x8xi32>
    %306 = arith.extui %305 : vector<2x8xi1> to vector<2x8xi32>
    %307 = arith.sitofp %306 : vector<2x8xi32> to vector<2x8xf32>
    %308 = arith.maximumf %243, %307 : vector<2x8xf32>
    %309 = vector.shape_cast %307 : vector<2x8xf32> to vector<2x1x8xf32>
    "tpu.trace_start"() <{level = 10 : i32, message = "bqn,bnk->bqk"}> : () -> ()
    %cst_66 = arith.constant dense<0.000000e+00> : vector<2x1x128xf32>
    %310 = tpu.matmul %309, %24, %cst_66 {dimension_numbers = #tpu.dot_dimension_numbers<[2], [1], [1], [2], [0, 0, 0, 1, 1, 2], [0], [0]>, precision = #tpu.contract_precision<fp32>} : vector<2x1x8xf32>, vector<2x8x128xf32>, vector<2x1x128xf32> -> vector<2x1x128xf32>
    "tpu.trace_stop"() : () -> ()
    %311 = vector.shape_cast %310 : vector<2x1x128xf32> to vector<2x128xf32>
    %cst_67 = arith.constant dense<0.000000e+00> : vector<2x128xf32>
    %312 = tpu.matmul %265, %8, %cst_67 {dimension_numbers = #tpu.dot_dimension_numbers<[1], [0], [0], [1], [0, 0, 1, 1], [], []>, precision = #tpu.contract_precision<fp32>} : vector<2x32xf32>, vector<32x128xf32>, vector<2x128xf32> -> vector<2x128xf32>
    %313 = arith.addf %312, %311 : vector<2x128xf32>
    %314 = vector.broadcast %9 : vector<1x128xf32> to vector<2x128xf32>
    %315 = arith.addf %313, %314 : vector<2x128xf32>
    %316 = arith.negf %315 : vector<2x128xf32>
    %317 = math.exp %316 : vector<2x128xf32>
    %cst_68 = arith.constant 1.000000e+00 : f32
    %318 = vector.broadcast %cst_68 : f32 to vector<2x128xf32>
    %319 = arith.addf %318, %317 : vector<2x128xf32>
    %320 = arith.divf %318, %319 : vector<2x128xf32>
    %321 = math.tanh %315 : vector<2x128xf32>
    %322 = vector.extract_strided_slice %320 {offsets = [0, 0], sizes = [2, 32], strides = [1, 1]} : vector<2x128xf32> to vector<2x32xf32>
    %323 = vector.extract_strided_slice %320 {offsets = [0, 32], sizes = [2, 32], strides = [1, 1]} : vector<2x128xf32> to vector<2x32xf32>
    %324 = vector.extract_strided_slice %320 {offsets = [0, 96], sizes = [2, 32], strides = [1, 1]} : vector<2x128xf32> to vector<2x32xf32>
    %325 = vector.extract_strided_slice %321 {offsets = [0, 64], sizes = [2, 32], strides = [1, 1]} : vector<2x128xf32> to vector<2x32xf32>
    %326 = arith.mulf %323, %263 : vector<2x32xf32>
    %327 = arith.mulf %322, %325 : vector<2x32xf32>
    %328 = arith.addf %326, %327 : vector<2x32xf32>
    %329 = math.tanh %328 : vector<2x32xf32>
    %330 = arith.mulf %324, %329 : vector<2x32xf32>
    %331 = vector.shape_cast %330 : vector<2x32xf32> to vector<2x1x32xf32>
    "tpu.trace_start"() <{level = 10 : i32, message = "bqk,btk->bqt"}> : () -> ()
    %cst_69 = arith.constant dense<0.000000e+00> : vector<2x1x8xf32>
    %332 = tpu.matmul %331, %28, %cst_69 {dimension_numbers = #tpu.dot_dimension_numbers<[2], [2], [1], [1], [0, 0, 0, 1, 1, 1], [0], [0]>, precision = #tpu.contract_precision<fp32>} : vector<2x1x32xf32>, vector<2x8x32xf32>, vector<2x1x8xf32> -> vector<2x1x8xf32>
    "tpu.trace_stop"() : () -> ()
    %333 = vector.shape_cast %332 : vector<2x1x8xf32> to vector<2x8xf32>
    %334 = arith.addf %333, %31 : vector<2x8xf32>
    %cst_70 = arith.constant dense<0xFF800000> : vector<2xf32>
    %335 = vector.multi_reduction <maximumf>, %334, %cst_70 [1] : vector<2x8xf32> to vector<2xf32>
    %336 = vector.shape_cast %335 : vector<2xf32> to vector<2x1xf32>
    %337 = vector.broadcast %336 : vector<2x1xf32> to vector<2x8xf32>
    %338 = arith.subf %334, %337 : vector<2x8xf32>
    %339 = math.exp %338 : vector<2x8xf32>
    %340 = vector.shape_cast %339 : vector<2x8xf32> to vector<2x1x8xf32>
    "tpu.trace_start"() <{level = 10 : i32, message = "bqt,btm->bqm"}> : () -> ()
    %cst_71 = arith.constant dense<0.000000e+00> : vector<2x1x10xf32>
    %341 = tpu.matmul %340, %50, %cst_71 {dimension_numbers = #tpu.dot_dimension_numbers<[2], [1], [1], [2], [0, 0, 0, 1, 1, 2], [0], [0]>, precision = #tpu.contract_precision<fp32>} : vector<2x1x8xf32>, vector<2x8x10xf32>, vector<2x1x10xf32> -> vector<2x1x10xf32>
    "tpu.trace_stop"() : () -> ()
    %342 = vector.shape_cast %341 : vector<2x1x10xf32> to vector<2x10xf32>
    %343 = vector.extract_strided_slice %342 {offsets = [0, 9], sizes = [2, 1], strides = [1, 1]} : vector<2x10xf32> to vector<2x1xf32>
    %344 = tpu.reciprocal %343 {approx = true} : vector<2x1xf32> -> vector<2x1xf32>
    %345 = arith.mulf %343, %344 : vector<2x1xf32>
    %cst_72 = arith.constant 2.000000e+00 : f32
    %346 = vector.broadcast %cst_72 : f32 to vector<2x1xf32>
    %347 = arith.subf %346, %345 : vector<2x1xf32>
    %348 = arith.mulf %344, %347 : vector<2x1xf32>
    "tpu.trace_start"() <{level = 10 : i32, message = "bqk,bnk->bqn"}> : () -> ()
    %cst_73 = arith.constant dense<0.000000e+00> : vector<2x1x9xf32>
    %349 = tpu.matmul %331, %41, %cst_73 {dimension_numbers = #tpu.dot_dimension_numbers<[2], [2], [1], [1], [0, 0, 0, 1, 1, 1], [0], [0]>, precision = #tpu.contract_precision<fp32>} : vector<2x1x32xf32>, vector<2x9x32xf32>, vector<2x1x9xf32> -> vector<2x1x9xf32>
    "tpu.trace_stop"() : () -> ()
    %350 = vector.shape_cast %349 : vector<2x1x9xf32> to vector<2x9xf32>
    %351 = vector.extract_strided_slice %342 {offsets = [0, 0], sizes = [2, 9], strides = [1, 1]} : vector<2x10xf32> to vector<2x9xf32>
    %352 = vector.broadcast %348 : vector<2x1xf32> to vector<2x9xf32>
    %353 = arith.mulf %351, %352 : vector<2x9xf32>
    %354 = arith.addf %350, %353 : vector<2x9xf32>
    %355 = arith.addf %354, %47 : vector<2x9xf32>
    %356 = vector.extract_strided_slice %355 {offsets = [0, 0], sizes = [2, 8], strides = [1, 1]} : vector<2x9xf32> to vector<2x8xf32>
    %357 = vector.extract_strided_slice %355 {offsets = [0, 8], sizes = [2, 1], strides = [1, 1]} : vector<2x9xf32> to vector<2x1xf32>
    %358 = vector.broadcast %357 : vector<2x1xf32> to vector<2x8xf32>
    %359 = arith.mulf %308, %358 : vector<2x8xf32>
    %360 = arith.addf %356, %359 : vector<2x8xf32>
    %361 = vector.shape_cast %100 : vector<2x8xf32> to vector<2x1x8xf32>
    %362 = vector.shape_cast %165 : vector<2x8xf32> to vector<2x1x8xf32>
    %363 = vector.shape_cast %230 : vector<2x8xf32> to vector<2x1x8xf32>
    %364 = vector.shape_cast %295 : vector<2x8xf32> to vector<2x1x8xf32>
    %365 = vector.shape_cast %360 : vector<2x8xf32> to vector<2x1x8xf32>
    %366 = tpu.concatenate %361, %362, %363, %364, %365 in 1 : vector<2x1x8xf32>, vector<2x1x8xf32>, vector<2x1x8xf32>, vector<2x1x8xf32>, vector<2x1x8xf32> -> vector<2x5x8xf32>
    %c0_74 = arith.constant 0 : index
    %c0_75 = arith.constant 0 : index
    %c0_76 = arith.constant 0 : index
    %367 = vector.load %arg7[%c0_74, %c0_75, %c0_76] : memref<2x5x8xf32, #tpu.memory_space<vmem>>, vector<2x5x8xf32>
    tpu.vector_store %arg7[%c0_74, %c0_75, %c0_76], %366 {strides = array<i32>} : memref<2x5x8xf32, #tpu.memory_space<vmem>>, vector<2x5x8xf32>,
    return
  }
  func.func @transform_0(%arg0: i32) -> (i32, i32, i32) {
    %c0_i32 = arith.constant 0 : i32
    %c0_i32_0 = arith.constant 0 : i32
    %c0_i32_1 = arith.constant 0 : i32
    return %arg0, %c0_i32, %c0_i32_0 : i32, i32, i32
  }
  func.func @transform_1(%arg0: i32) -> (i32, i32, i32) {
    %c0_i32 = arith.constant 0 : i32
    %c0_i32_0 = arith.constant 0 : i32
    %c0_i32_1 = arith.constant 0 : i32
    return %arg0, %c0_i32, %c0_i32_0 : i32, i32, i32
  }
  func.func @transform_2(%arg0: i32) -> (i32, i32, i32) {
    %c0_i32 = arith.constant 0 : i32
    %c0_i32_0 = arith.constant 0 : i32
    %c0_i32_1 = arith.constant 0 : i32
    return %arg0, %c0_i32, %c0_i32_0 : i32, i32, i32
  }
  func.func @transform_3(%arg0: i32) -> (i32, i32) {
    %c0_i32 = arith.constant 0 : i32
    %c0_i32_0 = arith.constant 0 : i32
    %c0_i32_1 = arith.constant 0 : i32
    return %c0_i32, %c0_i32_0 : i32, i32
  }
  func.func @transform_4(%arg0: i32) -> (i32, i32) {
    %c0_i32 = arith.constant 0 : i32
    %c0_i32_0 = arith.constant 0 : i32
    %c0_i32_1 = arith.constant 0 : i32
    return %c0_i32, %c0_i32_0 : i32, i32
  }
  func.func @transform_5(%arg0: i32) -> (i32, i32) {
    %c0_i32 = arith.constant 0 : i32
    %c0_i32_0 = arith.constant 0 : i32
    %c0_i32_1 = arith.constant 0 : i32
    return %c0_i32, %c0_i32_0 : i32, i32
  }
  func.func @transform_6(%arg0: i32) -> (i32, i32, i32) {
    %c0_i32 = arith.constant 0 : i32
    %c0_i32_0 = arith.constant 0 : i32
    %c0_i32_1 = arith.constant 0 : i32
    return %arg0, %c0_i32, %c0_i32_0 : i32, i32, i32
  }
}

</mosaic_0001>

<bundles_post_ra>
// kernel: tpu_custom_call.1
= control target key start
LH: loop header
LB: loop body
LE: loop exit
PB: predicated region body
PF: predicated region fallthrough
CT: control target
= control target key end

     0   :  { %11 = vsyncpa [#allocation3], 0  ;;  %s28698_s0 = inlined_call_operand.hbm [shape: f32[2,8,32], index: 0, kind: input, shape index: {}]   ;;  %s28699_s1 = inlined_call_operand.hbm [shape: f32[2,8,32], index: 1, kind: input, shape index: {}]   ;;  %s28700_s2 = inlined_call_operand.vmem [shape: f32[2,1,16], index: 2, kind: input, shape index: {}]   ;;  %s28701_s3 = inlined_call_operand.hbm [shape: f32[66,128], index: 3, kind: input, shape index: {}]   ;;  %s28702_s4 = inlined_call_operand.hbm [shape: f32[32,33], index: 4, kind: input, shape index: {}]   ;;  %s28703_s5 = inlined_call_operand.hbm [shape: f32[33,65], index: 5, kind: input, shape index: {}]   ;;  %s28704_s6 = inlined_call_operand.vmem [shape: f32[2,5,8], index: 6, kind: output, shape index: {}]  }
   0x1   :  { %12 = vsyncpa [#allocation5], 0 }
   0x2   :  { %13 = vsyncpa [#allocation8], 0  ;;  %s26371_s21 = smov [#allocation4]   ;;  %s26372_s23 = smov [#allocation7]  }
   0x3   :  { %s31_s22 = sshll.u32 %s26371_s21, 4  ;;  %s57_s24 = sshll.u32 %s26372_s23, 4  ;;  %s32_s22 = int_to_ptr.vmem [resolvable:$true] %s31_s22  ;;  %s26424_s24 = int_to_ptr.vmem [resolvable:$true] %s57_s24 }
   0x4   :  { %s26255_s27 = scalar_lea.hbm %s28699_s1, 256 }
   0x5   :  { %p26256_p0 = scmp.ne.s32.totalorder %s28699_s1, %s26255_s27  ;;  %p26259_p1 = scmp.lt.u32.totalorder %s26255_s27, %s28699_s1 }
   0x7   :  { %p26261_p2 = pnand %p26259_p1, %p26256_p0 }
   0x9   :  { %26264 = shalt.err (!%p26261_p2)
}
   0xa   :  { %s26265_s8 = scalar_lea.vmem %s32_s22, 256  ;;  %p26270_p4 = scmp.lt.s32.totalorder %s32_s22, %s32_s22 }
   0xb   :  { %p26266_p3 = scmp.ne.s32.totalorder %s32_s22, %s26265_s8  ;;  %p26271_p5 = scmp.lt.s32.totalorder %s26265_s8, %s26265_s8 }
   0xd   :  { %p26272_p6 = por %p26271_p5, %p26270_p4 }
   0xf   :  { %p26273_p7 = pnand %p26272_p6, %p26266_p3 }
  0x11   :  { %26276 = shalt.err (!%p26273_p7)
}
  0x12   :  { %s26373_s9 = smov 128   ;;  %s26374_s10 = smov 8  }
  0x13   :  { %37 = dma.hbm_to_vmem [thread:$0]  %s28699_s1, 256, %s32_s22, [#allocation5], %s26373_s9, %s26373_s9, %s26374_s10  }
  0x14   :  { %s26277_s15 = scalar_lea.hbm %s28702_s4, 512 }
  0x15   :  { %p26278_p8 = scmp.ne.s32.totalorder %s28702_s4, %s26277_s15  ;;  %p26281_p9 = scmp.lt.u32.totalorder %s26277_s15, %s28702_s4 }
  0x17   :  { %p26283_p10 = pnand %p26281_p9, %p26278_p8 }
  0x19   :  { %26286 = shalt.err (!%p26283_p10)
}
  0x1a   :  { %s26287_s20 = scalar_lea.vmem %s26424_s24, 512  ;;  %p26292_p12 = scmp.lt.s32.totalorder %s26424_s24, %s26424_s24 }
  0x1b   :  { %p26288_p11 = scmp.ne.s32.totalorder %s26424_s24, %s26287_s20  ;;  %p26293_p13 = scmp.lt.s32.totalorder %s26287_s20, %s26287_s20 }
  0x1d   :  { %p26294_p0 = por %p26293_p13, %p26292_p12 }
  0x1f   :  { %p26295_p1 = pnand %p26294_p0, %p26288_p11 }
  0x21   :  { %26298 = shalt.err (!%p26295_p1)
}
  0x22   :  { %63 = dma.hbm_to_vmem [thread:$0]  %s28702_s4, 512, %s26424_s24, [#allocation8], %s26373_s9, %s26373_s9, %s26374_s10  }
  0x23   :  { %s26375_s22 = smov [#allocation2]   ;;  %s26376_s25 = smov [#allocation6]  }
  0x24   :  { %s19_s23 = sshll.u32 %s26375_s22, 4  ;;  %s45_s26 = sshll.u32 %s26376_s25, 4  ;;  %s20_s23 = int_to_ptr.vmem [resolvable:$true] %s19_s23  ;;  %s26461_s26 = int_to_ptr.vmem [resolvable:$true] %s45_s26 }
  0x25   :  { %s26299_s29 = scalar_lea.hbm %s28698_s0, 256 }
  0x26   :  { %p26300_p2 = scmp.ne.s32.totalorder %s28698_s0, %s26299_s29  ;;  %p26303_p3 = scmp.lt.u32.totalorder %s26299_s29, %s28698_s0 }
  0x28   :  { %p26305_p4 = pnand %p26303_p3, %p26300_p2 }
  0x2a   :  { %26308 = shalt.err (!%p26305_p4)
}
  0x2b   :  { %s26309_s4 = scalar_lea.vmem %s20_s23, 256  ;;  %p26314_p6 = scmp.lt.s32.totalorder %s20_s23, %s20_s23 }
  0x2c   :  { %p26310_p5 = scmp.ne.s32.totalorder %s20_s23, %s26309_s4  ;;  %p26315_p7 = scmp.lt.s32.totalorder %s26309_s4, %s26309_s4 }
  0x2e   :  { %p26316_p8 = por %p26315_p7, %p26314_p6 }
  0x30   :  { %p26317_p9 = pnand %p26316_p8, %p26310_p5 }
  0x32   :  { %26320 = shalt.err (!%p26317_p9)
}
  0x33   :  { %25 = dma.hbm_to_vmem [thread:$0]  %s28698_s0, 256, %s20_s23, [#allocation3], %s26373_s9, %s26373_s9, %s26374_s10  }
  0x34   :  { %s26321_s15 = scalar_lea.hbm %s28701_s3, 1152 }
  0x35   :  { %p26322_p10 = scmp.ne.s32.totalorder %s28701_s3, %s26321_s15  ;;  %p26325_p11 = scmp.lt.u32.totalorder %s26321_s15, %s28701_s3 }
  0x37   :  { %p26327_p12 = pnand %p26325_p11, %p26322_p10 }
  0x39   :  { %26330 = shalt.err (!%p26327_p12)
}
  0x3a   :  { %s26331_s20 = scalar_lea.vmem %s26461_s26, 1152  ;;  %p26336_p0 = scmp.lt.s32.totalorder %s26461_s26, %s26461_s26 }
  0x3b   :  { %p26332_p13 = scmp.ne.s32.totalorder %s26461_s26, %s26331_s20  ;;  %p26337_p1 = scmp.lt.s32.totalorder %s26331_s20, %s26331_s20 }
  0x3d   :  { %p26338_p2 = por %p26337_p1, %p26336_p0 }
  0x3f   :  { %p26339_p3 = pnand %p26338_p2, %p26332_p13 }
  0x41   :  { %26342 = shalt.err (!%p26339_p3)
}
  0x42   :  { %51 = dma.hbm_to_vmem [thread:$0]  %s28701_s3, 1152, %s26461_s26, [#allocation5], %s26373_s9, %s26373_s9, %s26374_s10  }
  0x43   :  { %s26377_s21 = smov [#allocation9]   ;;  %s26343_s27 = scalar_lea.hbm %s28703_s5, 640 }
  0x44   :  { %s69_s22 = sshll.u32 %s26377_s21, 4  ;;  %p26344_p4 = scmp.ne.s32.totalorder %s28703_s5, %s26343_s27  ;;  %s70_s22 = int_to_ptr.vmem [resolvable:$true] %s69_s22 }
  0x45   :  { %p26347_p5 = scmp.lt.u32.totalorder %s26343_s27, %s28703_s5 }
  0x47   :  { %p26349_p6 = pnand %p26347_p5, %p26344_p4 }
  0x49   :  { %26352 = shalt.err (!%p26349_p6)
}
  0x4a   :  { %s26353_s8 = scalar_lea.vmem %s70_s22, 640  ;;  %p26358_p8 = scmp.lt.s32.totalorder %s70_s22, %s70_s22 }
  0x4b   :  { %p26354_p7 = scmp.ne.s32.totalorder %s70_s22, %s26353_s8  ;;  %p26359_p9 = scmp.lt.s32.totalorder %s26353_s8, %s26353_s8 }
  0x4d   :  { %p26360_p10 = por %p26359_p9, %p26358_p8 }
  0x4f   :  { %p26361_p11 = pnand %p26360_p10, %p26354_p7 }
  0x51   :  { %26364 = shalt.err (!%p26361_p11)
}
  0x52   :  { %75 = dma.hbm_to_vmem [thread:$0]  %s28703_s5, 640, %s70_s22, [#allocation8], %s26373_s9, %s26373_s9, %s26374_s10  }
  0x53   :  { %26365 = dma.done.wait [#allocation3], 256  }
  0x54   :  { %26366 = vsyncadd [#allocation3], 4294967040 }
  0x55   :  { %26367 = dma.done.wait [#allocation5], 1408  }
  0x56   :  { %26368 = vsyncadd [#allocation5], 4294965888 }
  0x57   :  { %26369 = dma.done.wait [#allocation8], 1152  }
  0x58   :  { %26370 = vsyncadd [#allocation8], 4294966144  ;;  %v119_v0 = vlaneseq  ;;  %vm121_vm0 = vcmask 261120   ;;  %v97_v2 = vld [vmem:[#allocation6] sm:$0xff]  ;;  %v98_v3 = vld [vmem:[#allocation6 + $0x8] sm:$0xff]  ;;  %s26378_s5 = smov 64  }
  0x59   :  { %v99_v4 = vld [vmem:[#allocation6 + $0x10] sm:$0xff]  ;;  %v129_v5 = vand.u32 4294901760, %v97_v2  ;;  %v132_v6 = vand.u32 4294901760, %v98_v3  ;;  %v100_v7 = vld [vmem:[#allocation6 + $0x18] sm:$0xff]  ;;  %v91_v9 = vld [vmem:[#allocation2] sm:$0xff]  ;;  %s26379_s9 = smov 32  }
  0x5a   :  { %v26514_v1 = vshrl.u32 %v119_v0, 7  ;;  %v135_v8 = vand.u32 4294901760, %v99_v4  ;;  %v92_v10 = vld [vmem:[#allocation2 + $0x8] sm:$0xff]  ;;  %v138_v11 = vand.u32 4294901760, %v100_v7  ;;  %v123_v12 = vsel %vm121_vm0, %v91_v9, 0  ;;  %v107_v48 = vld [vmem:[#allocation7 + $0x8] sm:$0xff] }
  0x5b   :  { %v126_v13 = vsel %vm121_vm0, %v92_v10, 0  ;;  %v105_v14 = vld [vmem:[#allocation6 + $0x40] sm:$0x3]  ;;  %v26519_v16 = vpack.c.bf16 %v132_v6, %v129_v5  ;;  %v26521_v17 = vand.u32 4294901760, %v123_v12  ;;  %v26525_v19 = vsub.f32 %v97_v2, %v129_v5  ;;  %v106_v47 = vld [vmem:[#allocation7] sm:$0xff]  ;;  %v108_v51 = vld [vmem:[#allocation7 + $0x10] sm:$0xff] }
  0x5c   :  { %v1772_v15 = vsub.s32 1, %v26514_v1  ;;  %v26523_v18 = vand.u32 4294901760, %v126_v13  ;;  %v26527_v20 = vpack.c.bf16 %v138_v11, %v135_v8  ;;  %v26529_v21 = vsub.f32 %v98_v3, %v132_v6  ;;  %v109_v52 = vld [vmem:[#allocation7 + $0x18] sm:$0xff]  ;;  %v93_v56 = vld [vmem:[#allocation4] sm:$0xff]  ;;  %v94_v60 = vld [vmem:[#allocation4 + $0x8] sm:$0xff]  ;;  %s26380_s10 = smov 96  }
  0x5d   :  { %v26531_v22 = vsub.f32 %v99_v4, %v135_v8  ;;  %v26533_v23 = vsub.f32 %v100_v7, %v138_v11  ;;  %25407 = vmatprep.subr.bf16.mxu0 %v26519_v16  ;;  %v26537_v24 = vsub.f32 %v123_v12, %v26521_v17  ;;  %v220_v26 = vand.u32 4294901760, %v26525_v19 }
  0x5e   :  { %v26540_v25 = vsub.f32 %v126_v13, %v26523_v18  ;;  %v2726_v27 = vrot.slane %v105_v14, 7  ;;  %25409 = vmatpush3.bf16.msra.mxu0 %v26519_v16  ;;  %v227_v28 = vand.u32 4294901760, %v26529_v21  ;;  %v663_v53 = vand.u32 4294901760, %v106_v47 }
  0x5f   :  { %v234_v29 = vand.u32 4294901760, %v26531_v22  ;;  %v241_v30 = vand.u32 4294901760, %v26533_v23  ;;  %25411 = vmatprep.subr.bf16.mxu0 %v26527_v20  ;;  %v26549_v31 = vand.u32 4294901760, %v26537_v24  ;;  %v221_v33 = vsub.f32 %v26525_v19, %v220_v26 }
  0x60   :  { %v26552_v32 = vand.u32 4294901760, %v26540_v25  ;;  %v2728_v34 = vadd.f32 %v2726_v27, %v105_v14  ;;  %v228_v35 = vsub.f32 %v26529_v21, %v227_v28  ;;  %v666_v54 = vand.u32 4294901760, %v107_v48 }
  0x61   :  { %v235_v36 = vsub.f32 %v26531_v22, %v234_v29  ;;  %v242_v37 = vsub.f32 %v26533_v23, %v241_v30  ;;  %v200_v38 = vsub.f32 %v26537_v24, %v26549_v31  ;;  %v222_v40 = vand.u32 4294901760, %v221_v33 }
  0x62   :  { %v210_v39 = vsub.f32 %v26540_v25, %v26552_v32  ;;  %v26572_v41 = vrot.slane %v2728_v34, %v1772_v15  ;;  %25413 = vmatpush3.bf16.msra.mxu0 %v26527_v20  ;;  %v229_v42 = vand.u32 4294901760, %v228_v35  ;;  %v669_v55 = vand.u32 4294901760, %v108_v51 }
  0x63   :  { %v236_v43 = vand.u32 4294901760, %v235_v36  ;;  %v243_v44 = vand.u32 4294901760, %v242_v37  ;;  %v26575_v45 = vand.u32 4294901760, %v200_v38  ;;  %v672_v57 = vand.u32 4294901760, %v109_v52 }
  0x64   :  { %v26577_v46 = vand.u32 4294901760, %v210_v39  ;;  %26174 = vtanh.f32 %v26572_v41  ;;  %v25414_v49 = vpack.c.bf16 %v229_v42, %v222_v40  ;;  %v25422_v58 = vpack.c.bf16 %v26529_v21, %v26525_v19 }
  0x65   :  { %v25418_v50 = vpack.c.bf16 %v243_v44, %v236_v43  ;;  %23608 = vmatprep.mubr.f32.mxu0 %v26575_v45  ;;  %v26585_v59 = vpack.c.bf16 %v666_v54, %v663_v53  ;;  %v26587_v61 = vpack.c.bf16 %v672_v57, %v669_v55  ;;  %v657_v62 = vsel %vm121_vm0, %v93_v56, 0  ;;  %v113_v56 = vld [vmem:[#allocation9 + $0x18] sm:$0xff] }
  0x66   :  { %23609 = vmatmul.mubr.f32.vlgmr.msra.gmra.mrb[0].mxu0 %v26577_v46  ;;  %25415 = vmatprep.subr.bf16.mxu0 %v25414_v49  ;;  %v26592_v63 = vand.u32 4294901760, %v657_v62  ;;  %v660_v2 = vsel %vm121_vm0, %v94_v60, 0  ;;  %v25426_v3 = vpack.c.bf16 %v26533_v23, %v26531_v22  ;;  %v26603_v7 = vsub.f32 %v106_v47, %v663_v53  ;;  %v111_v53 = vld [vmem:[#allocation9 + $0x8] sm:$0xff] }
  0x67   :  { %25417 = vmatpush3.bf16.msra.mxu0 %v25414_v49  ;;  %23619 = vmatprep.mubr.f32.mxu0 %v26521_v17  ;;  %v26601_v6 = vand.u32 4294901760, %v660_v2  ;;  %v26607_v8 = vsub.f32 %v107_v48, %v666_v54  ;;  %v26609_v9 = vsub.f32 %v108_v51, %v669_v55  ;;  %v26630_v35 = vsub.f32 %v109_v52, %v672_v57  ;;  %v110_v52 = vld [vmem:[#allocation9] sm:$0xff] }
  0x68   :  { %25419 = vmatprep.subr.bf16.mxu0 %v25418_v50  ;;  %25455 = vmatprep.subr.bf16.mxu1 %v26585_v59  ;;  %v26599_v5 = vsub.f32 %v657_v62, %v26592_v63  ;;  %v754_v12 = vand.u32 4294901760, %v26603_v7  ;;  %v25438_v51 = vpack.c.bf16 %v227_v28, %v220_v26  ;;  %v1213_v55 = vand.u32 4294901760, %v110_v52  ;;  %v112_v28 = vld [vmem:[#allocation9 + $0x10] sm:$0xff] }
  0x69   :  { %25457 = vmatpush3.bf16.msra.mxu1 %v26585_v59  ;;  %v26616_v11 = vsub.f32 %v660_v2, %v26601_v6  ;;  %v761_v13 = vand.u32 4294901760, %v26607_v8  ;;  %v768_v14 = vand.u32 4294901760, %v26609_v9  ;;  %v775_v42 = vand.u32 4294901760, %v26630_v35 }
  0x6a   :  { %25459 = vmatprep.subr.bf16.mxu1 %v26587_v61  ;;  %v26613_v10 = vand.u32 4294901760, %v26599_v5  ;;  %v755_v34 = vsub.f32 %v26603_v7, %v754_v12  ;;  %v25442_v19 = vpack.c.bf16 %v241_v30, %v234_v29  ;;  %v1216_v21 = vand.u32 4294901760, %v111_v53 }
  0x6b   :  { %25421 = vmatpush3.bf16.msra.mxu0 %v25418_v50  ;;  %v26625_v33 = vand.u32 4294901760, %v26616_v11  ;;  %v762_v36 = vsub.f32 %v26607_v8, %v761_v13  ;;  %v769_v37 = vsub.f32 %v26609_v9, %v768_v14  ;;  %v776_v48 = vsub.f32 %v26630_v35, %v775_v42 }
  0x6c   :  { %25423 = vmatprep.subr.bf16.mxu0 %v25422_v58  ;;  %v734_v27 = vsub.f32 %v26599_v5, %v26613_v10  ;;  %v756_v40 = vand.u32 4294901760, %v755_v34  ;;  %v25470_v26 = vpack.c.bf16 %v26607_v8, %v26603_v7  ;;  %v26669_v57 = vsub.f32 %v110_v52, %v1213_v55 }
  0x6d   :  { %25461 = vmatpush3.bf16.msra.mxu1 %v26587_v61  ;;  %v744_v39 = vsub.f32 %v26616_v11, %v26625_v33  ;;  %v763_v43 = vand.u32 4294901760, %v762_v36  ;;  %v770_v47 = vand.u32 4294901760, %v769_v37  ;;  %v777_v50 = vand.u32 4294901760, %v776_v48 }
  0x6e   :  { %v26175_v4 = vpop.eup %26174  ;;  %23620 = vmatmul.mubr.f32.vlgmr.msra.gmra.mrb[0].mxu0 %v26523_v18  ;;  %v26638_v38 = vand.u32 4294901760, %v734_v27  ;;  %v25474_v22 = vpack.c.bf16 %v26630_v35, %v26609_v9  ;;  %v1219_v23 = vand.u32 4294901760, %v112_v28  ;;  %v1222_v29 = vand.u32 4294901760, %v113_v56 }
  0x6f   :  { %2742 = vrot.lane.b32.xlu0 %v26175_v4, %s26378_s5  ;;  %25425 = vmatpush3.bf16.msra.mxu0 %v25422_v58  ;;  %v26645_v44 = vand.u32 4294901760, %v744_v39  ;;  %v25462_v49 = vpack.c.bf16 %v763_v43, %v756_v40  ;;  %v25466_v54 = vpack.c.bf16 %v777_v50, %v770_v47  ;;  %v26673_v30 = vsub.f32 %v111_v53, %v1216_v21 }
  0x70   :  { %23630 = vmatprep.mubr.f32.mxu0 %v26537_v24  ;;  %25427 = vmatprep.subr.bf16.mxu0 %v25426_v3  ;;  %v1304_v58 = vand.u32 4294901760, %v26669_v57  ;;  %v26680_v62 = vsub.f32 %v112_v28, %v1219_v23  ;;  %v26682_v2 = vsub.f32 %v113_v56, %v1222_v29  ;;  %v26691_v4 = vpack.c.bf16 %v1216_v21, %v1213_v55 }
  0x71   :  { %23674 = vmatprep.mubr.f32.mxu1 %v26638_v38  ;;  %25463 = vmatprep.subr.bf16.mxu1 %v25462_v49  ;;  %v1311_v60 = vand.u32 4294901760, %v26673_v30  ;;  %v25486_v47 = vpack.c.bf16 %v761_v13, %v754_v12  ;;  %v25518_v8 = vpack.c.bf16 %v26673_v30, %v26669_v57  ;;  %v26761_v13 = vld [vmem:[#allocation9 + $0x20] sm:$0x1]  ;;  %v28709_v21 = vmov 0.0|0.0  }
  0x72   :  { %23675 = vmatmul.mubr.f32.vlgmr.msra.gmra.mrb[0].mxu1 %v26645_v44  ;;  %v1318_v34 = vand.u32 4294901760, %v26680_v62  ;;  %v1325_v36 = vand.u32 4294901760, %v26682_v2  ;;  %vm26382_vm1 = vmmov 0   ;;  %vm1756_vm2 = vcmask 64512  }
  0x73   :  { %25429 = vmatpush3.bf16.msra.mxu0 %v25426_v3  ;;  %23685 = vmatprep.mubr.f32.mxu1 %v26592_v63  ;;  %v1305_v3 = vsub.f32 %v26669_v57, %v1304_v58  ;;  %v1312_v27 = vsub.f32 %v26673_v30, %v1311_v60  ;;  %vm2722_vm3 = vcmask 72704   ;;  %vm3717_vm4 = vcmask 1041409  }
  0x74   :  { %25431 = vmatprep.subr.bf16.mxu0 %v26519_v16  ;;  %25465 = vmatpush3.bf16.msra.mxu1 %v25462_v49  ;;  %v1319_v40 = vsub.f32 %v26680_v62, %v1318_v34  ;;  %v1326_v43 = vsub.f32 %v26682_v2, %v1325_v36  ;;  %vm3720_vm5 = vcmask 58368   ;;  %vm5603_vm6 = vcmask 130112  }
  0x75   :  { %25467 = vmatprep.subr.bf16.mxu1 %v25466_v54  ;;  %v1306_v37 = vand.u32 4294901760, %v1305_v3  ;;  %v1313_v39 = vand.u32 4294901760, %v1312_v27 }
  0x76   :  { %23631 = vmatmul.mubr.f32.vlgmr.msra.gmra.mrb[0].mxu0 %v26540_v25  ;;  %v1320_v7 = vand.u32 4294901760, %v1319_v40  ;;  %v1327_v49 = vand.u32 4294901760, %v1326_v43 }
  0x77   :  { %25433 = vmatpush3.bf16.msra.mxu0 %v26519_v16  ;;  %23641 = vmatprep.mubr.f32.mxu0 %v26549_v31  ;;  %v25510_v48 = vpack.c.bf16 %v1313_v39, %v1306_v37 }
  0x78   :  { %25435 = vmatprep.subr.bf16.mxu0 %v26527_v20  ;;  %25469 = vmatpush3.bf16.msra.mxu1 %v25466_v54 }
  0x79   :  { %25471 = vmatprep.subr.bf16.mxu1 %v25470_v26 }
  0x7b   :  { %25437 = vmatpush3.bf16.msra.mxu0 %v26527_v20  ;;  %23686 = vmatmul.mubr.f32.vlgmr.msra.gmra.mrb[0].mxu1 %v26601_v6 }
  0x7c   :  { %25439 = vmatprep.subr.bf16.mxu0 %v25438_v51  ;;  %25473 = vmatpush3.bf16.msra.mxu1 %v25470_v26  ;;  %v28727_v26 = vmov 0.0  }
  0x7d   :  { %23696 = vmatprep.mubr.f32.mxu1 %v26599_v5  ;;  %25475 = vmatprep.subr.bf16.mxu1 %v25474_v22 }
  0x7e   :  { %23642 = vmatmul.mubr.f32.vlgmr.msra.gmra.mrb[0].mxu0 %v26552_v32 }
  0x7f   :  { %25441 = vmatpush3.bf16.msra.mxu0 %v25438_v51  ;;  %23652 = vmatprep.mubr.f32.mxu0 %v26521_v17 }
  0x80   :  { %25443 = vmatprep.subr.bf16.mxu0 %v25442_v19  ;;  %25477 = vmatpush3.bf16.msra.mxu1 %v25474_v22 }
  0x81   :  { %25479 = vmatprep.subr.bf16.mxu1 %v26585_v59 }
  0x83   :  { %25445 = vmatpush3.bf16.msra.mxu0 %v25442_v19  ;;  %23697 = vmatmul.mubr.f32.vlgmr.msra.gmra.mrb[0].mxu1 %v26616_v11 }
  0x84   :  { %25447 = vmatprep.subr.bf16.mxu0 %v26519_v16  ;;  %25481 = vmatpush3.bf16.msra.mxu1 %v26585_v59 }
  0x85   :  { %23707 = vmatprep.mubr.f32.mxu1 %v26613_v10  ;;  %25483 = vmatprep.subr.bf16.mxu1 %v26587_v61 }
  0x86   :  { %23653 = vmatmul.mubr.f32.vlgmr.msra.gmra.mrb[0].mxu0 %v26523_v18 }
  0x87   :  { %25449 = vmatpush3.bf16.msra.mxu0 %v26519_v16  ;;  %23663 = vmatprep.mubr.f32.mxu0 %v26521_v17  ;;  %v26703_v16 = vpack.c.bf16 %v1222_v29, %v1219_v23  ;;  %v26384_v23 = vmov 1966171168  }
  0x88   :  { %25451 = vmatprep.subr.bf16.mxu0 %v26527_v20  ;;  %25485 = vmatpush3.bf16.msra.mxu1 %v26587_v61  ;;  %v1742_v29 = vunpack.c.l.s4 %v26384_v23 }
  0x89   :  { %25487 = vmatprep.subr.bf16.mxu1 %v25486_v47 }
  0x8a   :  { %v1743_v30 = vunpack.c.0.s8 %v1742_v29 }
  0x8b   :  { %25453 = vmatpush3.bf16.msra.mxu0 %v26527_v20  ;;  %v25490_v20 = vpack.c.bf16 %v775_v42, %v768_v14  ;;  %23708 = vmatmul.mubr.f32.vlgmr.msra.gmra.mrb[0].mxu1 %v26625_v33  ;;  %v95_v42 = vld [vmem:[%s28700_s2] sm:$0x1] }
  0x8c   :  { %25503 = vmatprep.subr.bf16.mxu0 %v26691_v4  ;;  %25489 = vmatpush3.bf16.msra.mxu1 %v25486_v47  ;;  %v115_v50 = vsub.f32 1.0, %v95_v42 }
  0x8d   :  { %23718 = vmatprep.mubr.f32.mxu1 %v26592_v63  ;;  %25491 = vmatprep.subr.bf16.mxu1 %v25490_v20 }
  0x8e   :  { %23664 = vmatmul.mubr.f32.vlgmr.msra.gmra.mrb[0].mxu0 %v26523_v18  ;;  %v26780_v55 = vmul.f32 1e+20, %v115_v50 }
  0x8f   :  { %25505 = vmatpush3.bf16.msra.mxu0 %v26691_v4  ;;  %23740 = vmatprep.mubr.f32.mxu0 %v26575_v45  ;;  %v25514_v45 = vpack.c.bf16 %v1327_v49, %v1320_v7 }
  0x90   :  { %25507 = vmatprep.subr.bf16.mxu0 %v26703_v16  ;;  %25493 = vmatpush3.bf16.msra.mxu1 %v25490_v20 }
  0x91   :  { %25495 = vmatprep.subr.bf16.mxu1 %v26585_v59 }
  0x93   :  { %25509 = vmatpush3.bf16.msra.mxu0 %v26703_v16  ;;  %23719 = vmatmul.mubr.f32.vlgmr.msra.gmra.mrb[0].mxu1 %v26601_v6 }
  0x94   :  { %25511 = vmatprep.subr.bf16.mxu0 %v25510_v48  ;;  %25497 = vmatpush3.bf16.msra.mxu1 %v26585_v59  ;;  %v25534_v59 = vpack.c.bf16 %v1311_v60, %v1304_v58  ;;  %v26802_v58 = vsub.s32 %v1743_v30, %v26514_v1 }
  0x95   :  { %23729 = vmatprep.mubr.f32.mxu1 %v26592_v63  ;;  %25499 = vmatprep.subr.bf16.mxu1 %v26587_v61 }
  0x96   :  { %23741 = vmatmul.mubr.f32.vlgmr.msra.gmra.mrb[2].mxu0 %v26577_v46  ;;  %v25522_v46 = vpack.c.bf16 %v26682_v2, %v26680_v62  ;;  %v26807_v2 = vsub.s32 0, %v26514_v1 }
  0x97   :  { %25513 = vmatpush3.bf16.msra.mxu0 %v25510_v48  ;;  %23751 = vmatprep.mubr.f32.mxu0 %v26521_v17 }
  0x98   :  { %25515 = vmatprep.subr.bf16.mxu0 %v25514_v45  ;;  %25501 = vmatpush3.bf16.msra.mxu1 %v26587_v61  ;;  %28782 = vst [vmem:[#allocation13_spill] sm:$0xff] %v26807_v2  ;;  %v1195_v40 = vrot.slane %v26780_v55, %v26807_v2 }
  0x99   :  { %25550 = vmatprep.subr.bf16.mxu1 %v28709_v21 }
  0x9b   :  { %25517 = vmatpush3.bf16.msra.mxu0 %v25514_v45  ;;  %23730 = vmatmul.mubr.f32.vlgmr.msra.gmra.mrb[0].mxu1 %v26601_v6 }
  0x9c   :  { %25519 = vmatprep.subr.bf16.mxu0 %v25518_v8  ;;  %23802 = vmatprep.mubr.msk.f32.mxu1 %vm26382_vm1, %v28727_v26 }
  0x9e   :  { %23752 = vmatmul.mubr.f32.vlgmr.msra.gmra.mrb[2].mxu0 %v26523_v18 }
  0x9f   :  { %25521 = vmatpush3.bf16.msra.mxu0 %v25518_v8  ;;  %23762 = vmatprep.mubr.f32.mxu0 %v26537_v24  ;;  %v25538_v24 = vpack.c.bf16 %v1325_v36, %v1318_v34 }
  0xa0   :  { %25523 = vmatprep.subr.bf16.mxu0 %v25522_v46 }
  0xa3   :  { %25525 = vmatpush3.bf16.msra.mxu0 %v25522_v46 }
  0xa4   :  { %25527 = vmatprep.subr.bf16.mxu0 %v26691_v4 }
  0xa6   :  { %23763 = vmatmul.mubr.f32.vlgmr.msra.gmra.mrb[2].mxu0 %v26540_v25  ;;  %v22811_v25 = vmul.f32 -1.442695, %v26572_v41  ;;  %v96_v41 = vld [vmem:[%s28700_s2 + $0x1] sm:$0x1] }
  0xa7   :  { %25529 = vmatpush3.bf16.msra.mxu0 %v26691_v4  ;;  %23773 = vmatprep.mubr.f32.mxu0 %v26549_v31  ;;  %v116_v35 = vsub.f32 1.0, %v96_v41 }
  0xa8   :  { %25531 = vmatprep.subr.bf16.mxu0 %v26703_v16  ;;  %26176 = vpow2.f32 %v22811_v25 }
  0xa9   :  { %v26778_v54 = vmul.f32 1e+20, %v116_v35 }
  0xab   :  { %25533 = vmatpush3.bf16.msra.mxu0 %v26703_v16  ;;  %v1740_v19 = vcombine.low %v26780_v55, %v26778_v54  ;;  %v1199_v39 = vrot.slane %v26778_v54, %v26807_v2 }
  0xac   :  { %25535 = vmatprep.subr.bf16.mxu0 %v25534_v59 }
  0xae   :  { %23774 = vmatmul.mubr.f32.vlgmr.msra.gmra.mrb[2].mxu0 %v26552_v32 }
  0xaf   :  { %25537 = vmatpush3.bf16.msra.mxu0 %v25534_v59  ;;  %23784 = vmatprep.mubr.f32.mxu0 %v26521_v17 }
  0xb0   :  { %25539 = vmatprep.subr.bf16.mxu0 %v25538_v24 }
  0xb2   :  { %v26177_v31 = vpop.eup %26176 }
  0xb3   :  { %25541 = vmatpush3.bf16.msra.mxu0 %v25538_v24  ;;  %v2736_v32 = vadd.f32 1.0, %v26177_v31 }
  0xb4   :  { %25543 = vmatprep.subr.bf16.mxu0 %v26691_v4 }
  0xb5   :  { %26178 = vrcp.f32 %v2736_v32 }
  0xb6   :  { %23785 = vmatmul.mubr.f32.vlgmr.msra.gmra.mrb[2].mxu0 %v26523_v18 }
  0xb7   :  { %25545 = vmatpush3.bf16.msra.mxu0 %v26691_v4  ;;  %23795 = vmatprep.mubr.f32.mxu0 %v26521_v17  ;;  %v26385_v4 = vmov 32  }
  0xb8   :  { %25547 = vmatprep.subr.bf16.mxu0 %v26703_v16  ;;  %26158 = vset.pattern.permute.xlu0 %v26385_v4 }
  0xb9   :  { %26159 = vset.pattern.permute.xlu1 %v26385_v4 }
  0xbb   :  { %25549 = vmatpush3.bf16.msra.mxu0 %v26703_v16 }
  0xbc   :  { %25568 = vmatprep.subr.bf16.mxu0 %v28709_v21 }
  0xbe   :  { %23796 = vmatmul.mubr.f32.vlgmr.msra.gmra.mrb[2].mxu0 %v26523_v18 }
  0xbf   :  { %v26179_v61 = vpop.eup %26178  ;;  %23844 = vmatprep.mubr.msk.f32.mxu0 %vm26382_vm1, %v28727_v26 }
  0xc0   :  { %v2740_v17 = vmul.f32 0.0, %v26179_v61 }
  0xe1   :  { %v2743_v9 = vpop.permute.xlu0 %2742 }
  0xe2   :  { %v2745_v12 = vmul.f32 %v26179_v61, %v2743_v9 }
  0xe4   :  { %2747 = vrot.lane.b32.xlu0 %v2745_v12, %s26379_s9 }
  0xe8   :  { %1793 = vrot.lane.b32.xlu0 %v26761_v13, %s26380_s10 }
 0x156   :  { %v2748_v18 = vpop.permute.xlu0 %2747 }
 0x157   :  { %v26765_v14 = vadd.f32 %v2748_v18, %v2740_v17  ;;  %v1747_v18 = vrot.slane %v1740_v19, %v26802_v58 }
 0x159   :  { %26180 = vtanh.f32 %v26765_v14 }
 0x15a   :  { %v1794_v43 = vpop.permute.xlu0 %1793 }
 0x15b   :  { %v1797_v47 = vsel %vm121_vm0, %v1794_v43, 0 }
 0x15c   :  { %v1803_v20 = vand.u32 4294901760, %v1797_v47 }
 0x15e   :  { %v26824_v48 = vsub.f32 %v1797_v47, %v1803_v20 }
 0x160   :  { %v26827_v7 = vand.u32 4294901760, %v26824_v48 }
 0x161   :  { %v26774_v51 = vpop.f32.mrb[0].mxu0 }
 0x162   :  { %v26776_v53 = vpop.f32.mrb[1].mxu0  ;;  %v1887_v46 = vsub.f32 %v26824_v48, %v26827_v7 }
 0x163   :  { %v26181_v52 = vpop.eup %26180 }
 0x164   :  { %2753 = vrot.lane.b32.xlu1 %v26181_v52, %s26378_s5  ;;  %v26833_v32 = vand.u32 4294901760, %v1887_v46  ;;  %v1754_v52 = vrot.slane %v1747_v18, %v26802_v58 }
 0x166   :  { %v1757_v4 = vsel %vm1756_vm2, %v1754_v52, 0.0 }
 0x167   :  { %v1773_v43 = vrot.slane %v1757_v4, %v1772_v15 }
 0x16e   :  { %v26797_v57 = vpop.f32.mrb[0].mxu1 }
 0x16f   :  { %v26799_v22 = vpop.f32.mrb[1].mxu1 }
 0x191   :  { %v26791_v28 = vpop.f32.mrb[2].mxu0 }
 0x192   :  { %v26793_v56 = vpop.f32.mrb[3].mxu0 }
 0x193   :  { %1791 = vrot.lane.b32.xlu1 %v26793_v56, %s26380_s10 }
 0x1d6   :  { %v2754_v60 = vpop.permute.xlu1 %2753 }
 0x1d7   :  { %v26804_v62 = vmul.f32 %v26179_v61, %v2754_v60 }
 0x1d9   :  { %v2764_v3 = vrot.slane %v26804_v62, %v26802_v58 }
 0x1db   :  { %v2765_v27 = vcombine.high %v2764_v3, %v2764_v3  ;;  %v2772_v34 = vrot.slane %v2764_v3, %v26802_v58 }
 0x1dd   :  { %v2783_v36 = vrot.slane %v2772_v34, %v26807_v2  ;;  %v2779_v16 = vrot.slane %v2765_v27, %v26802_v58 }
 0x1df   :  { %2784 = vrot.lane.b32.xlu1 %v2783_v36, %s26379_s9  ;;  %v3240_v37 = vrot.slane %v2779_v16, %v26807_v2 }
 0x1e1   :  { %3241 = vrot.lane.b32.xlu0 %v3240_v37, %s26379_s9 }
 0x1e3   :  { %2259 = vrot.lane.b32.xlu1 %v26791_v28, %s26380_s10 }
 0x1e5   :  { %1206 = vbcast.lane.b32.xlu0 %v1199_v39, 264 }
 0x1e7   :  { %1202 = vbcast.lane.b32.xlu1 %v1195_v40, 264 }
 0x205   :  { %v1792_v49 = vpop.permute.xlu1 %1791 }
 0x206   :  { %v1795_v45 = vsel %vm121_vm0, %v1792_v49, 0  ;;  %v26386_v49 = vmov 64  }
 0x207   :  { %v1800_v8 = vand.u32 4294901760, %v1795_v45 }
 0x209   :  { %v25551_v59 = vpack.c.bf16 %v1803_v20, %v1800_v8  ;;  %v1878_v24 = vsub.f32 %v1795_v45, %v1800_v8  ;;  %v3246_v45 = vsel %vm121_vm0, %v26797_v57, 0 }
 0x20b   :  { %v1879_v25 = vand.u32 4294901760, %v1878_v24  ;;  %25552 = vmatpush3.bf16.xpose.msra.mxu1 %v25551_v59  ;;  %v25557_v12 = vpack.c.bf16 %v26824_v48, %v1878_v24 }
 0x20c   :  { %25553 = vmatprep.subr.bf16.mxu1 %v28709_v21 }
 0x20d   :  { %v1880_v31 = vsub.f32 %v1878_v24, %v1879_v25 }
 0x20f   :  { %v1881_v61 = vand.u32 4294901760, %v1880_v31  ;;  %v1762_v31 = vrot.slane %v1757_v4, %v26807_v2 }
 0x211   :  { %v25554_v9 = vpack.c.bf16 %v26833_v32, %v1881_v61 }
 0x212   :  { %23803 = vmatmul.mubr.f32.vlgmr.msra.gmra.mrb[2].mxu1 %v26638_v38  ;;  %v25563_v38 = vpack.c.bf16 %v26827_v7, %v1879_v25 }
 0x213   :  { %25555 = vmatpush3.bf16.xpose.msra.mxu1 %v25554_v9  ;;  %23809 = vmatprep.mubr.msk.f32.mxu1 %vm26382_vm1, %v28727_v26 }
 0x214   :  { %25556 = vmatprep.subr.bf16.mxu1 %v28709_v21 }
 0x21a   :  { %23810 = vmatmul.mubr.f32.vlgmr.msra.gmra.mrb[2].mxu1 %v26592_v63 }
 0x21b   :  { %25558 = vmatpush3.bf16.xpose.msra.mxu1 %v25557_v12  ;;  %23816 = vmatprep.mubr.msk.f32.mxu1 %vm26382_vm1, %v28727_v26 }
 0x21c   :  { %25559 = vmatprep.subr.bf16.mxu1 %v28709_v21 }
 0x222   :  { %23817 = vmatmul.mubr.f32.vlgmr.msra.gmra.mrb[2].mxu1 %v26599_v5  ;;  %v2789_v5 = vsel %vm121_vm0, %v26799_v22, 0 }
 0x223   :  { %25561 = vmatpush3.bf16.xpose.msra.mxu1 %v25551_v59  ;;  %23823 = vmatprep.mubr.msk.f32.mxu1 %vm26382_vm1, %v28727_v26  ;;  %v26860_v17 = vand.u32 4294901760, %v2789_v5 }
 0x224   :  { %25562 = vmatprep.subr.bf16.mxu1 %v28709_v21 }
 0x225   :  { %28783 = vst [vmem:[#allocation14_spill] sm:$0xff] %v26860_v17 }
 0x22a   :  { %23824 = vmatmul.mubr.f32.vlgmr.msra.gmra.mrb[2].mxu1 %v26613_v10  ;;  %v26868_v10 = vsub.f32 %v2789_v5, %v26860_v17 }
 0x22b   :  { %25564 = vmatpush3.bf16.xpose.msra.mxu1 %v25563_v38  ;;  %23830 = vmatprep.mubr.msk.f32.mxu1 %vm26382_vm1, %v28727_v26 }
 0x22c   :  { %25565 = vmatprep.subr.bf16.mxu1 %v28709_v21  ;;  %28784 = vst [vmem:[#allocation15_spill] sm:$0xff] %v26868_v10  ;;  %v26878_v50 = vand.u32 4294901760, %v26868_v10 }
 0x22e   :  { %28785 = vst [vmem:[#allocation16_spill] sm:$0xff] %v26878_v50  ;;  %v2871_v3 = vsub.f32 %v26868_v10, %v26878_v50 }
 0x230   :  { %v26905_v47 = vand.u32 4294901760, %v2871_v3 }
 0x232   :  { %23831 = vmatmul.mubr.f32.vlgmr.msra.gmra.mrb[2].mxu1 %v26592_v63  ;;  %28786 = vst [vmem:[#allocation17_spill] sm:$0xff] %v26905_v47 }
 0x233   :  { %25567 = vmatpush3.bf16.xpose.msra.mxu1 %v25551_v59  ;;  %23837 = vmatprep.mubr.msk.f32.mxu1 %vm26382_vm1, %v28727_v26  ;;  %v26928_v59 = vand.u32 4294901760, %v3246_v45 }
 0x234   :  { %23882 = vmatprep.subr.mxu1 %v28727_v26 }
 0x235   :  { %28787 = vst [vmem:[#allocation18_spill] sm:$0xff] %v26928_v59 }
 0x23a   :  { %23838 = vmatmul.mubr.f32.vlgmr.msra.gmra.mrb[2].mxu1 %v26592_v63 }
 0x23b   :  { %23883 = vmatpush3.xpose.msra.mxu1 %v26860_v17  ;;  %23884 = vmatprep.mubr.msk.f32.mxu1 %vm26382_vm1, %v28727_v26 }
 0x23c   :  { %23887 = vmatprep.subr.mxu1 %v28727_v26 }
 0x251   :  { %v2785_v41 = vpop.permute.xlu1 %2784 }
 0x252   :  { %v2786_v35 = vsel %vm121_vm0, %v2785_v41, 0 }
 0x253   :  { %v26875_v42 = vand.u32 4294901760, %v2786_v35  ;;  %v3242_v63 = vpop.permute.xlu0 %3241 }
 0x254   :  { %v3243_v15 = vsel %vm121_vm0, %v3242_v63, 0 }
 0x255   :  { %v26882_v23 = vsub.f32 %v2786_v35, %v26875_v42  ;;  %v2260_v29 = vpop.permute.xlu1 %2259  ;;  %v26924_v46 = vand.u32 4294901760, %v3243_v15 }
 0x256   :  { %v2261_v30 = vsel %vm121_vm0, %v2260_v29, 0 }
 0x257   :  { %v26886_v54 = vand.u32 4294901760, %v26882_v23  ;;  %v2264_v55 = vand.u32 4294901760, %v2261_v30  ;;  %v1207_v19 = vpop.permute.xlu0 %1206 }
 0x258   :  { %v1211_v60 = vsub.f32 %v26797_v57, %v1207_v19  ;;  %v26943_v57 = vsub.f32 %v3246_v45, %v26928_v59 }
 0x259   :  { %v26892_v27 = vpack.c.bf16 %v1803_v20, %v2264_v55  ;;  %v26894_v34 = vsub.f32 %v2261_v30, %v2264_v55  ;;  %v1203_v36 = vpop.permute.xlu1 %1202  ;;  %v2860_v16 = vsub.f32 %v26882_v23, %v26886_v54 }
 0x25a   :  { %v1210_v37 = vsub.f32 %v26799_v22, %v1203_v36  ;;  %3700 = vperm.xlu0 %26158, %v1211_v60   ;;  %28788 = vst [vmem:[#allocation19_spill] sm:$0xff] %v26943_v57 }
 0x25b   :  { %v2343_v39 = vand.u32 4294901760, %v26894_v34  ;;  %25570 = vmatpush3.bf16.xpose.msra.mxu0 %v26892_v27  ;;  %v26901_v40 = vand.u32 4294901760, %v2860_v16  ;;  %v25575_v24 = vpack.c.bf16 %v26824_v48, %v26894_v34 }
 0x25c   :  { %3697 = vperm.xlu1 %26159, %v1210_v37   ;;  %25571 = vmatprep.subr.bf16.mxu0 %v28709_v21 }
 0x25d   :  { %v2344_v20 = vsub.f32 %v26894_v34, %v2343_v39  ;;  %23885 = vmatmul.mubr.f32.vlgmr.msra.gmra.mrb[4].mxu1 %v26901_v40 }
 0x25e   :  { %23888 = vmatpush3.xpose.msra.mxu1 %v26905_v47  ;;  %23889 = vmatprep.mubr.msk.f32.mxu1 %vm26382_vm1, %v28727_v26 }
 0x25f   :  { %v2345_v22 = vand.u32 4294901760, %v2344_v20  ;;  %23892 = vmatprep.subr.mxu1 %v28727_v26  ;;  %1775 = vbcast.lane.b32.xlu0 %v1773_v43, 256 }
 0x260   :  { %26160 = vset.pattern.permute.xlu0 %v26386_v49 }
 0x261   :  { %23890 = vmatmul.mubr.f32.vlgmr.msra.gmra.mrb[6].mxu1 %v26875_v42  ;;  %v25572_v8 = vpack.c.bf16 %v26833_v32, %v2345_v22  ;;  %v26957_v32 = vand.u32 4294901760, %v26943_v57 }
 0x262   :  { %23893 = vmatpush3.xpose.msra.mxu1 %v26868_v10  ;;  %23845 = vmatmul.mubr.f32.vlgmr.msra.gmra.mrb[4].mxu0 %v26645_v44  ;;  %v26939_v44 = vsub.f32 %v3243_v15, %v26924_v46 }
 0x263   :  { %25573 = vmatpush3.bf16.xpose.msra.mxu0 %v25572_v8  ;;  %23894 = vmatprep.mubr.msk.f32.mxu1 %vm26382_vm1, %v28727_v26  ;;  %28789 = vst [vmem:[#allocation20_spill] sm:$0xff] %v26957_v32  ;;  %v3328_v61 = vsub.f32 %v26943_v57, %v26957_v32 }
 0x264   :  { %23897 = vmatprep.subr.mxu1 %v28727_v26  ;;  %23851 = vmatprep.mubr.msk.f32.mxu0 %vm26382_vm1, %v28727_v26  ;;  %v26951_v25 = vand.u32 4294901760, %v26939_v44 }
 0x265   :  { %23895 = vmatmul.mubr.f32.vlgmr.msra.gmra.mrb[8].mxu1 %v26882_v23  ;;  %25574 = vmatprep.subr.bf16.mxu0 %v28709_v21  ;;  %v26981_v12 = vand.u32 4294901760, %v3328_v61 }
 0x266   :  { %23898 = vmatpush3.xpose.msra.mxu1 %v26860_v17  ;;  %23899 = vmatprep.mubr.msk.f32.mxu1 %vm26382_vm1, %v28727_v26  ;;  %v3317_v48 = vsub.f32 %v26939_v44, %v26951_v25 }
 0x267   :  { %23902 = vmatprep.subr.mxu1 %v28727_v26  ;;  %1779 = vbcast.lane.b32.xlu0 %v1773_v43, 264  ;;  %28790 = vst [vmem:[#allocation21_spill] sm:$0xff] %v26981_v12 }
 0x268   :  { %v26978_v9 = vand.u32 4294901760, %v3317_v48 }
 0x269   :  { %23900 = vmatmul.mubr.f32.vlgmr.msra.gmra.mrb[10].mxu1 %v26886_v54 }
 0x26a   :  { %23903 = vmatpush3.xpose.msra.mxu1 %v26878_v50  ;;  %23852 = vmatmul.mubr.f32.vlgmr.msra.gmra.mrb[4].mxu0 %v26601_v6 }
 0x26b   :  { %25576 = vmatpush3.bf16.xpose.msra.mxu0 %v25575_v24  ;;  %23904 = vmatprep.mubr.msk.f32.mxu1 %vm26382_vm1, %v28727_v26 }
 0x26c   :  { %23907 = vmatprep.subr.mxu1 %v28727_v26  ;;  %23858 = vmatprep.mubr.msk.f32.mxu0 %vm26382_vm1, %v28727_v26 }
 0x26d   :  { %23905 = vmatmul.mubr.f32.vlgmr.msra.gmra.mrb[12].mxu1 %v26875_v42  ;;  %25577 = vmatprep.subr.bf16.mxu0 %v28709_v21 }
 0x26e   :  { %23908 = vmatpush3.xpose.msra.mxu1 %v26860_v17  ;;  %23909 = vmatprep.mubr.msk.f32.mxu1 %vm26382_vm1, %v28727_v26 }
 0x26f   :  { %23912 = vmatprep.subr.mxu1 %v28727_v26  ;;  %1764 = vbcast.lane.b32.xlu0 %v1762_v31, 256 }
 0x271   :  { %23910 = vmatmul.mubr.f32.vlgmr.msra.gmra.mrb[14].mxu1 %v26875_v42 }
 0x272   :  { %23913 = vmatpush3.xpose.msra.mxu1 %v26928_v59  ;;  %23859 = vmatmul.mubr.f32.vlgmr.msra.gmra.mrb[4].mxu0 %v26616_v11  ;;  %v25581_v11 = vpack.c.bf16 %v26827_v7, %v2343_v39 }
 0x273   :  { %25579 = vmatpush3.bf16.xpose.msra.mxu0 %v26892_v27  ;;  %23914 = vmatprep.mubr.msk.f32.mxu1 %vm26382_vm1, %v28727_v26 }
 0x274   :  { %23917 = vmatprep.subr.mxu1 %v28727_v26  ;;  %23865 = vmatprep.mubr.msk.f32.mxu0 %vm26382_vm1, %v28727_v26 }
 0x275   :  { %23915 = vmatmul.mubr.f32.vlgmr.msra.gmra.mrb[16].mxu1 %v26978_v9  ;;  %25580 = vmatprep.subr.bf16.mxu0 %v28709_v21 }
 0x276   :  { %23918 = vmatpush3.xpose.msra.mxu1 %v26981_v12  ;;  %23919 = vmatprep.mubr.msk.f32.mxu1 %vm26382_vm1, %v28727_v26 }
 0x277   :  { %23922 = vmatprep.subr.mxu1 %v28727_v26  ;;  %1768 = vbcast.lane.b32.xlu0 %v1762_v31, 264 }
 0x279   :  { %23920 = vmatmul.mubr.f32.vlgmr.msra.gmra.mrb[18].mxu1 %v26924_v46 }
 0x27a   :  { %23923 = vmatpush3.xpose.msra.mxu1 %v26943_v57  ;;  %23866 = vmatmul.mubr.f32.vlgmr.msra.gmra.mrb[4].mxu0 %v26625_v33 }
 0x27b   :  { %25582 = vmatpush3.bf16.xpose.msra.mxu0 %v25581_v11  ;;  %23924 = vmatprep.mubr.msk.f32.mxu1 %vm26382_vm1, %v28727_v26 }
 0x27c   :  { %23927 = vmatprep.subr.mxu1 %v28727_v26  ;;  %23872 = vmatprep.mubr.msk.f32.mxu0 %vm26382_vm1, %v28727_v26 }
 0x27d   :  { %23925 = vmatmul.mubr.f32.vlgmr.msra.gmra.mrb[20].mxu1 %v26939_v44  ;;  %25583 = vmatprep.subr.bf16.mxu0 %v28709_v21 }
 0x27e   :  { %23928 = vmatpush3.xpose.msra.mxu1 %v26928_v59  ;;  %23929 = vmatprep.mubr.msk.f32.mxu1 %vm26382_vm1, %v28727_v26 }
 0x27f   :  { %23932 = vmatprep.subr.mxu1 %v28727_v26 }
 0x281   :  { %23930 = vmatmul.mubr.f32.vlgmr.msra.gmra.mrb[22].mxu1 %v26951_v25 }
 0x282   :  { %23933 = vmatpush3.xpose.msra.mxu1 %v26957_v32  ;;  %23873 = vmatmul.mubr.f32.vlgmr.msra.gmra.mrb[4].mxu0 %v26601_v6 }
 0x283   :  { %25585 = vmatpush3.bf16.xpose.msra.mxu0 %v26892_v27  ;;  %23934 = vmatprep.mubr.msk.f32.mxu1 %vm26382_vm1, %v28727_v26 }
 0x284   :  { %23937 = vmatprep.subr.mxu1 %v28727_v26  ;;  %23879 = vmatprep.mubr.msk.f32.mxu0 %vm26382_vm1, %v28727_v26 }
 0x285   :  { %23935 = vmatmul.mubr.f32.vlgmr.msra.gmra.mrb[24].mxu1 %v26924_v46  ;;  %23942 = vmatprep.subr.mxu0 %v28727_v26 }
 0x286   :  { %23938 = vmatpush3.xpose.msra.mxu1 %v26928_v59  ;;  %23939 = vmatprep.mubr.msk.f32.mxu1 %vm26382_vm1, %v28727_v26 }
 0x287   :  { %23972 = vmatprep.subr.mxu1 %v28727_v26 }
 0x289   :  { %23940 = vmatmul.mubr.f32.vlgmr.msra.gmra.mrb[26].mxu1 %v26924_v46 }
 0x28a   :  { %23880 = vmatmul.mubr.f32.vlgmr.msra.gmra.mrb[4].mxu0 %v26601_v6  ;;  %23974 = vmatprep.mubr.msk.f32.mxu1 %vm26382_vm1, %v28727_v26 }
 0x28b   :  { %23944 = vmatprep.mubr.msk.f32.mxu0 %vm26382_vm1, %v28727_v26 }
 0x2d9   :  { %v3701_v33 = vpop.permute.xlu0 %3700 }
 0x2dd   :  { %v1776_v7 = vpop.permute.xlu0 %1775 }
 0x2de   :  { %v1787_v38 = vsub.f32 %v26791_v28, %v1776_v7 }
 0x2e0   :  { %5589 = vperm.xlu0 %26160, %v1787_v38  }
 0x2e1   :  { %v1780_v5 = vpop.permute.xlu0 %1779 }
 0x2e2   :  { %v1788_v18 = vsub.f32 %v26761_v13, %v1780_v5 }
 0x2e4   :  { %5592 = vperm.xlu0 %26160, %v1788_v18   ;;  %v27041_v18 = vand.u32 127, %v119_v0 }
 0x2e5   :  { %v1765_v41 = vpop.permute.xlu0 %1764 }
 0x2e6   :  { %v1785_v35 = vsub.f32 %v26793_v56, %v1765_v41  ;;  %28791 = vst [vmem:[#allocation22_spill] sm:$0xff] %v27041_v18 }
 0x2e8   :  { %5583 = vperm.xlu0 %26160, %v1785_v35  }
 0x30d   :  { %v2254_v6 = vpop.f32.mrb[2].mxu1 }
 0x30e   :  { %v27033_v63 = vsel %vm2722_vm3, %v2254_v6, 1.0  ;;  %v23839_v52 = vpop.f32.mrb[3].mxu1 }
 0x30f   :  { %v27036_v29 = vand.u32 4294901760, %v27033_v63  ;;  %v27045_v52 = vsub.s32 %v27041_v18, %v26514_v1 }
 0x311   :  { %23943 = vmatpush3.msra.mxu0 %v27036_v29 }
 0x312   :  { %23947 = vmatprep.subr.mxu0 %v28727_v26 }
 0x330   :  { %v2863_v30 = vpop.f32.mrb[4].mxu1 }
 0x331   :  { %v23886_v55 = vpop.f32.mrb[5].mxu1 }
 0x334   :  { %v2939_v19 = vpop.f32.mrb[6].mxu1 }
 0x335   :  { %v2940_v60 = vadd.f32 %v2939_v19, %v2863_v30  ;;  %v23891_v3 = vpop.f32.mrb[7].mxu1  ;;  %v3698_v19 = vpop.permute.xlu1 %3697 }
 0x336   :  { %v27048_v3 = vrot.slane %v3701_v33, %v27045_v52 }
 0x338   :  { %v3013_v4 = vpop.f32.mrb[8].mxu1 }
 0x339   :  { %v3014_v27 = vadd.f32 %v3013_v4, %v2940_v60  ;;  %v23896_v34 = vpop.f32.mrb[9].mxu1 }
 0x33c   :  { %v3087_v36 = vpop.f32.mrb[10].mxu1 }
 0x33d   :  { %v3088_v16 = vadd.f32 %v3087_v36, %v3014_v27  ;;  %v23901_v37 = vpop.f32.mrb[11].mxu1 }
 0x340   :  { %v3161_v39 = vpop.f32.mrb[12].mxu1 }
 0x341   :  { %v3162_v43 = vadd.f32 %v3161_v39, %v3088_v16  ;;  %v23906_v20 = vpop.f32.mrb[13].mxu1  ;;  %v27052_v16 = vrot.slane %v3698_v19, %v27045_v52 }
 0x344   :  { %v3233_v22 = vpop.f32.mrb[14].mxu1 }
 0x345   :  { %v3234_v15 = vadd.f32 %v3233_v22, %v3162_v43  ;;  %v23911_v45 = vpop.f32.mrb[15].mxu1 }
 0x347   :  { %v3712_v43 = vadd.f32 %v27052_v16, %v3234_v15  ;;  %v27064_v15 = vsub.f32 %v27033_v63, %v27036_v29 }
 0x348   :  { %v3320_v8 = vpop.f32.mrb[16].mxu1 }
 0x349   :  { %v23916_v24 = vpop.f32.mrb[17].mxu1 }
 0x34c   :  { %v3396_v31 = vpop.f32.mrb[18].mxu1 }
 0x34d   :  { %v3397_v48 = vadd.f32 %v3396_v31, %v3320_v8  ;;  %v23921_v61 = vpop.f32.mrb[19].mxu1 }
 0x350   :  { %v3470_v11 = vpop.f32.mrb[20].mxu1 }
 0x351   :  { %v3471_v7 = vadd.f32 %v3470_v11, %v3397_v48  ;;  %v23926_v38 = vpop.f32.mrb[21].mxu1 }
 0x354   :  { %v3544_v5 = vpop.f32.mrb[22].mxu1 }
 0x355   :  { %v3545_v41 = vadd.f32 %v3544_v5, %v3471_v7  ;;  %v23931_v35 = vpop.f32.mrb[23].mxu1 }
 0x356   :  { %v27073_v35 = vand.u32 4294901760, %v27064_v15 }
 0x358   :  { %v3618_v6 = vpop.f32.mrb[24].mxu1 }
 0x359   :  { %v3619_v30 = vadd.f32 %v3618_v6, %v3545_v41  ;;  %v23936_v55 = vpop.f32.mrb[25].mxu1 }
 0x35c   :  { %v3690_v60 = vpop.f32.mrb[26].mxu1 }
 0x35d   :  { %v3691_v4 = vadd.f32 %v3690_v60, %v3619_v30  ;;  %v23941_v27 = vpop.f32.mrb[27].mxu1  ;;  %v2718_v34 = vpop.f32.mrb[4].mxu0 }
 0x35e   :  { %v2724_v0 = vsel %vm2722_vm3, %v2718_v34, 1.0  ;;  %v23881_v36 = vpop.f32.mrb[5].mxu0 }
 0x35f   :  { %v3713_v37 = vadd.f32 %v27048_v3, %v3691_v4  ;;  %v27055_v39 = vand.u32 4294901760, %v2724_v0  ;;  %v3817_v4 = vsub.f32 %v27064_v15, %v27073_v35 }
 0x361   :  { %v3716_v20 = vrot.slane %v3713_v37, 7  ;;  %23973 = vmatpush3.msra.mxu1 %v27055_v39  ;;  %v27067_v7 = vsub.f32 %v2724_v0, %v27055_v39 }
 0x362   :  { %23977 = vmatprep.subr.mxu1 %v28727_v26 }
 0x363   :  { %v3718_v33 = vsel %vm3717_vm4, %v3716_v20, %v3712_v43  ;;  %v27080_v63 = vand.u32 4294901760, %v27067_v7 }
 0x364   :  { %v3721_v22 = vsel %vm3720_vm5, %v3718_v33, -inf }
 0x365   :  { %3722 = vmax.xlane.f32.xlu1 %v3721_v22  ;;  %v4266_v0 = vsub.f32 %v27067_v7, %v27080_v63  ;;  %v4640_v22 = vsel %vm121_vm0, %v26793_v56, 0 }
 0x367   :  { %v27090_v33 = vand.u32 4294901760, %v4266_v0 }
 0x3f2   :  { %v3723_v45 = vpop.xlane.xlu1 %3722 }
 0x3f3   :  { %v3725_v8 = vrot.slane %v3723_v45, 1  ;;  %v3728_v24 = vsub.f32 %v3712_v43, %v3723_v45  ;;  %v27087_v43 = vand.u32 4294901760, %v3817_v4  ;;  %v4642_v45 = vsel %vm121_vm0, %v26761_v13, 0 }
 0x3f5   :  { %v3729_v31 = vsub.f32 %v3713_v37, %v3725_v8  ;;  %v3730_v48 = vmul.f32 1.442695, %v3728_v24  ;;  %v4645_v8 = vand.u32 4294901760, %v4640_v22  ;;  %v4648_v24 = vand.u32 4294901760, %v4642_v45 }
 0x3f7   :  { %26182 = vpow2.f32 %v3730_v48  ;;  %v3732_v61 = vmul.f32 1.442695, %v3729_v31  ;;  %v4723_v31 = vsub.f32 %v4640_v22, %v4645_v8  ;;  %v27121_v48 = vsub.f32 %v4642_v45, %v4648_v24 }
 0x3f9   :  { %26184 = vpow2.f32 %v3732_v61  ;;  %v4724_v56 = vand.u32 4294901760, %v4723_v31  ;;  %v27132_v61 = vand.u32 4294901760, %v27121_v48  ;;  %v27163_v4 = vpack.c.bf16 %v27121_v48, %v4723_v31 }
 0x401   :  { %v26183_v11 = vpop.eup %26182 }
 0x402   :  { %v3735_v38 = vsel %vm1756_vm2, %v26183_v11, 0  ;;  %v4725_v11 = vsub.f32 %v4723_v31, %v4724_v56 }
 0x403   :  { %v26185_v5 = vpop.eup %26184  ;;  %v27070_v41 = vand.u32 4294901760, %v3735_v38 }
 0x404   :  { %v4184_v6 = vsel %vm1756_vm2, %v26185_v5, 0  ;;  %v4726_v5 = vand.u32 4294901760, %v4725_v11 }
 0x405   :  { %v3804_v30 = vsub.f32 %v3735_v38, %v27070_v41  ;;  %v27077_v55 = vand.u32 4294901760, %v4184_v6  ;;  %v4732_v38 = vsub.f32 %v27121_v48, %v27132_v61 }
 0x407   :  { %v3805_v19 = vand.u32 4294901760, %v3804_v30  ;;  %v4253_v60 = vsub.f32 %v4184_v6, %v27077_v55  ;;  %v4733_v6 = vand.u32 4294901760, %v4732_v38 }
 0x409   :  { %v3806_v27 = vsub.f32 %v3804_v30, %v3805_v19  ;;  %v4254_v34 = vand.u32 4294901760, %v4253_v60 }
 0x40b   :  { %v3807_v36 = vand.u32 4294901760, %v3806_v27  ;;  %v4255_v37 = vsub.f32 %v4253_v60, %v4254_v34 }
 0x40d   :  { %23945 = vmatmul.mubr.f32.vlgmr.msra.gmra.mrb[6].mxu0 %v3807_v36  ;;  %v4256_v20 = vand.u32 4294901760, %v4255_v37 }
 0x40e   :  { %23948 = vmatpush3.msra.mxu0 %v27087_v43  ;;  %23949 = vmatprep.mubr.msk.f32.mxu0 %vm26382_vm1, %v28727_v26 }
 0x40f   :  { %23975 = vmatmul.mubr.f32.vlgmr.msra.gmra.mrb[28].mxu1 %v4256_v20  ;;  %23952 = vmatprep.subr.mxu0 %v28727_v26 }
 0x410   :  { %23978 = vmatpush3.msra.mxu1 %v27090_v33  ;;  %23979 = vmatprep.mubr.msk.f32.mxu1 %vm26382_vm1, %v28727_v26 }
 0x411   :  { %23982 = vmatprep.subr.mxu1 %v28727_v26 }
 0x415   :  { %23950 = vmatmul.mubr.f32.vlgmr.msra.gmra.mrb[6].mxu0 %v27070_v41 }
 0x416   :  { %23953 = vmatpush3.msra.mxu0 %v27064_v15  ;;  %23954 = vmatprep.mubr.msk.f32.mxu0 %vm26382_vm1, %v28727_v26 }
 0x417   :  { %23980 = vmatmul.mubr.f32.vlgmr.msra.gmra.mrb[28].mxu1 %v27077_v55  ;;  %23957 = vmatprep.subr.mxu0 %v28727_v26 }
 0x418   :  { %23983 = vmatpush3.msra.mxu1 %v27067_v7  ;;  %23984 = vmatprep.mubr.msk.f32.mxu1 %vm26382_vm1, %v28727_v26 }
 0x419   :  { %23987 = vmatprep.subr.mxu1 %v28727_v26 }
 0x41d   :  { %23955 = vmatmul.mubr.f32.vlgmr.msra.gmra.mrb[6].mxu0 %v3804_v30  ;;  %v27146_v30 = vpack.c.bf16 %v4648_v24, %v4645_v8 }
 0x41e   :  { %23958 = vmatpush3.msra.mxu0 %v27036_v29  ;;  %23959 = vmatprep.mubr.msk.f32.mxu0 %vm26382_vm1, %v28727_v26 }
 0x41f   :  { %23985 = vmatmul.mubr.f32.vlgmr.msra.gmra.mrb[28].mxu1 %v4253_v60  ;;  %23962 = vmatprep.subr.mxu0 %v28727_v26  ;;  %v5103_v60 = vsel %vm121_vm0, %v26791_v28, 0 }
 0x420   :  { %23988 = vmatpush3.msra.mxu1 %v27055_v39  ;;  %23989 = vmatprep.mubr.msk.f32.mxu1 %vm26382_vm1, %v28727_v26 }
 0x421   :  { %23992 = vmatprep.subr.mxu1 %v28727_v26 }
 0x425   :  { %23960 = vmatmul.mubr.f32.vlgmr.msra.gmra.mrb[6].mxu0 %v3805_v19  ;;  %v27150_v19 = vpack.c.bf16 %v4733_v6, %v4726_v5 }
 0x426   :  { %23963 = vmatpush3.msra.mxu0 %v27073_v35  ;;  %23964 = vmatprep.mubr.msk.f32.mxu0 %vm26382_vm1, %v28727_v26 }
 0x427   :  { %23990 = vmatmul.mubr.f32.vlgmr.msra.gmra.mrb[28].mxu1 %v4254_v34  ;;  %23967 = vmatprep.subr.mxu0 %v28727_v26 }
 0x428   :  { %23993 = vmatpush3.msra.mxu1 %v27080_v63  ;;  %23994 = vmatprep.mubr.msk.f32.mxu1 %vm26382_vm1, %v28727_v26 }
 0x429   :  { %23997 = vmatprep.subr.mxu1 %v28727_v26 }
 0x42d   :  { %23965 = vmatmul.mubr.f32.vlgmr.msra.gmra.mrb[6].mxu0 %v27070_v41 }
 0x42e   :  { %23968 = vmatpush3.msra.mxu0 %v27036_v29  ;;  %23969 = vmatprep.mubr.msk.f32.mxu0 %vm26382_vm1, %v28727_v26 }
 0x42f   :  { %23995 = vmatmul.mubr.f32.vlgmr.msra.gmra.mrb[28].mxu1 %v27077_v55  ;;  %25586 = vmatprep.subr.bf16.mxu0 %v28709_v21 }
 0x430   :  { %23998 = vmatpush3.msra.mxu1 %v27055_v39  ;;  %23999 = vmatprep.mubr.msk.f32.mxu1 %vm26382_vm1, %v28727_v26 }
 0x431   :  { %25589 = vmatprep.subr.bf16.mxu1 %v28709_v21 }
 0x435   :  { %23970 = vmatmul.mubr.f32.vlgmr.msra.gmra.mrb[6].mxu0 %v27070_v41  ;;  %v5106_v41 = vand.u32 4294901760, %v5103_v60 }
 0x436   :  { %25588 = vmatpush3.bf16.xpose.msra.mxu0 %v27146_v30  ;;  %24006 = vmatprep.mubr.msk.f32.mxu0 %vm26382_vm1, %v28727_v26 }
 0x437   :  { %24000 = vmatmul.mubr.f32.vlgmr.msra.gmra.mrb[28].mxu1 %v27077_v55  ;;  %25592 = vmatprep.subr.bf16.mxu0 %v28709_v21  ;;  %v5184_v27 = vsub.f32 %v5103_v60, %v5106_v41  ;;  %v27188_v0 = vpack.c.bf16 %v4648_v24, %v5106_v41 }
 0x438   :  { %25591 = vmatpush3.bf16.xpose.msra.mxu1 %v27150_v19  ;;  %24013 = vmatprep.mubr.msk.f32.mxu1 %vm26382_vm1, %v28727_v26 }
 0x439   :  { %25595 = vmatprep.subr.bf16.mxu1 %v28709_v21  ;;  %v5185_v28 = vand.u32 4294901760, %v5184_v27 }
 0x43b   :  { %v5186_v55 = vsub.f32 %v5184_v27, %v5185_v28 }
 0x43d   :  { %24007 = vmatmul.mubr.f32.vlgmr.msra.gmra.mrb[8].mxu0 %v26901_v40  ;;  %v27176_v40 = vpack.c.bf16 %v27132_v61, %v4724_v56  ;;  %v5187_v34 = vand.u32 4294901760, %v5186_v55 }
 0x43e   :  { %25594 = vmatpush3.bf16.xpose.msra.mxu0 %v27163_v4  ;;  %24020 = vmatprep.mubr.msk.f32.mxu0 %vm26382_vm1, %v28727_v26 }
 0x43f   :  { %24014 = vmatmul.mubr.f32.vlgmr.msra.gmra.mrb[30].mxu1 %v26875_v42  ;;  %25598 = vmatprep.subr.bf16.mxu0 %v28709_v21 }
 0x440   :  { %25597 = vmatpush3.bf16.xpose.msra.mxu1 %v27146_v30  ;;  %24027 = vmatprep.mubr.msk.f32.mxu1 %vm26382_vm1, %v28727_v26 }
 0x441   :  { %25601 = vmatprep.subr.bf16.mxu1 %v28709_v21 }
 0x445   :  { %24021 = vmatmul.mubr.f32.vlgmr.msra.gmra.mrb[10].mxu0 %v26882_v23  ;;  %v27192_v23 = vpack.c.bf16 %v4733_v6, %v5187_v34 }
 0x446   :  { %25600 = vmatpush3.bf16.xpose.msra.mxu0 %v27176_v40  ;;  %24034 = vmatprep.mubr.msk.f32.mxu0 %vm26382_vm1, %v28727_v26 }
 0x447   :  { %24028 = vmatmul.mubr.f32.vlgmr.msra.gmra.mrb[32].mxu1 %v26886_v54  ;;  %25604 = vmatprep.subr.bf16.mxu0 %v28709_v21  ;;  %v27203_v54 = vpack.c.bf16 %v27121_v48, %v5184_v27 }
 0x448   :  { %25603 = vmatpush3.bf16.xpose.msra.mxu1 %v27146_v30  ;;  %24041 = vmatprep.mubr.msk.f32.mxu1 %vm26382_vm1, %v28727_v26 }
 0x449   :  { %25607 = vmatprep.subr.bf16.mxu1 %v28709_v21 }
 0x44d   :  { %24035 = vmatmul.mubr.f32.vlgmr.msra.gmra.mrb[12].mxu0 %v26875_v42 }
 0x44e   :  { %25606 = vmatpush3.bf16.xpose.msra.mxu0 %v27188_v0  ;;  %24048 = vmatprep.mubr.msk.f32.mxu0 %vm26382_vm1, %v28727_v26 }
 0x44f   :  { %24042 = vmatmul.mubr.f32.vlgmr.msra.gmra.mrb[34].mxu1 %v26875_v42  ;;  %25610 = vmatprep.subr.bf16.mxu0 %v28709_v21  ;;  %v27216_v42 = vpack.c.bf16 %v27132_v61, %v5185_v28 }
 0x450   :  { %25609 = vmatpush3.bf16.xpose.msra.mxu1 %v27192_v23  ;;  %24055 = vmatprep.mubr.msk.f32.mxu1 %vm26382_vm1, %v28727_v26 }
 0x451   :  { %25613 = vmatprep.subr.bf16.mxu1 %v28709_v21 }
 0x455   :  { %24049 = vmatmul.mubr.f32.vlgmr.msra.gmra.mrb[14].mxu0 %v26978_v9  ;;  %v27229_v9 = vand.u32 4294901760, %v26776_v53 }
 0x456   :  { %25612 = vmatpush3.bf16.xpose.msra.mxu0 %v27203_v54  ;;  %24062 = vmatprep.mubr.msk.f32.mxu0 %vm26382_vm1, %v28727_v26 }
 0x457   :  { %24056 = vmatmul.mubr.f32.vlgmr.msra.gmra.mrb[36].mxu1 %v26924_v46  ;;  %25616 = vmatprep.subr.bf16.mxu0 %v28709_v21 }
 0x458   :  { %25615 = vmatpush3.bf16.xpose.msra.mxu1 %v27188_v0  ;;  %24069 = vmatprep.mubr.msk.f32.mxu1 %vm26382_vm1, %v28727_v26 }
 0x459   :  { %25619 = vmatprep.subr.bf16.mxu1 %v28709_v21 }
 0x45d   :  { %24063 = vmatmul.mubr.f32.vlgmr.msra.gmra.mrb[16].mxu0 %v26939_v44  ;;  %v27233_v44 = vand.u32 4294901760, %v26774_v51 }
 0x45e   :  { %25618 = vmatpush3.bf16.xpose.msra.mxu0 %v27216_v42  ;;  %24076 = vmatprep.mubr.msk.f32.mxu0 %vm26382_vm1, %v28727_v26 }
 0x45f   :  { %24070 = vmatmul.mubr.f32.vlgmr.msra.gmra.mrb[38].mxu1 %v26951_v25  ;;  %24086 = vmatprep.subr.mxu0 %v28727_v26  ;;  %v28705_v25 = vmov 9  }
 0x460   :  { %25621 = vmatpush3.bf16.xpose.msra.mxu1 %v27188_v0  ;;  %24083 = vmatprep.mubr.msk.f32.mxu1 %vm26382_vm1, %v28727_v26 }
 0x461   :  { %24116 = vmatprep.subr.mxu1 %v28727_v26  ;;  %26161 = vset.pattern.permute.xlu1 %v28705_v25 }
 0x462   :  { %26162 = vset.pattern.permute.xlu0 %v28705_v25 }
 0x465   :  { %24077 = vmatmul.mubr.f32.vlgmr.msra.gmra.mrb[18].mxu0 %v26924_v46 }
 0x466   :  { %24087 = vmatpush3.msra.mxu0 %v27229_v9  ;;  %24088 = vmatprep.mubr.msk.f32.mxu0 %vm26382_vm1, %v28727_v26 }
 0x467   :  { %24084 = vmatmul.mubr.f32.vlgmr.msra.gmra.mrb[40].mxu1 %v26924_v46  ;;  %24091 = vmatprep.subr.mxu0 %v28727_v26 }
 0x468   :  { %24117 = vmatpush3.msra.mxu1 %v27233_v44  ;;  %24118 = vmatprep.mubr.msk.f32.mxu1 %vm26382_vm1, %v28727_v26 }
 0x469   :  { %24121 = vmatprep.subr.mxu1 %v28727_v26 }
 0x508   :  { %v27246_v36 = vpop.f32.mrb[6].mxu0 }
 0x509   :  { %26186 = vrcp.f32 %v27246_v36  ;;  %v23971_v37 = vpop.f32.mrb[7].mxu0 }
 0x50a   :  { %v27249_v46 = vpop.f32.mrb[28].mxu1 }
 0x50b   :  { %26188 = vrcp.f32 %v27249_v46  ;;  %v24001_v20 = vpop.f32.mrb[29].mxu1 }
 0x50c   :  { %v1769_v20 = vpop.permute.xlu0 %1768 }
 0x510   :  { %v4717_v22 = vpop.f32.mrb[8].mxu0 }
 0x511   :  { %v24008_v45 = vpop.f32.mrb[9].mxu0 }
 0x512   :  { %v4798_v8 = vpop.f32.mrb[30].mxu1 }
 0x513   :  { %v26187_v24 = vpop.eup %26186  ;;  %v4799_v31 = vadd.f32 %v4798_v8, %v4717_v22  ;;  %v24015_v48 = vpop.f32.mrb[31].mxu1  ;;  %v1786_v22 = vsub.f32 %v26761_v13, %v1769_v20 }
 0x514   :  { %v4634_v56 = vmul.f32 %v26187_v24, %v27246_v36 }
 0x515   :  { %v26189_v61 = vpop.eup %26188 }
 0x516   :  { %v4636_v11 = vsub.f32 2.0, %v4634_v56  ;;  %v4635_v38 = vmul.f32 %v26189_v61, %v27249_v46 }
 0x518   :  { %v4637_v5 = vsub.f32 2.0, %v4635_v38  ;;  %v4874_v6 = vpop.f32.mrb[10].mxu0  ;;  %v4638_v60 = vmul.f32 %v26187_v24, %v4636_v11  ;;  %v28707_v38 = vmov 8  }
 0x519   :  { %v4875_v41 = vadd.f32 %v4874_v6, %v4799_v31  ;;  %v24022_v27 = vpop.f32.mrb[11].mxu0 }
 0x51a   :  { %v4949_v28 = vpop.f32.mrb[32].mxu1  ;;  %5566 = vperm.xlu1 %26161, %v4638_v60   ;;  %v4639_v55 = vmul.f32 %v26189_v61, %v4637_v5 }
 0x51b   :  { %v4950_v34 = vadd.f32 %v4949_v28, %v4875_v41  ;;  %v24029_v37 = vpop.f32.mrb[33].mxu1 }
 0x51c   :  { %5571 = vperm.xlu0 %26162, %v4639_v55  }
 0x51e   :  { %26165 = vset.pattern.permute.xlu1 %v28707_v38 }
 0x520   :  { %v5026_v45 = vpop.f32.mrb[12].mxu0  ;;  %26163 = vset.pattern.permute.xlu0 %v26386_v49 }
 0x521   :  { %v5027_v8 = vadd.f32 %v5026_v45, %v4950_v34  ;;  %v24036_v48 = vpop.f32.mrb[13].mxu0  ;;  %5586 = vperm.xlu0 %26163, %v1786_v22  }
 0x522   :  { %v5099_v56 = vpop.f32.mrb[34].mxu1  ;;  %v5590_v48 = vpop.permute.xlu0 %5589 }
 0x523   :  { %v5100_v24 = vadd.f32 %v5099_v56, %v5027_v8  ;;  %v24043_v31 = vpop.f32.mrb[35].mxu1 }
 0x524   :  { %v5598_v31 = vadd.s32 4294967288, %v27041_v18 }
 0x525   :  { %26164 = vset.pattern.permute.xlu0 %v28707_v38 }
 0x526   :  { %v5593_v56 = vpop.permute.xlu0 %5592 }
 0x528   :  { %v5178_v61 = vpop.f32.mrb[14].mxu0 }
 0x529   :  { %v24050_v11 = vpop.f32.mrb[15].mxu0 }
 0x52a   :  { %v5259_v5 = vpop.f32.mrb[36].mxu1  ;;  %v5601_v11 = vsub.s32 %v5598_v31, %v26514_v1 }
 0x52b   :  { %v5260_v6 = vadd.f32 %v5259_v5, %v5178_v61  ;;  %v24057_v60 = vpop.f32.mrb[37].mxu1  ;;  %v5584_v61 = vpop.permute.xlu0 %5583 }
 0x52c   :  { %v5612_v60 = vrot.slane %v5593_v56, %v5601_v11  ;;  %v5597_v1 = vrot.slane %v5584_v61, %v27045_v52 }
 0x530   :  { %v5335_v13 = vpop.f32.mrb[16].mxu0 }
 0x531   :  { %v5336_v41 = vadd.f32 %v5335_v13, %v5260_v6  ;;  %v24064_v27 = vpop.f32.mrb[17].mxu0 }
 0x532   :  { %v5410_v49 = vpop.f32.mrb[38].mxu1 }
 0x533   :  { %v5411_v28 = vadd.f32 %v5410_v49, %v5336_v41  ;;  %v24071_v55 = vpop.f32.mrb[39].mxu1  ;;  %v5608_v49 = vrot.slane %v5590_v48, %v27045_v52 }
 0x535   :  { %v27263_v55 = vsel %vm5603_vm6, %v5612_v60, %v5608_v49 }
 0x538   :  { %v5487_v34 = vpop.f32.mrb[18].mxu0 }
 0x539   :  { %v5488_v37 = vadd.f32 %v5487_v34, %v5411_v28  ;;  %v24078_v20 = vpop.f32.mrb[19].mxu0 }
 0x53a   :  { %v5560_v22 = vpop.f32.mrb[40].mxu1 }
 0x53b   :  { %v5561_v45 = vadd.f32 %v5560_v22, %v5488_v37  ;;  %v24085_v8 = vpop.f32.mrb[41].mxu1 }
 0x599   :  { %v5567_v5 = vpop.permute.xlu1 %5566 }
 0x59a   :  { %v5574_v6 = vmul.f32 %v5567_v5, %v27246_v36 }
 0x59b   :  { %v5572_v13 = vpop.permute.xlu0 %5571 }
 0x59c   :  { %v5576_v41 = vadd.f32 %v5574_v6, %v5100_v24  ;;  %v5575_v27 = vmul.f32 %v5572_v13, %v27249_v46 }
 0x59e   :  { %v5577_v28 = vadd.f32 %v5575_v27, %v5561_v45 }
 0x5a0   :  { %v5587_v34 = vpop.permute.xlu0 %5586  ;;  %v5617_v37 = vadd.f32 %v27263_v55, %v5577_v28 }
 0x5a1   :  { %v5602_v20 = vrot.slane %v5587_v34, %v5601_v11 }
 0x5a2   :  { %5625 = vperm.xlu0 %26164, %v5617_v37  }
 0x5a3   :  { %v27267_v22 = vsel %vm5603_vm6, %v5602_v20, %v5597_v1 }
 0x5a4   :  { %v5616_v36 = vadd.f32 %v27267_v22, %v5576_v41 }
 0x5a6   :  { %5620 = vperm.xlu1 %26165, %v5616_v36   ;;  %26166 = vset.pattern.permute.xlu0 %v28705_v25 }
 0x621   :  { %v5626_v46 = vpop.permute.xlu0 %5625 }
 0x622   :  { %v5629_v24 = vmul.f32 0.0, %v5626_v46 }
 0x624   :  { %v27271_v8 = vadd.f32 %v5629_v24, %v5617_v37 }
 0x625   :  { %v5621_v45 = vpop.permute.xlu1 %5620 }
 0x626   :  { %28792 = vst [vmem:[#allocation23_spill] sm:$0xff] %v27271_v8  ;;  %v5628_v48 = vmul.f32 0.0, %v5621_v45  ;;  %v5634_v31 = vrot.slane %v27271_v8, 7 }
 0x628   :  { %v27273_v56 = vadd.f32 %v5628_v48, %v5616_v36 }
 0x62a   :  { %28793 = vst [vmem:[#allocation24_spill] sm:$0xff] %v27273_v56  ;;  %v5635_v52 = vsel %vm3717_vm4, %v5634_v31, %v27273_v56 }
 0x62b   :  { %v5637_v11 = vsel %vm3720_vm5, %v5635_v52, -inf }
 0x62c   :  { %5638 = vmax.xlane.f32.xlu0 %v5637_v11  ;;  %v27295_v11 = vsub.f32 %v26776_v53, %v27229_v9 }
 0x62e   :  { %28794 = vst [vmem:[#allocation25_spill] sm:$0xff] %v27295_v11 }
 0x6b9   :  { %v5639_v61 = vpop.xlane.xlu0 %5638 }
 0x6ba   :  { %v5641_v5 = vrot.slane %v5639_v61, 1  ;;  %vm5644_vm7 = vcmp.eq.f32.partialorder %v27273_v56, %v5639_v61 }
 0x6bb   :  { %v5646_v13 = vsel %vm5644_vm7, %v27041_v18, 8 }
 0x6bc   :  { %vm5645_vm8 = vcmp.eq.f32.partialorder %v27271_v8, %v5641_v5  ;;  %v27300_v5 = vsub.f32 %v26774_v51, %v27233_v44 }
 0x6bd   :  { %v5647_v6 = vsel %vm5645_vm8, %v27041_v18, 8 }
 0x6be   :  { %v5648_v60 = vrot.slane %v5647_v6, 7  ;;  %28795 = vst [vmem:[#allocation26_spill] sm:$0xff] %v27300_v5 }
 0x6c0   :  { %v5649_v41 = vsel %vm3717_vm4, %v5648_v60, %v5646_v13 }
 0x6c1   :  { %v5650_v27 = vsel %vm3720_vm5, %v5649_v41, 2147483647  ;;  %v27307_v41 = vand.u32 4294901760, %v27295_v11 }
 0x6c2   :  { %v5652_v49 = vshra.s32 %v5650_v27, 16  ;;  %v5651_v34 = vand.u32 65535, %v5650_v27 }
 0x6c3   :  { %28796 = vst [vmem:[#allocation27_spill] sm:$0xff] %v27307_v41 }
 0x6c4   :  { %v5654_v28 = vcvt.s32.f32 %v5652_v49  ;;  %v5653_v1 = vcvt.s32.f32 %v5651_v34 }
 0x6c6   :  { %5655 = vmin.xlane.f32.xlu1 %v5654_v28 }
 0x753   :  { %v5656_v37 = vpop.xlane.xlu1 %5655 }
 0x754   :  { %vm5657_vm9 = vcmp.eq.f32.partialorder %v5654_v28, %v5656_v37  ;;  %v5662_v36 = vcvt.f32.s32 %v5656_v37  ;;  %v27314_v28 = vand.u32 4294901760, %v27300_v5  ;;  %v5774_v37 = vsub.f32 %v27295_v11, %v27307_v41 }
 0x755   :  { %v5658_v20 = vsel %vm5657_vm9, %v5653_v1, inf }
 0x756   :  { %5659 = vmin.xlane.f32.xlu0 %v5658_v20  ;;  %v5663_v24 = vshll.u32 %v5662_v36, 16  ;;  %28797 = vst [vmem:[#allocation28_spill] sm:$0xff] %v27314_v28  ;;  %v6222_v36 = vsub.f32 %v27300_v5, %v27314_v28 }
 0x76c   :  { %6588 = vrot.lane.b32.xlu0 %v26804_v62, %s26379_s9 }
 0x7e3   :  { %v5660_v46 = vpop.xlane.xlu0 %5659 }
 0x7e4   :  { %v5661_v45 = vcvt.f32.s32 %v5660_v46 }
 0x7e6   :  { %v5664_v48 = vadd.s32 %v5663_v24, %v5661_v45  ;;  %v27321_v45 = vand.u32 4294901760, %v5774_v37 }
 0x7e8   :  { %vm5665_vm10 = vcmp.eq.s32.totalorder %v27041_v18, %v5664_v48  ;;  %28798 = vst [vmem:[#allocation29_spill] sm:$0xff] %v27321_v45 }
 0x7e9   :  { %v27289_v31 = vsel %vm5665_vm10, 1.0, %v28727_v26 }
 0x7ea   :  { %v5676_v52 = vrot.slane %v27289_v31, %v26802_v58 }
 0x7ec   :  { %v5677_v61 = vcombine.high %v5676_v52, %v5676_v52  ;;  %v5684_v62 = vrot.slane %v5676_v52, %v26802_v58  ;;  %v27324_v52 = vand.u32 4294901760, %v6222_v36 }
 0x7ee   :  { %v5691_v6 = vrot.slane %v5677_v61, %v26802_v58  ;;  %v5692_v60 = vsel %vm1756_vm2, %v5684_v62, 0  ;;  %28799 = vst [vmem:[#allocation30_spill] sm:$0xff] %v27324_v52  ;;  %v101_v61 = vld [vmem:[#allocation6 + $0x20] sm:$0xff]  ;;  %v102_v62 = vld [vmem:[#allocation6 + $0x28] sm:$0xff] }
 0x7ef   :  { %v27304_v13 = vand.u32 4294901760, %v5692_v60 }
 0x7f0   :  { %v6140_v27 = vsel %vm1756_vm2, %v5691_v6, 0  ;;  %v6598_v6 = vand.u32 4294901760, %v101_v61 }
 0x7f1   :  { %v5761_v53 = vsub.f32 %v5692_v60, %v27304_v13  ;;  %v27311_v49 = vand.u32 4294901760, %v6140_v27  ;;  %v6601_v60 = vand.u32 4294901760, %v102_v62 }
 0x7f2   :  { %v27351_v37 = vsub.f32 %v101_v61, %v6598_v6 }
 0x7f3   :  { %v5762_v51 = vand.u32 4294901760, %v5761_v53  ;;  %v6209_v34 = vsub.f32 %v6140_v27, %v27311_v49  ;;  %v103_v27 = vld [vmem:[#allocation6 + $0x30] sm:$0xff] }
 0x7f4   :  { %v6604_v36 = vand.u32 4294901760, %v103_v27 }
 0x7f5   :  { %v5763_v1 = vsub.f32 %v5761_v53, %v5762_v51  ;;  %v6210_v20 = vand.u32 4294901760, %v6209_v34 }
 0x7f7   :  { %v5764_v46 = vand.u32 4294901760, %v5763_v1  ;;  %v6211_v24 = vsub.f32 %v6209_v34, %v6210_v20  ;;  %v27353_v1 = vsub.f32 %v102_v62, %v6601_v60 }
 0x7f9   :  { %24089 = vmatmul.mubr.f32.vlgmr.msra.gmra.mrb[20].mxu0 %v5764_v46  ;;  %v6212_v48 = vand.u32 4294901760, %v6211_v24  ;;  %v6679_v24 = vand.u32 4294901760, %v27351_v37  ;;  %v6686_v61 = vand.u32 4294901760, %v27353_v1 }
 0x7fa   :  { %24092 = vmatpush3.msra.mxu0 %v27321_v45  ;;  %24093 = vmatprep.mubr.msk.f32.mxu0 %vm26382_vm1, %v28727_v26 }
 0x7fb   :  { %24119 = vmatmul.mubr.f32.vlgmr.msra.gmra.mrb[42].mxu1 %v6212_v48  ;;  %24096 = vmatprep.subr.mxu0 %v28727_v26  ;;  %v6687_v38 = vsub.f32 %v27353_v1, %v6686_v61 }
 0x7fc   :  { %24122 = vmatpush3.msra.mxu1 %v27324_v52  ;;  %24123 = vmatprep.mubr.msk.f32.mxu1 %vm26382_vm1, %v28727_v26 }
 0x7fd   :  { %24126 = vmatprep.subr.mxu1 %v28727_v26  ;;  %v6688_v56 = vand.u32 4294901760, %v6687_v38 }
 0x801   :  { %24094 = vmatmul.mubr.f32.vlgmr.msra.gmra.mrb[20].mxu0 %v27304_v13 }
 0x802   :  { %24097 = vmatpush3.msra.mxu0 %v27295_v11  ;;  %24098 = vmatprep.mubr.msk.f32.mxu0 %vm26382_vm1, %v28727_v26 }
 0x803   :  { %24124 = vmatmul.mubr.f32.vlgmr.msra.gmra.mrb[42].mxu1 %v27311_v49  ;;  %24101 = vmatprep.subr.mxu0 %v28727_v26 }
 0x804   :  { %24127 = vmatpush3.msra.mxu1 %v27300_v5  ;;  %24128 = vmatprep.mubr.msk.f32.mxu1 %vm26382_vm1, %v28727_v26  ;;  %v27381_v5 = vpack.c.bf16 %v6601_v60, %v6598_v6 }
 0x805   :  { %24131 = vmatprep.subr.mxu1 %v28727_v26 }
 0x806   :  { %28801 = vst [vmem:[#allocation31_spill] sm:$0xff] %v27381_v5 }
 0x809   :  { %24099 = vmatmul.mubr.f32.vlgmr.msra.gmra.mrb[20].mxu0 %v5761_v53  ;;  %v104_v53 = vld [vmem:[#allocation6 + $0x38] sm:$0xff] }
 0x80a   :  { %24102 = vmatpush3.msra.mxu0 %v27229_v9  ;;  %24103 = vmatprep.mubr.msk.f32.mxu0 %vm26382_vm1, %v28727_v26  ;;  %v6607_v46 = vand.u32 4294901760, %v104_v53 }
 0x80b   :  { %24129 = vmatmul.mubr.f32.vlgmr.msra.gmra.mrb[42].mxu1 %v6209_v34  ;;  %24106 = vmatprep.subr.mxu0 %v28727_v26  ;;  %v6589_v34 = vpop.permute.xlu0 %6588 }
 0x80c   :  { %24132 = vmatpush3.msra.mxu1 %v27233_v44  ;;  %24133 = vmatprep.mubr.msk.f32.mxu1 %vm26382_vm1, %v28727_v26  ;;  %v6595_v48 = vsel %vm121_vm0, %v6589_v34, 0  ;;  %v6699_v62 = vsub.f32 %v104_v53, %v6607_v46  ;;  %v28800_v53 = vmov 0.0|0.0   ;;  %v27387_v18 = vpack.c.bf16 %v6607_v46, %v6604_v36 }
 0x80d   :  { %24136 = vmatprep.subr.mxu1 %v28727_v26  ;;  %v27366_v25 = vand.u32 4294901760, %v6595_v48 }
 0x80e   :  { %v6700_v8 = vand.u32 4294901760, %v6699_v62  ;;  %28803 = vst [vmem:[#allocation33_spill] sm:$0xff] %v27387_v18 }
 0x811   :  { %24104 = vmatmul.mubr.f32.vlgmr.msra.gmra.mrb[20].mxu0 %v5762_v51  ;;  %v6692_v51 = vsub.f32 %v103_v27, %v6604_v36  ;;  %v6667_v27 = vsub.f32 %v6595_v48, %v27366_v25 }
 0x812   :  { %24107 = vmatpush3.msra.mxu0 %v27307_v41  ;;  %24108 = vmatprep.mubr.msk.f32.mxu0 %vm26382_vm1, %v28727_v26  ;;  %v6701_v41 = vsub.f32 %v6699_v62, %v6700_v8 }
 0x813   :  { %24134 = vmatmul.mubr.f32.vlgmr.msra.gmra.mrb[42].mxu1 %v6210_v20  ;;  %24111 = vmatprep.subr.mxu0 %v28727_v26  ;;  %v6680_v20 = vsub.f32 %v27351_v37, %v6679_v24  ;;  %v6693_v21 = vand.u32 4294901760, %v6692_v51  ;;  %v6668_v11 = vand.u32 4294901760, %v6667_v27 }
 0x814   :  { %24137 = vmatpush3.msra.mxu1 %v27314_v28  ;;  %24138 = vmatprep.mubr.msk.f32.mxu1 %vm26382_vm1, %v28727_v26  ;;  %v6702_v45 = vand.u32 4294901760, %v6701_v41 }
 0x815   :  { %24141 = vmatprep.subr.mxu1 %v28727_v26  ;;  %v6681_v34 = vand.u32 4294901760, %v6680_v20  ;;  %v6694_v28 = vsub.f32 %v6692_v51, %v6693_v21  ;;  %v6669_v38 = vsub.f32 %v6667_v27, %v6668_v11 }
 0x817   :  { %v27383_v52 = vpack.c.bf16 %v6688_v56, %v6681_v34  ;;  %v6695_v48 = vand.u32 4294901760, %v6694_v28  ;;  %v6670_v41 = vand.u32 4294901760, %v6669_v38  ;;  %v27419_v28 = vpack.c.bf16 %v6686_v61, %v6679_v24 }
 0x819   :  { %24109 = vmatmul.mubr.f32.vlgmr.msra.gmra.mrb[20].mxu0 %v27304_v13  ;;  %28802 = vst [vmem:[#allocation32_spill] sm:$0xff] %v27383_v52  ;;  %v27394_v56 = vpack.c.bf16 %v6702_v45, %v6695_v48  ;;  %28807 = vst [vmem:[#allocation37_spill] sm:$0xff] %v27419_v28  ;;  %v27425_v45 = vpack.c.bf16 %v6700_v8, %v6693_v21 }
 0x81a   :  { %24112 = vmatpush3.msra.mxu0 %v27229_v9  ;;  %24113 = vmatprep.mubr.msk.f32.mxu0 %vm26382_vm1, %v28727_v26 }
 0x81b   :  { %24139 = vmatmul.mubr.f32.vlgmr.msra.gmra.mrb[42].mxu1 %v27311_v49  ;;  %25622 = vmatprep.subr.bf16.mxu0 %v28800_v53  ;;  %28804 = vst [vmem:[#allocation34_spill] sm:$0xff] %v27394_v56  ;;  %28808 = vst [vmem:[#allocation38_spill] sm:$0xff] %v27425_v45 }
 0x81c   :  { %24142 = vmatpush3.msra.mxu1 %v27233_v44  ;;  %24143 = vmatprep.mubr.msk.f32.mxu1 %vm26382_vm1, %v28727_v26 }
 0x81d   :  { %25628 = vmatprep.subr.bf16.mxu1 %v28800_v53 }
 0x821   :  { %24114 = vmatmul.mubr.f32.vlgmr.msra.gmra.mrb[20].mxu0 %v27304_v13  ;;  %v27402_v13 = vpack.c.bf16 %v27353_v1, %v27351_v37 }
 0x822   :  { %25624 = vmatpush3.bf16.msra.mxu0 %v27381_v5  ;;  %24154 = vmatprep.mubr.msk.f32.mxu0 %vm26382_vm1, %v28727_v26 }
 0x823   :  { %24144 = vmatmul.mubr.f32.vlgmr.msra.gmra.mrb[42].mxu1 %v27311_v49  ;;  %25625 = vmatprep.subr.bf16.mxu0 %v28800_v53  ;;  %28805 = vst [vmem:[#allocation35_spill] sm:$0xff] %v27402_v13  ;;  %v27408_v49 = vpack.c.bf16 %v6699_v62, %v6692_v51 }
 0x824   :  { %25630 = vmatpush3.bf16.msra.mxu1 %v27383_v52  ;;  %24165 = vmatprep.mubr.msk.f32.mxu1 %vm26382_vm1, %v28727_v26 }
 0x825   :  { %25631 = vmatprep.subr.bf16.mxu1 %v28800_v53  ;;  %28806 = vst [vmem:[#allocation36_spill] sm:$0xff] %v27408_v49 }
 0x826   :  { %25627 = vmatpush3.bf16.msra.mxu0 %v27387_v18 }
 0x827   :  { %25634 = vmatprep.subr.bf16.mxu0 %v28800_v53 }
 0x828   :  { %25633 = vmatpush3.bf16.msra.mxu1 %v27394_v56 }
 0x829   :  { %24155 = vmatmul.mubr.f32.vlgmr.msra.gmra.mrb[22].mxu0 %v6670_v41  ;;  %25640 = vmatprep.subr.bf16.mxu1 %v28800_v53 }
 0x82a   :  { %25636 = vmatpush3.bf16.msra.mxu0 %v27402_v13  ;;  %24176 = vmatprep.mubr.msk.f32.mxu0 %vm26382_vm1, %v28727_v26 }
 0x82b   :  { %24166 = vmatmul.mubr.f32.vlgmr.msra.gmra.mrb[44].mxu1 %v27366_v25  ;;  %25637 = vmatprep.subr.bf16.mxu0 %v28800_v53 }
 0x82c   :  { %25642 = vmatpush3.bf16.msra.mxu1 %v27381_v5  ;;  %24187 = vmatprep.mubr.msk.f32.mxu1 %vm26382_vm1, %v28727_v26 }
 0x82d   :  { %25643 = vmatprep.subr.bf16.mxu1 %v28800_v53 }
 0x82e   :  { %25639 = vmatpush3.bf16.msra.mxu0 %v27408_v49 }
 0x82f   :  { %25646 = vmatprep.subr.bf16.mxu0 %v28800_v53 }
 0x830   :  { %25645 = vmatpush3.bf16.msra.mxu1 %v27387_v18 }
 0x831   :  { %24177 = vmatmul.mubr.f32.vlgmr.msra.gmra.mrb[24].mxu0 %v6667_v27  ;;  %25652 = vmatprep.subr.bf16.mxu1 %v28800_v53 }
 0x832   :  { %25648 = vmatpush3.bf16.msra.mxu0 %v27419_v28  ;;  %24198 = vmatprep.mubr.msk.f32.mxu0 %vm26382_vm1, %v28727_v26 }
 0x833   :  { %24188 = vmatmul.mubr.f32.vlgmr.msra.gmra.mrb[46].mxu1 %v6668_v11  ;;  %25649 = vmatprep.subr.bf16.mxu0 %v28800_v53 }
 0x834   :  { %25654 = vmatpush3.bf16.msra.mxu1 %v27381_v5  ;;  %24209 = vmatprep.mubr.msk.f32.mxu1 %vm26382_vm1, %v28727_v26 }
 0x835   :  { %25655 = vmatprep.subr.bf16.mxu1 %v28800_v53 }
 0x836   :  { %25651 = vmatpush3.bf16.msra.mxu0 %v27425_v45 }
 0x837   :  { %24212 = vmatprep.subr.mxu0 %v28727_v26 }
 0x838   :  { %25657 = vmatpush3.bf16.msra.mxu1 %v27387_v18 }
 0x839   :  { %24199 = vmatmul.mubr.f32.vlgmr.msra.gmra.mrb[26].mxu0 %v27366_v25  ;;  %24217 = vmatprep.subr.mxu1 %v28727_v26 }
 0x83a   :  { %24214 = vmatprep.mubr.msk.f32.mxu0 %vm26382_vm1, %v28727_v26 }
 0x83b   :  { %24210 = vmatmul.mubr.f32.vlgmr.msra.gmra.mrb[48].mxu1 %v27366_v25 }
 0x83c   :  { %24219 = vmatprep.mubr.msk.f32.mxu1 %vm26382_vm1, %v28727_v26 }
 0x83f   :  { %24213 = vmatpush3.xpose.msra.mxu0 %v26860_v17 }
 0x840   :  { %24222 = vmatprep.subr.mxu0 %v28727_v26 }
 0x841   :  { %24218 = vmatpush3.xpose.msra.mxu1 %v26905_v47 }
 0x842   :  { %24227 = vmatprep.subr.mxu1 %v28727_v26  ;;  %v26254_v26 = vld [vmem:[#allocation6 + $0x40] sm:$0x3] }
 0x8f4   :  { %v6136_v21 = vpop.f32.mrb[20].mxu0 }
 0x8f5   :  { %v24115_v8 = vpop.f32.mrb[21].mxu0 }
 0x8f6   :  { %v6584_v11 = vpop.f32.mrb[42].mxu1 }
 0x8f7   :  { %v6592_v6 = vrot.slane %v6584_v11, 7  ;;  %v24145_v60 = vpop.f32.mrb[43].mxu1  ;;  %v27450_v11 = vrot.slane %v26254_v26, %v26807_v2 }
 0x8f9   :  { %v6593_v37 = vsel %vm3717_vm4, %v6592_v6, %v6136_v21  ;;  %28809 = vst [vmem:[#allocation39_spill] sm:$0xff] %v27450_v11 }
 0x8fc   :  { %v6672_v1 = vpop.f32.mrb[22].mxu0 }
 0x8fd   :  { %v6673_v25 = vadd.f32 %v6672_v1, %v6593_v37  ;;  %v24156_v36 = vpop.f32.mrb[23].mxu0 }
 0x8fe   :  { %v6763_v46 = vpop.f32.mrb[44].mxu1 }
 0x8ff   :  { %v6764_v24 = vadd.f32 %v6763_v46, %v6673_v25  ;;  %v24167_v61 = vpop.f32.mrb[45].mxu1 }
 0x904   :  { %v6843_v51 = vpop.f32.mrb[24].mxu0 }
 0x905   :  { %v6844_v62 = vadd.f32 %v6843_v51, %v6764_v24  ;;  %v24178_v20 = vpop.f32.mrb[25].mxu0 }
 0x906   :  { %v6920_v27 = vpop.f32.mrb[46].mxu1 }
 0x907   :  { %v6921_v34 = vadd.f32 %v6920_v27, %v6844_v62  ;;  %v24189_v48 = vpop.f32.mrb[47].mxu1 }
 0x90c   :  { %v7003_v38 = vpop.f32.mrb[26].mxu0 }
 0x90d   :  { %v7004_v41 = vadd.f32 %v7003_v38, %v6921_v34  ;;  %v24200_v8 = vpop.f32.mrb[27].mxu0 }
 0x90e   :  { %v7078_v21 = vpop.f32.mrb[48].mxu1 }
 0x90f   :  { %v7079_v6 = vadd.f32 %v7078_v21, %v7004_v41  ;;  %v24211_v60 = vpop.f32.mrb[49].mxu1 }
 0x911   :  { %v7086_v37 = vadd.f32 %v27450_v11, %v7079_v6 }
 0x913   :  { %26190 = vtanh.f32 %v7086_v37  ;;  %v22813_v25 = vmul.f32 -1.442695, %v7086_v37 }
 0x915   :  { %26192 = vpow2.f32 %v22813_v25 }
 0x91d   :  { %v26191_v1 = vpop.eup %26190 }
 0x91e   :  { %7096 = vrot.lane.b32.xlu1 %v26191_v1, %s26378_s5 }
 0x91f   :  { %v26193_v36 = vpop.eup %26192 }
 0x920   :  { %v7090_v46 = vadd.f32 1.0, %v26193_v36 }
 0x922   :  { %26194 = vrcp.f32 %v7090_v46 }
 0x92c   :  { %v26195_v24 = vpop.eup %26194 }
 0x92d   :  { %v7094_v26 = vmul.f32 %v26195_v24, %v26765_v14 }
 0x990   :  { %v7097_v61 = vpop.permute.xlu1 %7096 }
 0x991   :  { %v7099_v51 = vmul.f32 %v26195_v24, %v7097_v61 }
 0x993   :  { %7101 = vrot.lane.b32.xlu1 %v7099_v51, %s26379_s9 }
 0xa05   :  { %v7102_v62 = vpop.permute.xlu1 %7101 }
 0xa06   :  { %v27456_v20 = vadd.f32 %v7102_v62, %v7094_v26 }
 0xa08   :  { %28810 = vst [vmem:[#allocation40_spill] sm:$0xff] %v27456_v20  ;;  %26196 = vtanh.f32 %v27456_v20 }
 0xa12   :  { %v26197_v27 = vpop.eup %26196 }
 0xa13   :  { %7107 = vrot.lane.b32.xlu0 %v26197_v27, %s26378_s5 }
 0xa85   :  { %v7108_v34 = vpop.permute.xlu0 %7107 }
 0xa86   :  { %v27460_v48 = vmul.f32 %v26195_v24, %v7108_v34  ;;  %v28811_v24 = vmov 0.0  }
 0xa88   :  { %v7118_v38 = vrot.slane %v27460_v48, %v26802_v58 }
 0xa8a   :  { %v7119_v41 = vcombine.high %v7118_v38, %v7118_v38  ;;  %v7126_v8 = vrot.slane %v7118_v38, %v26802_v58 }
 0xa8c   :  { %v7137_v21 = vrot.slane %v7126_v8, %v26807_v2  ;;  %v7133_v14 = vrot.slane %v7119_v41, %v26802_v58 }
 0xa8e   :  { %7138 = vrot.lane.b32.xlu1 %v7137_v21, %s26379_s9  ;;  %v7591_v6 = vrot.slane %v7133_v14, %v26807_v2 }
 0xa90   :  { %7592 = vrot.lane.b32.xlu0 %v7591_v6, %s26379_s9 }
 0xb00   :  { %v7139_v60 = vpop.permute.xlu1 %7138 }
 0xb01   :  { %v7140_v37 = vsel %vm121_vm0, %v7139_v60, 0 }
 0xb02   :  { %v27471_v1 = vand.u32 4294901760, %v7140_v37  ;;  %v7593_v25 = vpop.permute.xlu0 %7592 }
 0xb03   :  { %v7594_v36 = vsel %vm121_vm0, %v7593_v25, 0 }
 0xb04   :  { %v27475_v46 = vsub.f32 %v7140_v37, %v27471_v1  ;;  %24220 = vmatmul.mubr.f32.vlgmr.msra.gmra.mrb[50].mxu1 %v27471_v1  ;;  %v27481_v61 = vand.u32 4294901760, %v7594_v36 }
 0xb05   :  { %24228 = vmatpush3.xpose.msra.mxu1 %v26860_v17  ;;  %24229 = vmatprep.mubr.msk.f32.mxu1 %vm26382_vm1, %v28811_v24 }
 0xb06   :  { %24237 = vmatprep.subr.mxu1 %v28811_v24  ;;  %v27485_v51 = vand.u32 4294901760, %v27475_v46  ;;  %v27494_v62 = vsub.f32 %v7594_v36, %v27481_v61 }
 0xb08   :  { %24230 = vmatmul.mubr.f32.vlgmr.msra.gmra.mrb[52].mxu1 %v27485_v51  ;;  %v7211_v26 = vsub.f32 %v27475_v46, %v27485_v51  ;;  %v27507_v34 = vand.u32 4294901760, %v27494_v62 }
 0xb09   :  { %24238 = vmatpush3.xpose.msra.mxu1 %v26860_v17  ;;  %24239 = vmatprep.mubr.msk.f32.mxu1 %vm26382_vm1, %v28811_v24 }
 0xb0a   :  { %24247 = vmatprep.subr.mxu1 %v28811_v24  ;;  %v27497_v27 = vand.u32 4294901760, %v7211_v26  ;;  %v7665_v38 = vsub.f32 %v27494_v62, %v27507_v34 }
 0xb0c   :  { %24215 = vmatmul.mubr.f32.vlgmr.msra.gmra.mrb[28].mxu0 %v27497_v27  ;;  %24240 = vmatmul.mubr.f32.vlgmr.msra.gmra.mrb[54].mxu1 %v27471_v1  ;;  %v27531_v41 = vand.u32 4294901760, %v7665_v38 }
 0xb0d   :  { %24223 = vmatpush3.xpose.msra.mxu0 %v26868_v10  ;;  %24248 = vmatpush3.xpose.msra.mxu1 %v26981_v12 }
 0xb0e   :  { %24224 = vmatprep.mubr.msk.f32.mxu0 %vm26382_vm1, %v28811_v24  ;;  %24232 = vmatprep.subr.mxu0 %v28811_v24 }
 0xb0f   :  { %24249 = vmatprep.mubr.msk.f32.mxu1 %vm26382_vm1, %v28811_v24  ;;  %24257 = vmatprep.subr.mxu1 %v28811_v24 }
 0xb10   :  { %24225 = vmatmul.mubr.f32.vlgmr.msra.gmra.mrb[30].mxu0 %v27475_v46  ;;  %24250 = vmatmul.mubr.f32.vlgmr.msra.gmra.mrb[56].mxu1 %v27481_v61 }
 0xb11   :  { %24233 = vmatpush3.xpose.msra.mxu0 %v26878_v50  ;;  %24258 = vmatpush3.xpose.msra.mxu1 %v26928_v59 }
 0xb12   :  { %24234 = vmatprep.mubr.msk.f32.mxu0 %vm26382_vm1, %v28811_v24  ;;  %24242 = vmatprep.subr.mxu0 %v28811_v24 }
 0xb13   :  { %24259 = vmatprep.mubr.msk.f32.mxu1 %vm26382_vm1, %v28811_v24  ;;  %24267 = vmatprep.subr.mxu1 %v28811_v24 }
 0xb14   :  { %24235 = vmatmul.mubr.f32.vlgmr.msra.gmra.mrb[32].mxu0 %v27471_v1  ;;  %24260 = vmatmul.mubr.f32.vlgmr.msra.gmra.mrb[58].mxu1 %v27507_v34 }
 0xb15   :  { %24243 = vmatpush3.xpose.msra.mxu0 %v26928_v59  ;;  %24268 = vmatpush3.xpose.msra.mxu1 %v26928_v59 }
 0xb16   :  { %24244 = vmatprep.mubr.msk.f32.mxu0 %vm26382_vm1, %v28811_v24  ;;  %24252 = vmatprep.subr.mxu0 %v28811_v24 }
 0xb17   :  { %24269 = vmatprep.mubr.msk.f32.mxu1 %vm26382_vm1, %v28811_v24  ;;  %24302 = vmatprep.subr.mxu1 %v28811_v24 }
 0xb18   :  { %24245 = vmatmul.mubr.f32.vlgmr.msra.gmra.mrb[34].mxu0 %v27531_v41  ;;  %24270 = vmatmul.mubr.f32.vlgmr.msra.gmra.mrb[60].mxu1 %v27481_v61 }
 0xb19   :  { %24253 = vmatpush3.xpose.msra.mxu0 %v26943_v57  ;;  %24303 = vmatpush3.msra.mxu1 %v27055_v39 }
 0xb1a   :  { %24254 = vmatprep.mubr.msk.f32.mxu0 %vm26382_vm1, %v28811_v24  ;;  %24262 = vmatprep.subr.mxu0 %v28811_v24 }
 0xb1b   :  { %24304 = vmatprep.mubr.msk.f32.mxu1 %vm26382_vm1, %v28811_v24  ;;  %24307 = vmatprep.subr.mxu1 %v28811_v24 }
 0xb1c   :  { %24255 = vmatmul.mubr.f32.vlgmr.msra.gmra.mrb[36].mxu0 %v27494_v62 }
 0xb1d   :  { %24263 = vmatpush3.xpose.msra.mxu0 %v26957_v32  ;;  %24264 = vmatprep.mubr.msk.f32.mxu0 %vm26382_vm1, %v28811_v24 }
 0xb1e   :  { %24272 = vmatprep.subr.mxu0 %v28811_v24 }
 0xb20   :  { %24265 = vmatmul.mubr.f32.vlgmr.msra.gmra.mrb[38].mxu0 %v27481_v61 }
 0xb21   :  { %24273 = vmatpush3.msra.mxu0 %v27036_v29  ;;  %24274 = vmatprep.mubr.msk.f32.mxu0 %vm26382_vm1, %v28811_v24 }
 0xb22   :  { %24277 = vmatprep.subr.mxu0 %v28811_v24 }
 0xbd7   :  { %v7290_v8 = vpop.f32.mrb[50].mxu1 }
 0xbd8   :  { %v24221_v21 = vpop.f32.mrb[51].mxu1 }
 0xbdb   :  { %v7438_v14 = vpop.f32.mrb[52].mxu1 }
 0xbdc   :  { %v24231_v6 = vpop.f32.mrb[53].mxu1 }
 0xbdf   :  { %v7214_v60 = vpop.f32.mrb[28].mxu0  ;;  %v7584_v37 = vpop.f32.mrb[54].mxu1 }
 0xbe0   :  { %v7291_v25 = vadd.f32 %v7290_v8, %v7214_v60  ;;  %v24216_v36 = vpop.f32.mrb[29].mxu0  ;;  %v24241_v26 = vpop.f32.mrb[55].mxu1 }
 0xbe3   :  { %v7364_v38 = vpop.f32.mrb[30].mxu0  ;;  %v7744_v32 = vpop.f32.mrb[56].mxu1 }
 0xbe4   :  { %v7365_v57 = vadd.f32 %v7364_v38, %v7291_v25  ;;  %v24226_v59 = vpop.f32.mrb[31].mxu0  ;;  %v24251_v50 = vpop.f32.mrb[57].mxu1 }
 0xbe6   :  { %v7439_v12 = vadd.f32 %v7438_v14, %v7365_v57 }
 0xbe7   :  { %v7512_v10 = vpop.f32.mrb[32].mxu0  ;;  %v7892_v2 = vpop.f32.mrb[58].mxu1 }
 0xbe8   :  { %v7513_v20 = vadd.f32 %v7512_v10, %v7439_v12  ;;  %v24236_v11 = vpop.f32.mrb[33].mxu0  ;;  %v24261_v47 = vpop.f32.mrb[59].mxu1 }
 0xbea   :  { %v7585_v17 = vadd.f32 %v7584_v37, %v7513_v20 }
 0xbeb   :  { %v7668_v21 = vpop.f32.mrb[34].mxu0  ;;  %v8038_v45 = vpop.f32.mrb[60].mxu1 }
 0xbec   :  { %v7745_v6 = vadd.f32 %v7744_v32, %v7668_v21  ;;  %v24246_v28 = vpop.f32.mrb[35].mxu0  ;;  %v24271_v49 = vpop.f32.mrb[61].mxu1  ;;  %v8042_v10 = vadd.f32 %v7585_v17, %v27052_v16 }
 0xbef   :  { %v7818_v8 = vpop.f32.mrb[36].mxu0 }
 0xbf0   :  { %v7819_v60 = vadd.f32 %v7818_v8, %v7745_v6  ;;  %v24256_v36 = vpop.f32.mrb[37].mxu0 }
 0xbf2   :  { %v7893_v26 = vadd.f32 %v7892_v2, %v7819_v60 }
 0xbf3   :  { %v7966_v13 = vpop.f32.mrb[38].mxu0 }
 0xbf4   :  { %v7967_v25 = vadd.f32 %v7966_v13, %v7893_v26  ;;  %v24266_v59 = vpop.f32.mrb[39].mxu0 }
 0xbf6   :  { %v8039_v50 = vadd.f32 %v8038_v45, %v7967_v25 }
 0xbf8   :  { %v8043_v57 = vadd.f32 %v8039_v50, %v27048_v3 }
 0xbfa   :  { %v8046_v12 = vrot.slane %v8043_v57, 7 }
 0xbfc   :  { %v8047_v47 = vsel %vm3717_vm4, %v8046_v12, %v8042_v10 }
 0xbfd   :  { %v8049_v11 = vsel %vm3720_vm5, %v8047_v47, -inf }
 0xbfe   :  { %8050 = vmax.xlane.f32.xlu1 %v8049_v11 }
 0xc8b   :  { %v8051_v32 = vpop.xlane.xlu1 %8050 }
 0xc8c   :  { %v8053_v49 = vrot.slane %v8051_v32, 1  ;;  %v8056_v28 = vsub.f32 %v8042_v10, %v8051_v32 }
 0xc8e   :  { %v8057_v20 = vsub.f32 %v8043_v57, %v8053_v49  ;;  %v8058_v14 = vmul.f32 1.442695, %v8056_v28 }
 0xc90   :  { %26198 = vpow2.f32 %v8058_v14  ;;  %v8060_v2 = vmul.f32 1.442695, %v8057_v20 }
 0xc92   :  { %26200 = vpow2.f32 %v8060_v2 }
 0xc9a   :  { %v26199_v13 = vpop.eup %26198 }
 0xc9b   :  { %v8063_v45 = vsel %vm1756_vm2, %v26199_v13, 0 }
 0xc9c   :  { %v26201_v37 = vpop.eup %26200  ;;  %v8131_v38 = vand.u32 4294901760, %v8063_v45 }
 0xc9d   :  { %v8512_v17 = vsel %vm1756_vm2, %v26201_v37, 0 }
 0xc9e   :  { %v8132_v21 = vsub.f32 %v8063_v45, %v8131_v38  ;;  %v8580_v6 = vand.u32 4294901760, %v8512_v17 }
 0xca0   :  { %v8133_v8 = vand.u32 4294901760, %v8132_v21  ;;  %v8581_v60 = vsub.f32 %v8512_v17, %v8580_v6 }
 0xca2   :  { %v8134_v36 = vsub.f32 %v8132_v21, %v8133_v8  ;;  %v8582_v26 = vand.u32 4294901760, %v8581_v60 }
 0xca4   :  { %v8135_v25 = vand.u32 4294901760, %v8134_v36  ;;  %v8583_v59 = vsub.f32 %v8581_v60, %v8582_v26 }
 0xca6   :  { %24275 = vmatmul.mubr.f32.vlgmr.msra.gmra.mrb[40].mxu0 %v8135_v25  ;;  %v8584_v50 = vand.u32 4294901760, %v8583_v59 }
 0xca7   :  { %24278 = vmatpush3.msra.mxu0 %v27087_v43  ;;  %24279 = vmatprep.mubr.msk.f32.mxu0 %vm26382_vm1, %v28811_v24 }
 0xca8   :  { %24305 = vmatmul.mubr.f32.vlgmr.msra.gmra.mrb[62].mxu1 %v8584_v50  ;;  %24282 = vmatprep.subr.mxu0 %v28811_v24 }
 0xca9   :  { %24308 = vmatpush3.msra.mxu1 %v27090_v33  ;;  %24309 = vmatprep.mubr.msk.f32.mxu1 %vm26382_vm1, %v28811_v24 }
 0xcaa   :  { %24312 = vmatprep.subr.mxu1 %v28811_v24 }
 0xcae   :  { %24280 = vmatmul.mubr.f32.vlgmr.msra.gmra.mrb[40].mxu0 %v8131_v38 }
 0xcaf   :  { %24283 = vmatpush3.msra.mxu0 %v27064_v15  ;;  %24284 = vmatprep.mubr.msk.f32.mxu0 %vm26382_vm1, %v28811_v24 }
 0xcb0   :  { %24310 = vmatmul.mubr.f32.vlgmr.msra.gmra.mrb[62].mxu1 %v8580_v6  ;;  %24287 = vmatprep.subr.mxu0 %v28811_v24 }
 0xcb1   :  { %24313 = vmatpush3.msra.mxu1 %v27067_v7  ;;  %24314 = vmatprep.mubr.msk.f32.mxu1 %vm26382_vm1, %v28811_v24 }
 0xcb2   :  { %24317 = vmatprep.subr.mxu1 %v28811_v24 }
 0xcb6   :  { %24285 = vmatmul.mubr.f32.vlgmr.msra.gmra.mrb[40].mxu0 %v8132_v21 }
 0xcb7   :  { %24288 = vmatpush3.msra.mxu0 %v27036_v29  ;;  %24289 = vmatprep.mubr.msk.f32.mxu0 %vm26382_vm1, %v28811_v24 }
 0xcb8   :  { %24315 = vmatmul.mubr.f32.vlgmr.msra.gmra.mrb[62].mxu1 %v8581_v60  ;;  %24292 = vmatprep.subr.mxu0 %v28811_v24 }
 0xcb9   :  { %24318 = vmatpush3.msra.mxu1 %v27055_v39  ;;  %24319 = vmatprep.mubr.msk.f32.mxu1 %vm26382_vm1, %v28811_v24 }
 0xcba   :  { %24322 = vmatprep.subr.mxu1 %v28811_v24 }
 0xcbe   :  { %24290 = vmatmul.mubr.f32.vlgmr.msra.gmra.mrb[40].mxu0 %v8133_v8 }
 0xcbf   :  { %24293 = vmatpush3.msra.mxu0 %v27073_v35  ;;  %24294 = vmatprep.mubr.msk.f32.mxu0 %vm26382_vm1, %v28811_v24 }
 0xcc0   :  { %24320 = vmatmul.mubr.f32.vlgmr.msra.gmra.mrb[62].mxu1 %v8582_v26  ;;  %24297 = vmatprep.subr.mxu0 %v28811_v24  ;;  %v28812_v26 = vmov 8  }
 0xcc1   :  { %24323 = vmatpush3.msra.mxu1 %v27080_v63  ;;  %24324 = vmatprep.mubr.msk.f32.mxu1 %vm26382_vm1, %v28811_v24 }
 0xcc2   :  { %24327 = vmatprep.subr.mxu1 %v28811_v24 }
 0xcc6   :  { %24295 = vmatmul.mubr.f32.vlgmr.msra.gmra.mrb[40].mxu0 %v8131_v38 }
 0xcc7   :  { %24298 = vmatpush3.msra.mxu0 %v27036_v29  ;;  %24299 = vmatprep.mubr.msk.f32.mxu0 %vm26382_vm1, %v28811_v24 }
 0xcc8   :  { %24325 = vmatmul.mubr.f32.vlgmr.msra.gmra.mrb[62].mxu1 %v8580_v6  ;;  %25658 = vmatprep.subr.bf16.mxu0 %v28800_v53 }
 0xcc9   :  { %24328 = vmatpush3.msra.mxu1 %v27055_v39  ;;  %24329 = vmatprep.mubr.msk.f32.mxu1 %vm26382_vm1, %v28811_v24 }
 0xcca   :  { %25661 = vmatprep.subr.bf16.mxu1 %v28800_v53 }
 0xcce   :  { %24300 = vmatmul.mubr.f32.vlgmr.msra.gmra.mrb[40].mxu0 %v8131_v38 }
 0xccf   :  { %25660 = vmatpush3.bf16.xpose.msra.mxu0 %v27146_v30  ;;  %24336 = vmatprep.mubr.msk.f32.mxu0 %vm26382_vm1, %v28811_v24 }
 0xcd0   :  { %24330 = vmatmul.mubr.f32.vlgmr.msra.gmra.mrb[62].mxu1 %v8580_v6  ;;  %25664 = vmatprep.subr.bf16.mxu0 %v28800_v53 }
 0xcd1   :  { %25663 = vmatpush3.bf16.xpose.msra.mxu1 %v27150_v19  ;;  %24343 = vmatprep.mubr.msk.f32.mxu1 %vm26382_vm1, %v28811_v24 }
 0xcd2   :  { %25667 = vmatprep.subr.bf16.mxu1 %v28800_v53 }
 0xcd6   :  { %24337 = vmatmul.mubr.f32.vlgmr.msra.gmra.mrb[42].mxu0 %v27497_v27 }
 0xcd7   :  { %25666 = vmatpush3.bf16.xpose.msra.mxu0 %v27163_v4  ;;  %24350 = vmatprep.mubr.msk.f32.mxu0 %vm26382_vm1, %v28811_v24 }
 0xcd8   :  { %24344 = vmatmul.mubr.f32.vlgmr.msra.gmra.mrb[64].mxu1 %v27471_v1  ;;  %25670 = vmatprep.subr.bf16.mxu0 %v28800_v53 }
 0xcd9   :  { %25669 = vmatpush3.bf16.xpose.msra.mxu1 %v27146_v30  ;;  %24357 = vmatprep.mubr.msk.f32.mxu1 %vm26382_vm1, %v28811_v24 }
 0xcda   :  { %25673 = vmatprep.subr.bf16.mxu1 %v28800_v53 }
 0xcde   :  { %24351 = vmatmul.mubr.f32.vlgmr.msra.gmra.mrb[44].mxu0 %v27475_v46 }
 0xcdf   :  { %25672 = vmatpush3.bf16.xpose.msra.mxu0 %v27176_v40  ;;  %24364 = vmatprep.mubr.msk.f32.mxu0 %vm26382_vm1, %v28811_v24 }
 0xce0   :  { %24358 = vmatmul.mubr.f32.vlgmr.msra.gmra.mrb[66].mxu1 %v27485_v51  ;;  %25676 = vmatprep.subr.bf16.mxu0 %v28800_v53 }
 0xce1   :  { %25675 = vmatpush3.bf16.xpose.msra.mxu1 %v27146_v30  ;;  %24371 = vmatprep.mubr.msk.f32.mxu1 %vm26382_vm1, %v28811_v24 }
 0xce2   :  { %25679 = vmatprep.subr.bf16.mxu1 %v28800_v53 }
 0xce6   :  { %24365 = vmatmul.mubr.f32.vlgmr.msra.gmra.mrb[46].mxu0 %v27471_v1 }
 0xce7   :  { %25678 = vmatpush3.bf16.xpose.msra.mxu0 %v27188_v0  ;;  %24378 = vmatprep.mubr.msk.f32.mxu0 %vm26382_vm1, %v28811_v24 }
 0xce8   :  { %24372 = vmatmul.mubr.f32.vlgmr.msra.gmra.mrb[68].mxu1 %v27471_v1  ;;  %25682 = vmatprep.subr.bf16.mxu0 %v28800_v53 }
 0xce9   :  { %25681 = vmatpush3.bf16.xpose.msra.mxu1 %v27192_v23  ;;  %24385 = vmatprep.mubr.msk.f32.mxu1 %vm26382_vm1, %v28811_v24 }
 0xcea   :  { %25685 = vmatprep.subr.bf16.mxu1 %v28800_v53 }
 0xcee   :  { %24379 = vmatmul.mubr.f32.vlgmr.msra.gmra.mrb[48].mxu0 %v27531_v41 }
 0xcef   :  { %25684 = vmatpush3.bf16.xpose.msra.mxu0 %v27203_v54  ;;  %24392 = vmatprep.mubr.msk.f32.mxu0 %vm26382_vm1, %v28811_v24 }
 0xcf0   :  { %24386 = vmatmul.mubr.f32.vlgmr.msra.gmra.mrb[70].mxu1 %v27481_v61  ;;  %25688 = vmatprep.subr.bf16.mxu0 %v28800_v53 }
 0xcf1   :  { %25687 = vmatpush3.bf16.xpose.msra.mxu1 %v27188_v0  ;;  %24399 = vmatprep.mubr.msk.f32.mxu1 %vm26382_vm1, %v28811_v24 }
 0xcf2   :  { %25691 = vmatprep.subr.bf16.mxu1 %v28800_v53 }
 0xcf6   :  { %24393 = vmatmul.mubr.f32.vlgmr.msra.gmra.mrb[50].mxu0 %v27494_v62 }
 0xcf7   :  { %25690 = vmatpush3.bf16.xpose.msra.mxu0 %v27216_v42  ;;  %24406 = vmatprep.mubr.msk.f32.mxu0 %vm26382_vm1, %v28811_v24 }
 0xcf8   :  { %24400 = vmatmul.mubr.f32.vlgmr.msra.gmra.mrb[72].mxu1 %v27507_v34  ;;  %24416 = vmatprep.subr.mxu0 %v28811_v24 }
 0xcf9   :  { %25693 = vmatpush3.bf16.xpose.msra.mxu1 %v27188_v0  ;;  %24413 = vmatprep.mubr.msk.f32.mxu1 %vm26382_vm1, %v28811_v24 }
 0xcfa   :  { %24446 = vmatprep.subr.mxu1 %v28811_v24 }
 0xcfe   :  { %24407 = vmatmul.mubr.f32.vlgmr.msra.gmra.mrb[52].mxu0 %v27481_v61 }
 0xcff   :  { %24417 = vmatpush3.msra.mxu0 %v27229_v9  ;;  %24418 = vmatprep.mubr.msk.f32.mxu0 %vm26382_vm1, %v28811_v24 }
 0xd00   :  { %24414 = vmatmul.mubr.f32.vlgmr.msra.gmra.mrb[74].mxu1 %v27481_v61  ;;  %24421 = vmatprep.subr.mxu0 %v28811_v24 }
 0xd01   :  { %24447 = vmatpush3.msra.mxu1 %v27233_v44  ;;  %24448 = vmatprep.mubr.msk.f32.mxu1 %vm26382_vm1, %v28811_v24 }
 0xd02   :  { %24451 = vmatprep.subr.mxu1 %v28811_v24 }
 0xda1   :  { %v8507_v1 = vpop.f32.mrb[40].mxu0 }
 0xda2   :  { %26202 = vrcp.f32 %v8507_v1  ;;  %v24301_v46 = vpop.f32.mrb[41].mxu0 }
 0xda3   :  { %v8956_v51 = vpop.f32.mrb[62].mxu1 }
 0xda4   :  { %26204 = vrcp.f32 %v8956_v51  ;;  %v24331_v62 = vpop.f32.mrb[63].mxu1 }
 0xda9   :  { %v9041_v27 = vpop.f32.mrb[42].mxu0 }
 0xdaa   :  { %v24338_v34 = vpop.f32.mrb[43].mxu0 }
 0xdab   :  { %v9122_v41 = vpop.f32.mrb[64].mxu1 }
 0xdac   :  { %v26203_v57 = vpop.eup %26202  ;;  %v9123_v61 = vadd.f32 %v9122_v41, %v9041_v27  ;;  %v24345_v10 = vpop.f32.mrb[65].mxu1 }
 0xdad   :  { %v8962_v47 = vmul.f32 %v26203_v57, %v8507_v1 }
 0xdae   :  { %v26205_v12 = vpop.eup %26204 }
 0xdaf   :  { %v8963_v11 = vmul.f32 %v26205_v12, %v8956_v51  ;;  %v8964_v14 = vsub.f32 2.0, %v8962_v47 }
 0xdb1   :  { %v8965_v32 = vsub.f32 2.0, %v8963_v11  ;;  %v9198_v49 = vpop.f32.mrb[44].mxu0  ;;  %v8966_v38 = vmul.f32 %v26203_v57, %v8964_v14 }
 0xdb2   :  { %v9199_v28 = vadd.f32 %v9198_v49, %v9123_v61  ;;  %v24352_v20 = vpop.f32.mrb[45].mxu0 }
 0xdb3   :  { %v9273_v2 = vpop.f32.mrb[66].mxu1  ;;  %v8967_v13 = vmul.f32 %v26205_v12, %v8965_v32 }
 0xdb4   :  { %v9274_v45 = vadd.f32 %v9273_v2, %v9199_v28  ;;  %v24359_v37 = vpop.f32.mrb[67].mxu1 }
 0xdb5   :  { %9893 = vperm.xlu0 %26166, %v8967_v13  }
 0xdb9   :  { %v9350_v17 = vpop.f32.mrb[46].mxu0  ;;  %9888 = vperm.xlu0 %26166, %v8966_v38  }
 0xdba   :  { %v9351_v21 = vadd.f32 %v9350_v17, %v9274_v45  ;;  %v24366_v6 = vpop.f32.mrb[47].mxu0 }
 0xdbb   :  { %v9423_v8 = vpop.f32.mrb[68].mxu1 }
 0xdbc   :  { %v9424_v60 = vadd.f32 %v9423_v8, %v9351_v21  ;;  %v24373_v36 = vpop.f32.mrb[69].mxu1  ;;  %v28813_v21 = vmov 9  }
 0xdbd   :  { %26167 = vset.pattern.permute.xlu0 %v28812_v26  ;;  %v28759_v36 = vmax.f32 %v27289_v31, 0.0 }
 0xdc1   :  { %v9500_v25 = vpop.f32.mrb[48].mxu0 }
 0xdc2   :  { %v24380_v59 = vpop.f32.mrb[49].mxu0 }
 0xdc3   :  { %v9581_v50 = vpop.f32.mrb[70].mxu1 }
 0xdc4   :  { %v9582_v46 = vadd.f32 %v9581_v50, %v9500_v25  ;;  %v24387_v62 = vpop.f32.mrb[71].mxu1 }
 0xdc9   :  { %v9657_v27 = vpop.f32.mrb[50].mxu0 }
 0xdca   :  { %v9658_v34 = vadd.f32 %v9657_v27, %v9582_v46  ;;  %v24394_v41 = vpop.f32.mrb[51].mxu0 }
 0xdcb   :  { %v9732_v61 = vpop.f32.mrb[72].mxu1 }
 0xdcc   :  { %v9733_v10 = vadd.f32 %v9732_v61, %v9658_v34  ;;  %v24401_v57 = vpop.f32.mrb[73].mxu1  ;;  %v28816_v61 = vld [vmem:[#allocation22_spill] sm:$0xff] }
 0xdd1   :  { %v9809_v12 = vpop.f32.mrb[52].mxu0 }
 0xdd2   :  { %v9810_v47 = vadd.f32 %v9809_v12, %v9733_v10  ;;  %v24408_v11 = vpop.f32.mrb[53].mxu0 }
 0xdd3   :  { %v9882_v32 = vpop.f32.mrb[74].mxu1 }
 0xdd4   :  { %v9883_v49 = vadd.f32 %v9882_v32, %v9810_v47  ;;  %v24415_v28 = vpop.f32.mrb[75].mxu1 }
 0xe34   :  { %v9894_v20 = vpop.permute.xlu0 %9893 }
 0xe35   :  { %v9897_v14 = vmul.f32 %v9894_v20, %v8956_v51 }
 0xe37   :  { %v9899_v2 = vadd.f32 %v9897_v14, %v9883_v49 }
 0xe38   :  { %v9889_v13 = vpop.permute.xlu0 %9888 }
 0xe39   :  { %v9896_v45 = vmul.f32 %v9889_v13, %v8507_v1  ;;  %v9901_v37 = vadd.f32 %v9899_v2, %v27263_v55 }
 0xe3b   :  { %v9898_v38 = vadd.f32 %v9896_v45, %v9424_v60  ;;  %9908 = vperm.xlu0 %26167, %v9901_v37  }
 0xe3d   :  { %v9900_v17 = vadd.f32 %v9898_v38, %v27267_v22 }
 0xe3f   :  { %9904 = vperm.xlu0 %26167, %v9900_v17  }
 0xe43   :  { %26168 = vset.pattern.permute.xlu0 %v28813_v21 }
 0xeba   :  { %v9909_v6 = vpop.permute.xlu0 %9908 }
 0xebb   :  { %v9910_v8 = vrot.slane %v9909_v6, 7 }
 0xebe   :  { %v9905_v25 = vpop.permute.xlu0 %9904 }
 0xebf   :  { %v9911_v59 = vsel %vm3717_vm4, %v9910_v8, %v9905_v25 }
 0xec0   :  { %v9913_v51 = vmul.f32 %v9911_v59, %v28759_v36 }
 0xec2   :  { %v9915_v1 = vrot.slane %v9913_v51, 1  ;;  %v27680_v60 = vadd.f32 %v9913_v51, %v9900_v17 }
 0xec4   :  { %v27678_v50 = vadd.f32 %v9915_v1, %v9901_v37  ;;  %28815 = vst [vmem:[#allocation42_spill] sm:$0xff] %v27680_v60 }
 0xec6   :  { %28814 = vst [vmem:[#allocation41_spill] sm:$0xff] %v27678_v50  ;;  %v28758_v46 = vrot.slane %v27678_v50, 7 }
 0xec8   :  { %v9923_v62 = vsel %vm3717_vm4, %v28758_v46, %v27680_v60 }
 0xec9   :  { %v9925_v27 = vsel %vm3720_vm5, %v9923_v62, -inf }
 0xeca   :  { %9926 = vmax.xlane.f32.xlu0 %v9925_v27 }
 0xf57   :  { %v9927_v34 = vpop.xlane.xlu0 %9926 }
 0xf58   :  { %v9929_v41 = vrot.slane %v9927_v34, 1  ;;  %vm9932_vm11 = vcmp.eq.f32.partialorder %v27680_v60, %v9927_v34 }
 0xf59   :  { %v9934_v12 = vsel %vm9932_vm11, %v28816_v61, 8 }
 0xf5a   :  { %vm9933_vm12 = vcmp.eq.f32.partialorder %v27678_v50, %v9929_v41 }
 0xf5b   :  { %v9935_v10 = vsel %vm9933_vm12, %v28816_v61, 8 }
 0xf5c   :  { %v9936_v57 = vrot.slane %v9935_v10, 7 }
 0xf5e   :  { %v9937_v47 = vsel %vm3717_vm4, %v9936_v57, %v9934_v12 }
 0xf5f   :  { %v9938_v11 = vsel %vm3720_vm5, %v9937_v47, 2147483647 }
 0xf60   :  { %v9940_v32 = vshra.s32 %v9938_v11, 16  ;;  %v9939_v28 = vand.u32 65535, %v9938_v11 }
 0xf62   :  { %v9942_v49 = vcvt.s32.f32 %v9940_v32  ;;  %v9941_v14 = vcvt.s32.f32 %v9939_v28  ;;  %v28818_v28 = vld [vmem:[#allocation30_spill] sm:$0xff] }
 0xf64   :  { %9943 = vmin.xlane.f32.xlu1 %v9942_v49 }
 0xff1   :  { %v9944_v20 = vpop.xlane.xlu1 %9943 }
 0xff2   :  { %vm9945_vm13 = vcmp.eq.f32.partialorder %v9942_v49, %v9944_v20  ;;  %v9950_v13 = vcvt.f32.s32 %v9944_v20  ;;  %v28817_v49 = vld [vmem:[#allocation29_spill] sm:$0xff] }
 0xff3   :  { %v9946_v2 = vsel %vm9945_vm13, %v9941_v14, inf  ;;  %v28819_v20 = vld [vmem:[#allocation25_spill] sm:$0xff]  ;;  %v28820_v14 = vld [vmem:[#allocation26_spill] sm:$0xff] }
 0xff4   :  { %9947 = vmin.xlane.f32.xlu1 %v9946_v2  ;;  %v9951_v37 = vshll.u32 %v9950_v13, 16  ;;  %v28821_v13 = vld [vmem:[#allocation27_spill] sm:$0xff] }
0x1005   :  { %10876 = vrot.lane.b32.xlu1 %v27460_v48, %s26379_s9 }
0x1081   :  { %v9948_v45 = vpop.xlane.xlu1 %9947 }
0x1082   :  { %v9949_v38 = vcvt.f32.s32 %v9948_v45 }
0x1084   :  { %v9952_v17 = vadd.s32 %v9951_v37, %v9949_v38  ;;  %v28822_v37 = vld [vmem:[#allocation28_spill] sm:$0xff] }
0x1085   :  { %v10877_v2 = vpop.permute.xlu1 %10876 }
0x1086   :  { %vm9953_vm14 = vcmp.eq.s32.totalorder %v28816_v61, %v9952_v17  ;;  %v10883_v45 = vsel %vm121_vm0, %v10877_v2, 0 }
0x1087   :  { %v27698_v6 = vsel %vm9953_vm14, 1.0, %v28811_v24  ;;  %v10954_v38 = vand.u32 4294901760, %v10883_v45 }
0x1088   :  { %v9964_v8 = vrot.slane %v27698_v6, %v26802_v58 }
0x1089   :  { %v10955_v17 = vsub.f32 %v10883_v45, %v10954_v38 }
0x108a   :  { %v9965_v25 = vcombine.high %v9964_v8, %v9964_v8  ;;  %v9972_v59 = vrot.slane %v9964_v8, %v26802_v58 }
0x108b   :  { %v10956_v8 = vand.u32 4294901760, %v10955_v17 }
0x108c   :  { %v9979_v51 = vrot.slane %v9965_v25, %v26802_v58  ;;  %v9980_v48 = vsel %vm1756_vm2, %v9972_v59, 0 }
0x108d   :  { %v10048_v1 = vand.u32 4294901760, %v9980_v48  ;;  %v10957_v25 = vsub.f32 %v10955_v17, %v10956_v8 }
0x108e   :  { %v10428_v62 = vsel %vm1756_vm2, %v9979_v51, 0  ;;  %v28823_v51 = vld [vmem:[#allocation35_spill] sm:$0xff] }
0x108f   :  { %v10049_v27 = vsub.f32 %v9980_v48, %v10048_v1  ;;  %v10496_v34 = vand.u32 4294901760, %v10428_v62  ;;  %v10958_v59 = vand.u32 4294901760, %v10957_v25  ;;  %v28824_v48 = vld [vmem:[#allocation36_spill] sm:$0xff] }
0x1091   :  { %v10050_v41 = vand.u32 4294901760, %v10049_v27  ;;  %v10497_v10 = vsub.f32 %v10428_v62, %v10496_v34  ;;  %v28826_v62 = vld [vmem:[#allocation38_spill] sm:$0xff] }
0x1093   :  { %v10051_v57 = vsub.f32 %v10049_v27, %v10050_v41  ;;  %v10498_v12 = vand.u32 4294901760, %v10497_v10 }
0x1095   :  { %v10052_v47 = vand.u32 4294901760, %v10051_v57  ;;  %v10499_v11 = vsub.f32 %v10497_v10, %v10498_v12 }
0x1097   :  { %24419 = vmatmul.mubr.f32.vlgmr.msra.gmra.mrb[54].mxu0 %v10052_v47  ;;  %v10500_v32 = vand.u32 4294901760, %v10499_v11 }
0x1098   :  { %24422 = vmatpush3.msra.mxu0 %v28817_v49  ;;  %24423 = vmatprep.mubr.msk.f32.mxu0 %vm26382_vm1, %v28811_v24 }
0x1099   :  { %24449 = vmatmul.mubr.f32.vlgmr.msra.gmra.mrb[76].mxu1 %v10500_v32  ;;  %24426 = vmatprep.subr.mxu0 %v28811_v24 }
0x109a   :  { %24452 = vmatpush3.msra.mxu1 %v28818_v28  ;;  %24453 = vmatprep.mubr.msk.f32.mxu1 %vm26382_vm1, %v28811_v24 }
0x109b   :  { %24456 = vmatprep.subr.mxu1 %v28811_v24 }
0x109f   :  { %24424 = vmatmul.mubr.f32.vlgmr.msra.gmra.mrb[54].mxu0 %v10048_v1 }
0x10a0   :  { %24427 = vmatpush3.msra.mxu0 %v28819_v20  ;;  %24428 = vmatprep.mubr.msk.f32.mxu0 %vm26382_vm1, %v28811_v24 }
0x10a1   :  { %24454 = vmatmul.mubr.f32.vlgmr.msra.gmra.mrb[76].mxu1 %v10496_v34  ;;  %24431 = vmatprep.subr.mxu0 %v28811_v24 }
0x10a2   :  { %24457 = vmatpush3.msra.mxu1 %v28820_v14  ;;  %24458 = vmatprep.mubr.msk.f32.mxu1 %vm26382_vm1, %v28811_v24 }
0x10a3   :  { %24461 = vmatprep.subr.mxu1 %v28811_v24 }
0x10a7   :  { %24429 = vmatmul.mubr.f32.vlgmr.msra.gmra.mrb[54].mxu0 %v10049_v27  ;;  %v28827_v27 = vld [vmem:[#allocation14_spill] sm:$0xff] }
0x10a8   :  { %24432 = vmatpush3.msra.mxu0 %v27229_v9  ;;  %24433 = vmatprep.mubr.msk.f32.mxu0 %vm26382_vm1, %v28811_v24 }
0x10a9   :  { %24459 = vmatmul.mubr.f32.vlgmr.msra.gmra.mrb[76].mxu1 %v10497_v10  ;;  %24436 = vmatprep.subr.mxu0 %v28811_v24 }
0x10aa   :  { %24462 = vmatpush3.msra.mxu1 %v27233_v44  ;;  %24463 = vmatprep.mubr.msk.f32.mxu1 %vm26382_vm1, %v28811_v24 }
0x10ab   :  { %24466 = vmatprep.subr.mxu1 %v28811_v24 }
0x10af   :  { %24434 = vmatmul.mubr.f32.vlgmr.msra.gmra.mrb[54].mxu0 %v10050_v41 }
0x10b0   :  { %24437 = vmatpush3.msra.mxu0 %v28821_v13  ;;  %24438 = vmatprep.mubr.msk.f32.mxu0 %vm26382_vm1, %v28811_v24 }
0x10b1   :  { %24464 = vmatmul.mubr.f32.vlgmr.msra.gmra.mrb[76].mxu1 %v10498_v12  ;;  %24441 = vmatprep.subr.mxu0 %v28811_v24 }
0x10b2   :  { %24467 = vmatpush3.msra.mxu1 %v28822_v37  ;;  %24468 = vmatprep.mubr.msk.f32.mxu1 %vm26382_vm1, %v28811_v24 }
0x10b3   :  { %24471 = vmatprep.subr.mxu1 %v28811_v24 }
0x10b7   :  { %24439 = vmatmul.mubr.f32.vlgmr.msra.gmra.mrb[54].mxu0 %v10048_v1 }
0x10b8   :  { %24442 = vmatpush3.msra.mxu0 %v27229_v9  ;;  %24443 = vmatprep.mubr.msk.f32.mxu0 %vm26382_vm1, %v28811_v24 }
0x10b9   :  { %24469 = vmatmul.mubr.f32.vlgmr.msra.gmra.mrb[76].mxu1 %v10496_v34  ;;  %25694 = vmatprep.subr.bf16.mxu0 %v28800_v53 }
0x10ba   :  { %24472 = vmatpush3.msra.mxu1 %v27233_v44  ;;  %24473 = vmatprep.mubr.msk.f32.mxu1 %vm26382_vm1, %v28811_v24 }
0x10bb   :  { %25700 = vmatprep.subr.bf16.mxu1 %v28800_v53 }
0x10bf   :  { %24444 = vmatmul.mubr.f32.vlgmr.msra.gmra.mrb[54].mxu0 %v10048_v1  ;;  %v28825_v1 = vld [vmem:[#allocation37_spill] sm:$0xff] }
0x10c0   :  { %25696 = vmatpush3.bf16.msra.mxu0 %v27381_v5  ;;  %24484 = vmatprep.mubr.msk.f32.mxu0 %vm26382_vm1, %v28811_v24 }
0x10c1   :  { %24474 = vmatmul.mubr.f32.vlgmr.msra.gmra.mrb[76].mxu1 %v10496_v34  ;;  %25697 = vmatprep.subr.bf16.mxu0 %v28800_v53  ;;  %v28828_v34 = vld [vmem:[#allocation17_spill] sm:$0xff] }
0x10c2   :  { %25702 = vmatpush3.bf16.msra.mxu1 %v27383_v52  ;;  %24495 = vmatprep.mubr.msk.f32.mxu1 %vm26382_vm1, %v28811_v24 }
0x10c3   :  { %25703 = vmatprep.subr.bf16.mxu1 %v28800_v53 }
0x10c4   :  { %25699 = vmatpush3.bf16.msra.mxu0 %v27387_v18 }
0x10c5   :  { %25706 = vmatprep.subr.bf16.mxu0 %v28800_v53 }
0x10c6   :  { %25705 = vmatpush3.bf16.msra.mxu1 %v27394_v56 }
0x10c7   :  { %24485 = vmatmul.mubr.f32.vlgmr.msra.gmra.mrb[56].mxu0 %v10958_v59  ;;  %25712 = vmatprep.subr.bf16.mxu1 %v28800_v53 }
0x10c8   :  { %25708 = vmatpush3.bf16.msra.mxu0 %v28823_v51  ;;  %24506 = vmatprep.mubr.msk.f32.mxu0 %vm26382_vm1, %v28811_v24 }
0x10c9   :  { %24496 = vmatmul.mubr.f32.vlgmr.msra.gmra.mrb[78].mxu1 %v10954_v38  ;;  %25709 = vmatprep.subr.bf16.mxu0 %v28800_v53 }
0x10ca   :  { %25714 = vmatpush3.bf16.msra.mxu1 %v27381_v5  ;;  %24517 = vmatprep.mubr.msk.f32.mxu1 %vm26382_vm1, %v28811_v24 }
0x10cb   :  { %25715 = vmatprep.subr.bf16.mxu1 %v28800_v53 }
0x10cc   :  { %25711 = vmatpush3.bf16.msra.mxu0 %v28824_v48  ;;  %v28829_v48 = vld [vmem:[#allocation39_spill] sm:$0xff] }
0x10cd   :  { %25718 = vmatprep.subr.bf16.mxu0 %v28800_v53 }
0x10ce   :  { %25717 = vmatpush3.bf16.msra.mxu1 %v27387_v18 }
0x10cf   :  { %24507 = vmatmul.mubr.f32.vlgmr.msra.gmra.mrb[58].mxu0 %v10955_v17  ;;  %25724 = vmatprep.subr.bf16.mxu1 %v28800_v53 }
0x10d0   :  { %25720 = vmatpush3.bf16.msra.mxu0 %v28825_v1  ;;  %24528 = vmatprep.mubr.msk.f32.mxu0 %vm26382_vm1, %v28811_v24 }
0x10d1   :  { %24518 = vmatmul.mubr.f32.vlgmr.msra.gmra.mrb[80].mxu1 %v10956_v8  ;;  %25721 = vmatprep.subr.bf16.mxu0 %v28800_v53 }
0x10d2   :  { %25726 = vmatpush3.bf16.msra.mxu1 %v27381_v5  ;;  %24539 = vmatprep.mubr.msk.f32.mxu1 %vm26382_vm1, %v28811_v24 }
0x10d3   :  { %25727 = vmatprep.subr.bf16.mxu1 %v28800_v53 }
0x10d4   :  { %25723 = vmatpush3.bf16.msra.mxu0 %v28826_v62 }
0x10d5   :  { %24542 = vmatprep.subr.mxu0 %v28811_v24 }
0x10d6   :  { %25729 = vmatpush3.bf16.msra.mxu1 %v27387_v18 }
0x10d7   :  { %24529 = vmatmul.mubr.f32.vlgmr.msra.gmra.mrb[60].mxu0 %v10954_v38  ;;  %24547 = vmatprep.subr.mxu1 %v28811_v24 }
0x10d8   :  { %24544 = vmatprep.mubr.msk.f32.mxu0 %vm26382_vm1, %v28811_v24 }
0x10d9   :  { %24540 = vmatmul.mubr.f32.vlgmr.msra.gmra.mrb[82].mxu1 %v10954_v38 }
0x10da   :  { %24549 = vmatprep.mubr.msk.f32.mxu1 %vm26382_vm1, %v28811_v24 }
0x10dd   :  { %24543 = vmatpush3.xpose.msra.mxu0 %v28827_v27 }
0x10de   :  { %24552 = vmatprep.subr.mxu0 %v28811_v24 }
0x10df   :  { %24548 = vmatpush3.xpose.msra.mxu1 %v28828_v34 }
0x10e0   :  { %24557 = vmatprep.subr.mxu1 %v28811_v24 }
0x1192   :  { %v10424_v41 = vpop.f32.mrb[54].mxu0 }
0x1193   :  { %v24445_v10 = vpop.f32.mrb[55].mxu0 }
0x1194   :  { %v10872_v57 = vpop.f32.mrb[76].mxu1 }
0x1195   :  { %v10880_v12 = vrot.slane %v10872_v57, 7  ;;  %v24475_v47 = vpop.f32.mrb[77].mxu1 }
0x1197   :  { %v10881_v11 = vsel %vm3717_vm4, %v10880_v12, %v10424_v41 }
0x119a   :  { %v10960_v32 = vpop.f32.mrb[56].mxu0 }
0x119b   :  { %v10961_v2 = vadd.f32 %v10960_v32, %v10881_v11  ;;  %v24486_v45 = vpop.f32.mrb[57].mxu0 }
0x119c   :  { %v11051_v38 = vpop.f32.mrb[78].mxu1 }
0x119d   :  { %v11052_v17 = vadd.f32 %v11051_v38, %v10961_v2  ;;  %v24497_v8 = vpop.f32.mrb[79].mxu1 }
0x11a2   :  { %v11131_v25 = vpop.f32.mrb[58].mxu0 }
0x11a3   :  { %v11132_v59 = vadd.f32 %v11131_v25, %v11052_v17  ;;  %v24508_v46 = vpop.f32.mrb[59].mxu0 }
0x11a4   :  { %v11208_v36 = vpop.f32.mrb[80].mxu1 }
0x11a5   :  { %v11209_v50 = vadd.f32 %v11208_v36, %v11132_v59  ;;  %v24519_v60 = vpop.f32.mrb[81].mxu1 }
0x11aa   :  { %v11291_v34 = vpop.f32.mrb[60].mxu0 }
0x11ab   :  { %v11292_v62 = vadd.f32 %v11291_v34, %v11209_v50  ;;  %v24530_v10 = vpop.f32.mrb[61].mxu0  ;;  %v28830_v50 = vld [vmem:[#allocation40_spill] sm:$0xff] }
0x11ac   :  { %v11366_v1 = vpop.f32.mrb[82].mxu1  ;;  %v28832_v10 = vld [vmem:[#allocation13_spill] sm:$0xff] }
0x11ad   :  { %v11367_v57 = vadd.f32 %v11366_v1, %v11292_v62  ;;  %v24541_v47 = vpop.f32.mrb[83].mxu1 }
0x11af   :  { %v11370_v41 = vadd.f32 %v11367_v57, %v28829_v48 }
0x11b1   :  { %26206 = vtanh.f32 %v11370_v41  ;;  %v22815_v11 = vmul.f32 -1.442695, %v11370_v41 }
0x11b3   :  { %26208 = vpow2.f32 %v22815_v11 }
0x11bb   :  { %v26207_v12 = vpop.eup %26206 }
0x11bc   :  { %11380 = vrot.lane.b32.xlu0 %v26207_v12, %s26378_s5 }
0x11bd   :  { %v26209_v32 = vpop.eup %26208 }
0x11be   :  { %v11374_v2 = vadd.f32 1.0, %v26209_v32 }
0x11c0   :  { %26210 = vrcp.f32 %v11374_v2 }
0x11ca   :  { %v26211_v46 = vpop.eup %26210 }
0x11cb   :  { %v11378_v34 = vmul.f32 %v26211_v46, %v28830_v50 }
0x122e   :  { %v11381_v36 = vpop.permute.xlu0 %11380 }
0x122f   :  { %v11383_v60 = vmul.f32 %v26211_v46, %v11381_v36 }
0x1231   :  { %11385 = vrot.lane.b32.xlu1 %v11383_v60, %s26379_s9 }
0x12a3   :  { %v11386_v1 = vpop.permute.xlu1 %11385 }
0x12a4   :  { %v27796_v62 = vadd.f32 %v11386_v1, %v11378_v34 }
0x12a6   :  { %28831 = vst [vmem:[#allocation22_spill] sm:$0xff] %v27796_v62  ;;  %26212 = vtanh.f32 %v27796_v62 }
0x12b0   :  { %v26213_v45 = vpop.eup %26212 }
0x12b1   :  { %11391 = vrot.lane.b32.xlu1 %v26213_v45, %s26378_s5 }
0x1323   :  { %v11392_v38 = vpop.permute.xlu1 %11391 }
0x1324   :  { %v27800_v17 = vmul.f32 %v26211_v46, %v11392_v38  ;;  %v28833_v38 = vld [vmem:[#allocation15_spill] sm:$0xff] }
0x1326   :  { %v11402_v8 = vrot.slane %v27800_v17, %v26802_v58 }
0x1328   :  { %v11403_v25 = vcombine.high %v11402_v8, %v11402_v8  ;;  %v11410_v59 = vrot.slane %v11402_v8, %v26802_v58  ;;  %v28834_v8 = vld [vmem:[#allocation21_spill] sm:$0xff] }
0x132a   :  { %v11421_v57 = vrot.slane %v11410_v59, %v28832_v10  ;;  %v11417_v47 = vrot.slane %v11403_v25, %v26802_v58  ;;  %v28835_v59 = vld [vmem:[#allocation16_spill] sm:$0xff] }
0x132c   :  { %11422 = vrot.lane.b32.xlu1 %v11421_v57, %s26379_s9  ;;  %v11875_v41 = vrot.slane %v11417_v47, %v28832_v10  ;;  %v28836_v57 = vld [vmem:[#allocation18_spill] sm:$0xff] }
0x1330   :  { %11876 = vrot.lane.b32.xlu1 %v11875_v41, %s26379_s9 }
0x139e   :  { %v11423_v12 = vpop.permute.xlu1 %11422 }
0x139f   :  { %v11424_v11 = vsel %vm121_vm0, %v11423_v12, 0  ;;  %v28837_v12 = vld [vmem:[#allocation19_spill] sm:$0xff] }
0x13a0   :  { %v27811_v32 = vand.u32 4294901760, %v11424_v11 }
0x13a2   :  { %v27814_v2 = vsub.f32 %v11424_v11, %v27811_v32  ;;  %24550 = vmatmul.mubr.f32.vlgmr.msra.gmra.mrb[84].mxu1 %v27811_v32  ;;  %v11877_v46 = vpop.permute.xlu1 %11876  ;;  %v28838_v11 = vld [vmem:[#allocation20_spill] sm:$0xff] }
0x13a3   :  { %24558 = vmatpush3.xpose.msra.mxu1 %v28827_v27  ;;  %v11878_v36 = vsel %vm121_vm0, %v11877_v46, 0  ;;  %24559 = vmatprep.mubr.msk.f32.mxu1 %vm26382_vm1, %v28811_v24 }
0x13a4   :  { %v27821_v60 = vand.u32 4294901760, %v11878_v36  ;;  %24567 = vmatprep.subr.mxu1 %v28811_v24  ;;  %v27825_v50 = vand.u32 4294901760, %v27814_v2 }
0x13a6   :  { %24560 = vmatmul.mubr.f32.vlgmr.msra.gmra.mrb[86].mxu1 %v27825_v50  ;;  %v11495_v34 = vsub.f32 %v27814_v2, %v27825_v50  ;;  %v27834_v1 = vsub.f32 %v11878_v36, %v27821_v60 }
0x13a7   :  { %24568 = vmatpush3.xpose.msra.mxu1 %v28827_v27  ;;  %24569 = vmatprep.mubr.msk.f32.mxu1 %vm26382_vm1, %v28811_v24 }
0x13a8   :  { %24577 = vmatprep.subr.mxu1 %v28811_v24  ;;  %v27837_v45 = vand.u32 4294901760, %v11495_v34  ;;  %v27847_v25 = vand.u32 4294901760, %v27834_v1 }
0x13aa   :  { %24545 = vmatmul.mubr.f32.vlgmr.msra.gmra.mrb[62].mxu0 %v27837_v45  ;;  %24570 = vmatmul.mubr.f32.vlgmr.msra.gmra.mrb[88].mxu1 %v27811_v32  ;;  %v11949_v47 = vsub.f32 %v27834_v1, %v27847_v25 }
0x13ab   :  { %24553 = vmatpush3.xpose.msra.mxu0 %v28833_v38  ;;  %24578 = vmatpush3.xpose.msra.mxu1 %v28834_v8 }
0x13ac   :  { %24554 = vmatprep.mubr.msk.f32.mxu0 %vm26382_vm1, %v28811_v24  ;;  %24562 = vmatprep.subr.mxu0 %v28811_v24  ;;  %v27871_v41 = vand.u32 4294901760, %v11949_v47 }
0x13ad   :  { %24579 = vmatprep.mubr.msk.f32.mxu1 %vm26382_vm1, %v28811_v24  ;;  %24587 = vmatprep.subr.mxu1 %v28811_v24 }
0x13ae   :  { %24555 = vmatmul.mubr.f32.vlgmr.msra.gmra.mrb[64].mxu0 %v27814_v2  ;;  %24580 = vmatmul.mubr.f32.vlgmr.msra.gmra.mrb[90].mxu1 %v27821_v60 }
0x13af   :  { %24563 = vmatpush3.xpose.msra.mxu0 %v28835_v59  ;;  %24588 = vmatpush3.xpose.msra.mxu1 %v28836_v57 }
0x13b0   :  { %24564 = vmatprep.mubr.msk.f32.mxu0 %vm26382_vm1, %v28811_v24  ;;  %24572 = vmatprep.subr.mxu0 %v28811_v24 }
0x13b1   :  { %24589 = vmatprep.mubr.msk.f32.mxu1 %vm26382_vm1, %v28811_v24  ;;  %24597 = vmatprep.subr.mxu1 %v28811_v24 }
0x13b2   :  { %24565 = vmatmul.mubr.f32.vlgmr.msra.gmra.mrb[66].mxu0 %v27811_v32  ;;  %24590 = vmatmul.mubr.f32.vlgmr.msra.gmra.mrb[92].mxu1 %v27847_v25 }
0x13b3   :  { %24573 = vmatpush3.xpose.msra.mxu0 %v28836_v57  ;;  %24598 = vmatpush3.xpose.msra.mxu1 %v28836_v57 }
0x13b4   :  { %24574 = vmatprep.mubr.msk.f32.mxu0 %vm26382_vm1, %v28811_v24  ;;  %24582 = vmatprep.subr.mxu0 %v28811_v24 }
0x13b5   :  { %24599 = vmatprep.mubr.msk.f32.mxu1 %vm26382_vm1, %v28811_v24  ;;  %24632 = vmatprep.subr.mxu1 %v28811_v24 }
0x13b6   :  { %24575 = vmatmul.mubr.f32.vlgmr.msra.gmra.mrb[68].mxu0 %v27871_v41  ;;  %24600 = vmatmul.mubr.f32.vlgmr.msra.gmra.mrb[94].mxu1 %v27821_v60 }
0x13b7   :  { %24583 = vmatpush3.xpose.msra.mxu0 %v28837_v12  ;;  %24633 = vmatpush3.msra.mxu1 %v27055_v39 }
0x13b8   :  { %24584 = vmatprep.mubr.msk.f32.mxu0 %vm26382_vm1, %v28811_v24  ;;  %24592 = vmatprep.subr.mxu0 %v28811_v24 }
0x13b9   :  { %24634 = vmatprep.mubr.msk.f32.mxu1 %vm26382_vm1, %v28811_v24  ;;  %24637 = vmatprep.subr.mxu1 %v28811_v24 }
0x13ba   :  { %24585 = vmatmul.mubr.f32.vlgmr.msra.gmra.mrb[70].mxu0 %v27834_v1 }
0x13bb   :  { %24593 = vmatpush3.xpose.msra.mxu0 %v28838_v11  ;;  %24594 = vmatprep.mubr.msk.f32.mxu0 %vm26382_vm1, %v28811_v24 }
0x13bc   :  { %24602 = vmatprep.subr.mxu0 %v28811_v24 }
0x13be   :  { %24595 = vmatmul.mubr.f32.vlgmr.msra.gmra.mrb[72].mxu0 %v27821_v60 }
0x13bf   :  { %24603 = vmatpush3.msra.mxu0 %v27036_v29  ;;  %24604 = vmatprep.mubr.msk.f32.mxu0 %vm26382_vm1, %v28811_v24 }
0x13c0   :  { %24607 = vmatprep.subr.mxu0 %v28811_v24 }
0x1475   :  { %v11574_v46 = vpop.f32.mrb[84].mxu1 }
0x1476   :  { %v24551_v36 = vpop.f32.mrb[85].mxu1 }
0x1479   :  { %v11722_v34 = vpop.f32.mrb[86].mxu1 }
0x147a   :  { %v24561_v47 = vpop.f32.mrb[87].mxu1 }
0x147d   :  { %v11498_v12 = vpop.f32.mrb[62].mxu0  ;;  %v11868_v11 = vpop.f32.mrb[88].mxu1 }
0x147e   :  { %v11575_v57 = vadd.f32 %v11574_v46, %v11498_v12  ;;  %v24546_v59 = vpop.f32.mrb[63].mxu0  ;;  %v24571_v8 = vpop.f32.mrb[89].mxu1 }
0x1481   :  { %v11648_v38 = vpop.f32.mrb[64].mxu0  ;;  %v12028_v10 = vpop.f32.mrb[90].mxu1 }
0x1482   :  { %v11649_v62 = vadd.f32 %v11648_v38, %v11575_v57  ;;  %v24556_v48 = vpop.f32.mrb[65].mxu0  ;;  %v24581_v27 = vpop.f32.mrb[91].mxu1 }
0x1484   :  { %v11723_v51 = vadd.f32 %v11722_v34, %v11649_v62 }
0x1485   :  { %v11796_v56 = vpop.f32.mrb[66].mxu0  ;;  %v12176_v18 = vpop.f32.mrb[92].mxu1 }
0x1486   :  { %v11797_v52 = vadd.f32 %v11796_v56, %v11723_v51  ;;  %v24566_v5 = vpop.f32.mrb[67].mxu0  ;;  %v24591_v37 = vpop.f32.mrb[93].mxu1 }
0x1488   :  { %v11869_v13 = vadd.f32 %v11868_v11, %v11797_v52 }
0x1489   :  { %v11952_v36 = vpop.f32.mrb[68].mxu0  ;;  %v12322_v14 = vpop.f32.mrb[94].mxu1 }
0x148a   :  { %v12029_v47 = vadd.f32 %v12028_v10, %v11952_v36  ;;  %v24576_v20 = vpop.f32.mrb[69].mxu0  ;;  %v24601_v28 = vpop.f32.mrb[95].mxu1  ;;  %v12326_v56 = vadd.f32 %v11869_v13, %v27052_v16 }
0x148d   :  { %v12102_v12 = vpop.f32.mrb[70].mxu0 }
0x148e   :  { %v12103_v59 = vadd.f32 %v12102_v12, %v12029_v47  ;;  %v24586_v8 = vpop.f32.mrb[71].mxu0 }
0x1490   :  { %v12177_v46 = vadd.f32 %v12176_v18, %v12103_v59 }
0x1491   :  { %v12250_v49 = vpop.f32.mrb[72].mxu0 }
0x1492   :  { %v12251_v38 = vadd.f32 %v12250_v49, %v12177_v46  ;;  %v24596_v48 = vpop.f32.mrb[73].mxu0 }
0x1494   :  { %v12323_v27 = vadd.f32 %v12322_v14, %v12251_v38 }
0x1496   :  { %v12327_v62 = vadd.f32 %v12323_v27, %v27048_v3 }
0x1498   :  { %v12330_v5 = vrot.slane %v12327_v62, 7 }
0x149a   :  { %v12331_v52 = vsel %vm3717_vm4, %v12330_v5, %v12326_v56 }
0x149b   :  { %v12333_v37 = vsel %vm3720_vm5, %v12331_v52, -inf }
0x149c   :  { %12334 = vmax.xlane.f32.xlu1 %v12333_v37 }
0x1529   :  { %v12335_v20 = vpop.xlane.xlu1 %12334 }
0x152a   :  { %v12337_v28 = vrot.slane %v12335_v20, 1  ;;  %v12340_v51 = vsub.f32 %v12326_v56, %v12335_v20 }
0x152c   :  { %v12341_v10 = vsub.f32 %v12327_v62, %v12337_v28  ;;  %v12342_v57 = vmul.f32 1.442695, %v12340_v51 }
0x152e   :  { %26214 = vpow2.f32 %v12342_v57  ;;  %v12344_v18 = vmul.f32 1.442695, %v12341_v10 }
0x1530   :  { %26216 = vpow2.f32 %v12344_v18 }
0x1538   :  { %v26215_v49 = vpop.eup %26214 }
0x1539   :  { %v12347_v14 = vsel %vm1756_vm2, %v26215_v49, 0 }
0x153a   :  { %v26217_v11 = vpop.eup %26216  ;;  %v12415_v34 = vand.u32 4294901760, %v12347_v14 }
0x153b   :  { %v12796_v13 = vsel %vm1756_vm2, %v26217_v11, 0 }
0x153c   :  { %v12416_v36 = vsub.f32 %v12347_v14, %v12415_v34  ;;  %v12864_v47 = vand.u32 4294901760, %v12796_v13 }
0x153e   :  { %v12417_v12 = vand.u32 4294901760, %v12416_v36  ;;  %v12865_v59 = vsub.f32 %v12796_v13, %v12864_v47 }
0x1540   :  { %v12418_v8 = vsub.f32 %v12416_v36, %v12417_v12  ;;  %v12866_v46 = vand.u32 4294901760, %v12865_v59 }
0x1542   :  { %v12419_v38 = vand.u32 4294901760, %v12418_v8  ;;  %v12867_v48 = vsub.f32 %v12865_v59, %v12866_v46 }
0x1544   :  { %24605 = vmatmul.mubr.f32.vlgmr.msra.gmra.mrb[74].mxu0 %v12419_v38  ;;  %v12868_v27 = vand.u32 4294901760, %v12867_v48 }
0x1545   :  { %24608 = vmatpush3.msra.mxu0 %v27087_v43  ;;  %24609 = vmatprep.mubr.msk.f32.mxu0 %vm26382_vm1, %v28811_v24 }
0x1546   :  { %24635 = vmatmul.mubr.f32.vlgmr.msra.gmra.mrb[96].mxu1 %v12868_v27  ;;  %24612 = vmatprep.subr.mxu0 %v28811_v24 }
0x1547   :  { %24638 = vmatpush3.msra.mxu1 %v27090_v33  ;;  %24639 = vmatprep.mubr.msk.f32.mxu1 %vm26382_vm1, %v28811_v24 }
0x1548   :  { %24642 = vmatprep.subr.mxu1 %v28811_v24 }
0x154c   :  { %24610 = vmatmul.mubr.f32.vlgmr.msra.gmra.mrb[74].mxu0 %v12415_v34 }
0x154d   :  { %24613 = vmatpush3.msra.mxu0 %v27064_v15  ;;  %24614 = vmatprep.mubr.msk.f32.mxu0 %vm26382_vm1, %v28811_v24 }
0x154e   :  { %24640 = vmatmul.mubr.f32.vlgmr.msra.gmra.mrb[96].mxu1 %v12864_v47  ;;  %24617 = vmatprep.subr.mxu0 %v28811_v24 }
0x154f   :  { %24643 = vmatpush3.msra.mxu1 %v27067_v7  ;;  %24644 = vmatprep.mubr.msk.f32.mxu1 %vm26382_vm1, %v28811_v24 }
0x1550   :  { %24647 = vmatprep.subr.mxu1 %v28811_v24 }
0x1554   :  { %24615 = vmatmul.mubr.f32.vlgmr.msra.gmra.mrb[74].mxu0 %v12416_v36 }
0x1555   :  { %24618 = vmatpush3.msra.mxu0 %v27036_v29  ;;  %24619 = vmatprep.mubr.msk.f32.mxu0 %vm26382_vm1, %v28811_v24 }
0x1556   :  { %24645 = vmatmul.mubr.f32.vlgmr.msra.gmra.mrb[96].mxu1 %v12865_v59  ;;  %24622 = vmatprep.subr.mxu0 %v28811_v24 }
0x1557   :  { %24648 = vmatpush3.msra.mxu1 %v27055_v39  ;;  %24649 = vmatprep.mubr.msk.f32.mxu1 %vm26382_vm1, %v28811_v24 }
0x1558   :  { %24652 = vmatprep.subr.mxu1 %v28811_v24 }
0x155c   :  { %24620 = vmatmul.mubr.f32.vlgmr.msra.gmra.mrb[74].mxu0 %v12417_v12 }
0x155d   :  { %24623 = vmatpush3.msra.mxu0 %v27073_v35  ;;  %24624 = vmatprep.mubr.msk.f32.mxu0 %vm26382_vm1, %v28811_v24 }
0x155e   :  { %24650 = vmatmul.mubr.f32.vlgmr.msra.gmra.mrb[96].mxu1 %v12866_v46  ;;  %24627 = vmatprep.subr.mxu0 %v28811_v24 }
0x155f   :  { %24653 = vmatpush3.msra.mxu1 %v27080_v63  ;;  %24654 = vmatprep.mubr.msk.f32.mxu1 %vm26382_vm1, %v28811_v24 }
0x1560   :  { %24657 = vmatprep.subr.mxu1 %v28811_v24 }
0x1564   :  { %24625 = vmatmul.mubr.f32.vlgmr.msra.gmra.mrb[74].mxu0 %v12415_v34 }
0x1565   :  { %24628 = vmatpush3.msra.mxu0 %v27036_v29  ;;  %24629 = vmatprep.mubr.msk.f32.mxu0 %vm26382_vm1, %v28811_v24 }
0x1566   :  { %24655 = vmatmul.mubr.f32.vlgmr.msra.gmra.mrb[96].mxu1 %v12864_v47  ;;  %25730 = vmatprep.subr.bf16.mxu0 %v28800_v53 }
0x1567   :  { %24658 = vmatpush3.msra.mxu1 %v27055_v39  ;;  %24659 = vmatprep.mubr.msk.f32.mxu1 %vm26382_vm1, %v28811_v24 }
0x1568   :  { %25733 = vmatprep.subr.bf16.mxu1 %v28800_v53 }
0x156c   :  { %24630 = vmatmul.mubr.f32.vlgmr.msra.gmra.mrb[74].mxu0 %v12415_v34 }
0x156d   :  { %25732 = vmatpush3.bf16.xpose.msra.mxu0 %v27146_v30  ;;  %24666 = vmatprep.mubr.msk.f32.mxu0 %vm26382_vm1, %v28811_v24 }
0x156e   :  { %24660 = vmatmul.mubr.f32.vlgmr.msra.gmra.mrb[96].mxu1 %v12864_v47  ;;  %25736 = vmatprep.subr.bf16.mxu0 %v28800_v53 }
0x156f   :  { %25735 = vmatpush3.bf16.xpose.msra.mxu1 %v27150_v19  ;;  %24673 = vmatprep.mubr.msk.f32.mxu1 %vm26382_vm1, %v28811_v24 }
0x1570   :  { %25739 = vmatprep.subr.bf16.mxu1 %v28800_v53 }
0x1574   :  { %24667 = vmatmul.mubr.f32.vlgmr.msra.gmra.mrb[76].mxu0 %v27837_v45 }
0x1575   :  { %25738 = vmatpush3.bf16.xpose.msra.mxu0 %v27163_v4  ;;  %24680 = vmatprep.mubr.msk.f32.mxu0 %vm26382_vm1, %v28811_v24 }
0x1576   :  { %24674 = vmatmul.mubr.f32.vlgmr.msra.gmra.mrb[98].mxu1 %v27811_v32  ;;  %25742 = vmatprep.subr.bf16.mxu0 %v28800_v53 }
0x1577   :  { %25741 = vmatpush3.bf16.xpose.msra.mxu1 %v27146_v30  ;;  %24687 = vmatprep.mubr.msk.f32.mxu1 %vm26382_vm1, %v28811_v24 }
0x1578   :  { %25745 = vmatprep.subr.bf16.mxu1 %v28800_v53 }
0x157c   :  { %24681 = vmatmul.mubr.f32.vlgmr.msra.gmra.mrb[78].mxu0 %v27814_v2 }
0x157d   :  { %25744 = vmatpush3.bf16.xpose.msra.mxu0 %v27176_v40  ;;  %24694 = vmatprep.mubr.msk.f32.mxu0 %vm26382_vm1, %v28811_v24 }
0x157e   :  { %24688 = vmatmul.mubr.f32.vlgmr.msra.gmra.mrb[100].mxu1 %v27825_v50  ;;  %25748 = vmatprep.subr.bf16.mxu0 %v28800_v53 }
0x157f   :  { %25747 = vmatpush3.bf16.xpose.msra.mxu1 %v27146_v30  ;;  %24701 = vmatprep.mubr.msk.f32.mxu1 %vm26382_vm1, %v28811_v24 }
0x1580   :  { %25751 = vmatprep.subr.bf16.mxu1 %v28800_v53 }
0x1584   :  { %24695 = vmatmul.mubr.f32.vlgmr.msra.gmra.mrb[80].mxu0 %v27811_v32 }
0x1585   :  { %25750 = vmatpush3.bf16.xpose.msra.mxu0 %v27188_v0  ;;  %24708 = vmatprep.mubr.msk.f32.mxu0 %vm26382_vm1, %v28811_v24 }
0x1586   :  { %24702 = vmatmul.mubr.f32.vlgmr.msra.gmra.mrb[102].mxu1 %v27811_v32  ;;  %25754 = vmatprep.subr.bf16.mxu0 %v28800_v53 }
0x1587   :  { %25753 = vmatpush3.bf16.xpose.msra.mxu1 %v27192_v23  ;;  %24715 = vmatprep.mubr.msk.f32.mxu1 %vm26382_vm1, %v28811_v24 }
0x1588   :  { %25757 = vmatprep.subr.bf16.mxu1 %v28800_v53 }
0x158c   :  { %24709 = vmatmul.mubr.f32.vlgmr.msra.gmra.mrb[82].mxu0 %v27871_v41 }
0x158d   :  { %25756 = vmatpush3.bf16.xpose.msra.mxu0 %v27203_v54  ;;  %24722 = vmatprep.mubr.msk.f32.mxu0 %vm26382_vm1, %v28811_v24 }
0x158e   :  { %24716 = vmatmul.mubr.f32.vlgmr.msra.gmra.mrb[104].mxu1 %v27821_v60  ;;  %25760 = vmatprep.subr.bf16.mxu0 %v28800_v53 }
0x158f   :  { %25759 = vmatpush3.bf16.xpose.msra.mxu1 %v27188_v0  ;;  %24729 = vmatprep.mubr.msk.f32.mxu1 %vm26382_vm1, %v28811_v24 }
0x1590   :  { %25763 = vmatprep.subr.bf16.mxu1 %v28800_v53 }
0x1594   :  { %24723 = vmatmul.mubr.f32.vlgmr.msra.gmra.mrb[84].mxu0 %v27834_v1 }
0x1595   :  { %25762 = vmatpush3.bf16.xpose.msra.mxu0 %v27216_v42  ;;  %24736 = vmatprep.mubr.msk.f32.mxu0 %vm26382_vm1, %v28811_v24 }
0x1596   :  { %24730 = vmatmul.mubr.f32.vlgmr.msra.gmra.mrb[106].mxu1 %v27847_v25  ;;  %24746 = vmatprep.subr.mxu0 %v28811_v24 }
0x1597   :  { %25765 = vmatpush3.bf16.xpose.msra.mxu1 %v27188_v0  ;;  %24743 = vmatprep.mubr.msk.f32.mxu1 %vm26382_vm1, %v28811_v24 }
0x1598   :  { %24776 = vmatprep.subr.mxu1 %v28811_v24 }
0x159c   :  { %24737 = vmatmul.mubr.f32.vlgmr.msra.gmra.mrb[86].mxu0 %v27821_v60 }
0x159d   :  { %24747 = vmatpush3.msra.mxu0 %v27229_v9  ;;  %24748 = vmatprep.mubr.msk.f32.mxu0 %vm26382_vm1, %v28811_v24 }
0x159e   :  { %24744 = vmatmul.mubr.f32.vlgmr.msra.gmra.mrb[108].mxu1 %v27821_v60  ;;  %24751 = vmatprep.subr.mxu0 %v28811_v24 }
0x159f   :  { %24777 = vmatpush3.msra.mxu1 %v27233_v44  ;;  %24778 = vmatprep.mubr.msk.f32.mxu1 %vm26382_vm1, %v28811_v24 }
0x15a0   :  { %24781 = vmatprep.subr.mxu1 %v28811_v24 }
0x163f   :  { %v12791_v32 = vpop.f32.mrb[74].mxu0 }
0x1640   :  { %26218 = vrcp.f32 %v12791_v32  ;;  %v24631_v2 = vpop.f32.mrb[75].mxu0 }
0x1641   :  { %v13240_v50 = vpop.f32.mrb[96].mxu1 }
0x1642   :  { %26220 = vrcp.f32 %v13240_v50  ;;  %v24661_v1 = vpop.f32.mrb[97].mxu1 }
0x1647   :  { %v13325_v45 = vpop.f32.mrb[76].mxu0 }
0x1648   :  { %v24668_v25 = vpop.f32.mrb[77].mxu0 }
0x1649   :  { %v13406_v41 = vpop.f32.mrb[98].mxu1 }
0x164a   :  { %v26219_v62 = vpop.eup %26218  ;;  %v13407_v60 = vadd.f32 %v13406_v41, %v13325_v45  ;;  %v24675_v56 = vpop.f32.mrb[99].mxu1 }
0x164b   :  { %v13246_v52 = vmul.f32 %v26219_v62, %v12791_v32 }
0x164c   :  { %v26221_v5 = vpop.eup %26220 }
0x164d   :  { %v13247_v37 = vmul.f32 %v26221_v5, %v13240_v50  ;;  %v13248_v57 = vsub.f32 2.0, %v13246_v52 }
0x164f   :  { %v13249_v20 = vsub.f32 2.0, %v13247_v37  ;;  %v13482_v28 = vpop.f32.mrb[78].mxu0  ;;  %v13250_v34 = vmul.f32 %v26219_v62, %v13248_v57 }
0x1650   :  { %v13483_v51 = vadd.f32 %v13482_v28, %v13407_v60  ;;  %v24682_v10 = vpop.f32.mrb[79].mxu0 }
0x1651   :  { %v13557_v18 = vpop.f32.mrb[100].mxu1  ;;  %v13251_v49 = vmul.f32 %v26221_v5, %v13249_v20 }
0x1652   :  { %v13558_v14 = vadd.f32 %v13557_v18, %v13483_v51  ;;  %v24689_v11 = vpop.f32.mrb[101].mxu1 }
0x1653   :  { %14177 = vperm.xlu0 %26168, %v13251_v49  }
0x1657   :  { %v13634_v13 = vpop.f32.mrb[80].mxu0  ;;  %14172 = vperm.xlu0 %26168, %v13250_v34  }
0x1658   :  { %v13635_v36 = vadd.f32 %v13634_v13, %v13558_v14  ;;  %v24696_v47 = vpop.f32.mrb[81].mxu0 }
0x1659   :  { %v13707_v12 = vpop.f32.mrb[102].mxu1  ;;  %v28839_v47 = vmax.f32 %v27289_v31, 0.0 }
0x165a   :  { %v13708_v59 = vadd.f32 %v13707_v12, %v13635_v36  ;;  %v24703_v8 = vpop.f32.mrb[103].mxu1 }
0x165b   :  { %26169 = vset.pattern.permute.xlu0 %v28812_v26  ;;  %v28017_v12 = vmax.f32 %v28839_v47, %v27698_v6 }
0x165f   :  { %v13784_v46 = vpop.f32.mrb[82].mxu0 }
0x1660   :  { %v24710_v38 = vpop.f32.mrb[83].mxu0 }
0x1661   :  { %v13865_v48 = vpop.f32.mrb[104].mxu1 }
0x1662   :  { %v13866_v27 = vadd.f32 %v13865_v48, %v13784_v46  ;;  %v24717_v2 = vpop.f32.mrb[105].mxu1 }
0x1667   :  { %v13941_v1 = vpop.f32.mrb[84].mxu0 }
0x1668   :  { %v13942_v45 = vadd.f32 %v13941_v1, %v13866_v27  ;;  %v24724_v25 = vpop.f32.mrb[85].mxu0 }
0x1669   :  { %v14016_v41 = vpop.f32.mrb[106].mxu1 }
0x166a   :  { %v14017_v60 = vadd.f32 %v14016_v41, %v13942_v45  ;;  %v24731_v62 = vpop.f32.mrb[107].mxu1 }
0x166f   :  { %v14093_v56 = vpop.f32.mrb[86].mxu0 }
0x1670   :  { %v14094_v5 = vadd.f32 %v14093_v56, %v14017_v60  ;;  %v24738_v52 = vpop.f32.mrb[87].mxu0 }
0x1671   :  { %v14166_v37 = vpop.f32.mrb[108].mxu1 }
0x1672   :  { %v14167_v20 = vadd.f32 %v14166_v37, %v14094_v5  ;;  %v24745_v28 = vpop.f32.mrb[109].mxu1 }
0x16d2   :  { %v14178_v51 = vpop.permute.xlu0 %14177 }
0x16d3   :  { %v14181_v10 = vmul.f32 %v14178_v51, %v13240_v50 }
0x16d5   :  { %v14183_v57 = vadd.f32 %v14181_v10, %v14167_v20 }
0x16d6   :  { %v14173_v18 = vpop.permute.xlu0 %14172 }
0x16d7   :  { %v14180_v49 = vmul.f32 %v14173_v18, %v12791_v32  ;;  %v14185_v14 = vadd.f32 %v14183_v57, %v27263_v55 }
0x16d9   :  { %v14182_v11 = vadd.f32 %v14180_v49, %v13708_v59  ;;  %14192 = vperm.xlu0 %26169, %v14185_v14  }
0x16db   :  { %v14184_v34 = vadd.f32 %v14182_v11, %v27267_v22 }
0x16dd   :  { %14188 = vperm.xlu0 %26169, %v14184_v34  }
0x16e1   :  { %26170 = vset.pattern.permute.xlu0 %v28813_v21 }
0x1758   :  { %v14193_v13 = vpop.permute.xlu0 %14192 }
0x1759   :  { %v14194_v36 = vrot.slane %v14193_v13, 7 }
0x175c   :  { %v14189_v50 = vpop.permute.xlu0 %14188 }
0x175d   :  { %v14195_v8 = vsel %vm3717_vm4, %v14194_v36, %v14189_v50 }
0x175e   :  { %v14197_v32 = vmul.f32 %v14195_v8, %v28017_v12 }
0x1760   :  { %v14199_v46 = vrot.slane %v14197_v32, 1  ;;  %v28023_v38 = vadd.f32 %v14197_v32, %v14184_v34 }
0x1762   :  { %v28021_v59 = vadd.f32 %v14199_v46, %v14185_v14  ;;  %28841 = vst [vmem:[#allocation43_spill] sm:$0xff] %v28023_v38 }
0x1764   :  { %28840 = vst [vmem:[#allocation40_spill] sm:$0xff] %v28021_v59  ;;  %v14206_v48 = vrot.slane %v28021_v59, 7 }
0x1766   :  { %v14207_v27 = vsel %vm3717_vm4, %v14206_v48, %v28023_v38 }
0x1767   :  { %v14209_v2 = vsel %vm3720_vm5, %v14207_v27, -inf }
0x1768   :  { %14210 = vmax.xlane.f32.xlu0 %v14209_v2 }
0x17f5   :  { %v14211_v31 = vpop.xlane.xlu0 %14210 }
0x17f6   :  { %v14213_v6 = vrot.slane %v14211_v31, 1  ;;  %vm14216_vm15 = vcmp.eq.f32.partialorder %v28023_v38, %v14211_v31 }
0x17f7   :  { %v14218_v25 = vsel %vm14216_vm15, %v28816_v61, 8 }
0x17f8   :  { %vm14217_vm3 = vcmp.eq.f32.partialorder %v28021_v59, %v14213_v6 }
0x17f9   :  { %v14219_v1 = vsel %vm14217_vm3, %v28816_v61, 8 }
0x17fa   :  { %v14220_v45 = vrot.slane %v14219_v1, 7  ;;  %v28842_v1 = vld [vmem:[#allocation29_spill] sm:$0xff] }
0x17fc   :  { %v14221_v41 = vsel %vm3717_vm4, %v14220_v45, %v14218_v25  ;;  %v28843_v45 = vld [vmem:[#allocation30_spill] sm:$0xff]  ;;  %v28844_v25 = vld [vmem:[#allocation25_spill] sm:$0xff] }
0x17fd   :  { %v14222_v60 = vsel %vm3720_vm5, %v14221_v41, 2147483647  ;;  %v28845_v41 = vld [vmem:[#allocation26_spill] sm:$0xff] }
0x17fe   :  { %v14224_v62 = vshra.s32 %v14222_v60, 16  ;;  %v14223_v5 = vand.u32 65535, %v14222_v60 }
0x1800   :  { %v14226_v56 = vcvt.s32.f32 %v14224_v62  ;;  %v14225_v37 = vcvt.s32.f32 %v14223_v5  ;;  %v28846_v62 = vld [vmem:[#allocation27_spill] sm:$0xff]  ;;  %v28847_v5 = vld [vmem:[#allocation28_spill] sm:$0xff] }
0x1802   :  { %14227 = vmin.xlane.f32.xlu1 %v14226_v56 }
0x188f   :  { %v14228_v52 = vpop.xlane.xlu1 %14227 }
0x1890   :  { %vm14229_vm6 = vcmp.eq.f32.partialorder %v14226_v56, %v14228_v52  ;;  %v14234_v28 = vcvt.f32.s32 %v14228_v52 }
0x1891   :  { %v14230_v20 = vsel %vm14229_vm6, %v14225_v37, inf }
0x1892   :  { %14231 = vmin.xlane.f32.xlu1 %v14230_v20  ;;  %v14235_v10 = vshll.u32 %v14234_v28, 16  ;;  %v28848_v28 = vld [vmem:[#allocation31_spill] sm:$0xff] }
0x18a3   :  { %15160 = vrot.lane.b32.xlu1 %v27800_v17, %s26379_s9 }
0x191f   :  { %v14232_v51 = vpop.xlane.xlu1 %14231 }
0x1920   :  { %v14233_v57 = vcvt.f32.s32 %v14232_v51 }
0x1922   :  { %v14236_v18 = vadd.s32 %v14235_v10, %v14233_v57  ;;  %v28849_v10 = vld [vmem:[#allocation32_spill] sm:$0xff]  ;;  %v28850_v57 = vld [vmem:[#allocation33_spill] sm:$0xff] }
0x1923   :  { %v15161_v60 = vpop.permute.xlu1 %15160 }
0x1924   :  { %vm14237_vm7 = vcmp.eq.s32.totalorder %v28816_v61, %v14236_v18  ;;  %v15167_v56 = vsel %vm121_vm0, %v15161_v60, 0 }
0x1925   :  { %v28039_v49 = vsel %vm14237_vm7, 1.0, %v28811_v24  ;;  %v15238_v52 = vand.u32 4294901760, %v15167_v56 }
0x1926   :  { %v14248_v14 = vrot.slane %v28039_v49, %v26802_v58 }
0x1927   :  { %v15239_v37 = vsub.f32 %v15167_v56, %v15238_v52 }
0x1928   :  { %v14249_v11 = vcombine.high %v14248_v14, %v14248_v14  ;;  %v14256_v34 = vrot.slane %v14248_v14, %v26802_v58  ;;  %v28851_v14 = vld [vmem:[#allocation34_spill] sm:$0xff] }
0x1929   :  { %v15240_v20 = vand.u32 4294901760, %v15239_v37 }
0x192a   :  { %v14263_v13 = vrot.slane %v14249_v11, %v26802_v58  ;;  %v14264_v17 = vsel %vm1756_vm2, %v14256_v34, 0  ;;  %v28852_v11 = vld [vmem:[#allocation35_spill] sm:$0xff]  ;;  %v28853_v34 = vld [vmem:[#allocation36_spill] sm:$0xff] }
0x192b   :  { %v14332_v36 = vand.u32 4294901760, %v14264_v17  ;;  %v15241_v51 = vsub.f32 %v15239_v37, %v15240_v20 }
0x192c   :  { %v14712_v47 = vsel %vm1756_vm2, %v14263_v13, 0  ;;  %v28854_v13 = vld [vmem:[#allocation37_spill] sm:$0xff] }
0x192d   :  { %v14333_v50 = vsub.f32 %v14264_v17, %v14332_v36  ;;  %v14780_v8 = vand.u32 4294901760, %v14712_v47  ;;  %v15242_v18 = vand.u32 4294901760, %v15241_v51  ;;  %v28855_v17 = vld [vmem:[#allocation38_spill] sm:$0xff] }
0x192f   :  { %v14334_v32 = vand.u32 4294901760, %v14333_v50  ;;  %v14781_v46 = vsub.f32 %v14712_v47, %v14780_v8  ;;  %v28857_v47 = vld [vmem:[#allocation17_spill] sm:$0xff] }
0x1931   :  { %v14335_v48 = vsub.f32 %v14333_v50, %v14334_v32  ;;  %v14782_v27 = vand.u32 4294901760, %v14781_v46 }
0x1933   :  { %v14336_v2 = vand.u32 4294901760, %v14335_v48  ;;  %v14783_v31 = vsub.f32 %v14781_v46, %v14782_v27 }
0x1935   :  { %24749 = vmatmul.mubr.f32.vlgmr.msra.gmra.mrb[88].mxu0 %v14336_v2  ;;  %v14784_v6 = vand.u32 4294901760, %v14783_v31 }
0x1936   :  { %24752 = vmatpush3.msra.mxu0 %v28842_v1  ;;  %24753 = vmatprep.mubr.msk.f32.mxu0 %vm26382_vm1, %v28811_v24 }
0x1937   :  { %24779 = vmatmul.mubr.f32.vlgmr.msra.gmra.mrb[110].mxu1 %v14784_v6  ;;  %24756 = vmatprep.subr.mxu0 %v28811_v24 }
0x1938   :  { %24782 = vmatpush3.msra.mxu1 %v28843_v45  ;;  %24783 = vmatprep.mubr.msk.f32.mxu1 %vm26382_vm1, %v28811_v24 }
0x1939   :  { %24786 = vmatprep.subr.mxu1 %v28811_v24 }
0x193d   :  { %24754 = vmatmul.mubr.f32.vlgmr.msra.gmra.mrb[88].mxu0 %v14332_v36 }
0x193e   :  { %24757 = vmatpush3.msra.mxu0 %v28844_v25  ;;  %24758 = vmatprep.mubr.msk.f32.mxu0 %vm26382_vm1, %v28811_v24 }
0x193f   :  { %24784 = vmatmul.mubr.f32.vlgmr.msra.gmra.mrb[110].mxu1 %v14780_v8  ;;  %24761 = vmatprep.subr.mxu0 %v28811_v24 }
0x1940   :  { %24787 = vmatpush3.msra.mxu1 %v28845_v41  ;;  %24788 = vmatprep.mubr.msk.f32.mxu1 %vm26382_vm1, %v28811_v24 }
0x1941   :  { %24791 = vmatprep.subr.mxu1 %v28811_v24 }
0x1945   :  { %24759 = vmatmul.mubr.f32.vlgmr.msra.gmra.mrb[88].mxu0 %v14333_v50 }
0x1946   :  { %24762 = vmatpush3.msra.mxu0 %v27229_v9  ;;  %24763 = vmatprep.mubr.msk.f32.mxu0 %vm26382_vm1, %v28811_v24 }
0x1947   :  { %24789 = vmatmul.mubr.f32.vlgmr.msra.gmra.mrb[110].mxu1 %v14781_v46  ;;  %24766 = vmatprep.subr.mxu0 %v28811_v24 }
0x1948   :  { %24792 = vmatpush3.msra.mxu1 %v27233_v44  ;;  %24793 = vmatprep.mubr.msk.f32.mxu1 %vm26382_vm1, %v28811_v24 }
0x1949   :  { %24796 = vmatprep.subr.mxu1 %v28811_v24 }
0x194d   :  { %24764 = vmatmul.mubr.f32.vlgmr.msra.gmra.mrb[88].mxu0 %v14334_v32 }
0x194e   :  { %24767 = vmatpush3.msra.mxu0 %v28846_v62  ;;  %24768 = vmatprep.mubr.msk.f32.mxu0 %vm26382_vm1, %v28811_v24 }
0x194f   :  { %24794 = vmatmul.mubr.f32.vlgmr.msra.gmra.mrb[110].mxu1 %v14782_v27  ;;  %24771 = vmatprep.subr.mxu0 %v28811_v24 }
0x1950   :  { %24797 = vmatpush3.msra.mxu1 %v28847_v5  ;;  %24798 = vmatprep.mubr.msk.f32.mxu1 %vm26382_vm1, %v28811_v24 }
0x1951   :  { %24801 = vmatprep.subr.mxu1 %v28811_v24 }
0x1955   :  { %24769 = vmatmul.mubr.f32.vlgmr.msra.gmra.mrb[88].mxu0 %v14332_v36 }
0x1956   :  { %24772 = vmatpush3.msra.mxu0 %v27229_v9  ;;  %24773 = vmatprep.mubr.msk.f32.mxu0 %vm26382_vm1, %v28811_v24 }
0x1957   :  { %24799 = vmatmul.mubr.f32.vlgmr.msra.gmra.mrb[110].mxu1 %v14780_v8  ;;  %25766 = vmatprep.subr.bf16.mxu0 %v28800_v53 }
0x1958   :  { %24802 = vmatpush3.msra.mxu1 %v27233_v44  ;;  %24803 = vmatprep.mubr.msk.f32.mxu1 %vm26382_vm1, %v28811_v24 }
0x1959   :  { %25772 = vmatprep.subr.bf16.mxu1 %v28800_v53 }
0x195d   :  { %24774 = vmatmul.mubr.f32.vlgmr.msra.gmra.mrb[88].mxu0 %v14332_v36  ;;  %v28856_v36 = vld [vmem:[#allocation14_spill] sm:$0xff] }
0x195e   :  { %25768 = vmatpush3.bf16.msra.mxu0 %v28848_v28  ;;  %24814 = vmatprep.mubr.msk.f32.mxu0 %vm26382_vm1, %v28811_v24 }
0x195f   :  { %24804 = vmatmul.mubr.f32.vlgmr.msra.gmra.mrb[110].mxu1 %v14780_v8  ;;  %25769 = vmatprep.subr.bf16.mxu0 %v28800_v53 }
0x1960   :  { %25774 = vmatpush3.bf16.msra.mxu1 %v28849_v10  ;;  %24825 = vmatprep.mubr.msk.f32.mxu1 %vm26382_vm1, %v28811_v24 }
0x1961   :  { %25775 = vmatprep.subr.bf16.mxu1 %v28800_v53 }
0x1962   :  { %25771 = vmatpush3.bf16.msra.mxu0 %v28850_v57 }
0x1963   :  { %25778 = vmatprep.subr.bf16.mxu0 %v28800_v53 }
0x1964   :  { %25777 = vmatpush3.bf16.msra.mxu1 %v28851_v14 }
0x1965   :  { %24815 = vmatmul.mubr.f32.vlgmr.msra.gmra.mrb[90].mxu0 %v15242_v18  ;;  %25784 = vmatprep.subr.bf16.mxu1 %v28800_v53 }
0x1966   :  { %25780 = vmatpush3.bf16.msra.mxu0 %v28852_v11  ;;  %24836 = vmatprep.mubr.msk.f32.mxu0 %vm26382_vm1, %v28811_v24 }
0x1967   :  { %24826 = vmatmul.mubr.f32.vlgmr.msra.gmra.mrb[112].mxu1 %v15238_v52  ;;  %25781 = vmatprep.subr.bf16.mxu0 %v28800_v53 }
0x1968   :  { %25786 = vmatpush3.bf16.msra.mxu1 %v28848_v28  ;;  %24847 = vmatprep.mubr.msk.f32.mxu1 %vm26382_vm1, %v28811_v24 }
0x1969   :  { %25787 = vmatprep.subr.bf16.mxu1 %v28800_v53 }
0x196a   :  { %25783 = vmatpush3.bf16.msra.mxu0 %v28853_v34  ;;  %v28858_v34 = vld [vmem:[#allocation39_spill] sm:$0xff] }
0x196b   :  { %25790 = vmatprep.subr.bf16.mxu0 %v28800_v53 }
0x196c   :  { %25789 = vmatpush3.bf16.msra.mxu1 %v28850_v57 }
0x196d   :  { %24837 = vmatmul.mubr.f32.vlgmr.msra.gmra.mrb[92].mxu0 %v15239_v37  ;;  %25796 = vmatprep.subr.bf16.mxu1 %v28800_v53 }
0x196e   :  { %25792 = vmatpush3.bf16.msra.mxu0 %v28854_v13  ;;  %24858 = vmatprep.mubr.msk.f32.mxu0 %vm26382_vm1, %v28811_v24 }
0x196f   :  { %24848 = vmatmul.mubr.f32.vlgmr.msra.gmra.mrb[114].mxu1 %v15240_v20  ;;  %25793 = vmatprep.subr.bf16.mxu0 %v28800_v53 }
0x1970   :  { %25798 = vmatpush3.bf16.msra.mxu1 %v28848_v28  ;;  %24869 = vmatprep.mubr.msk.f32.mxu1 %vm26382_vm1, %v28811_v24 }
0x1971   :  { %25799 = vmatprep.subr.bf16.mxu1 %v28800_v53 }
0x1972   :  { %25795 = vmatpush3.bf16.msra.mxu0 %v28855_v17 }
0x1973   :  { %24872 = vmatprep.subr.mxu0 %v28811_v24 }
0x1974   :  { %25801 = vmatpush3.bf16.msra.mxu1 %v28850_v57 }
0x1975   :  { %24859 = vmatmul.mubr.f32.vlgmr.msra.gmra.mrb[94].mxu0 %v15238_v52  ;;  %24877 = vmatprep.subr.mxu1 %v28811_v24 }
0x1976   :  { %24874 = vmatprep.mubr.msk.f32.mxu0 %vm26382_vm1, %v28811_v24 }
0x1977   :  { %24870 = vmatmul.mubr.f32.vlgmr.msra.gmra.mrb[116].mxu1 %v15238_v52 }
0x1978   :  { %24879 = vmatprep.mubr.msk.f32.mxu1 %vm26382_vm1, %v28811_v24 }
0x197b   :  { %24873 = vmatpush3.xpose.msra.mxu0 %v28856_v36 }
0x197c   :  { %24882 = vmatprep.subr.mxu0 %v28811_v24 }
0x197d   :  { %24878 = vmatpush3.xpose.msra.mxu1 %v28857_v47 }
0x197e   :  { %24887 = vmatprep.subr.mxu1 %v28811_v24 }
0x1a30   :  { %v14708_v50 = vpop.f32.mrb[88].mxu0 }
0x1a31   :  { %v24775_v8 = vpop.f32.mrb[89].mxu0 }
0x1a32   :  { %v15156_v32 = vpop.f32.mrb[110].mxu1 }
0x1a33   :  { %v15164_v46 = vrot.slane %v15156_v32, 7  ;;  %v24805_v48 = vpop.f32.mrb[111].mxu1 }
0x1a35   :  { %v15165_v27 = vsel %vm3717_vm4, %v15164_v46, %v14708_v50 }
0x1a38   :  { %v15244_v2 = vpop.f32.mrb[90].mxu0 }
0x1a39   :  { %v15245_v31 = vadd.f32 %v15244_v2, %v15165_v27  ;;  %v24816_v6 = vpop.f32.mrb[91].mxu0 }
0x1a3a   :  { %v15335_v60 = vpop.f32.mrb[112].mxu1 }
0x1a3b   :  { %v15336_v56 = vadd.f32 %v15335_v60, %v15245_v31  ;;  %v24827_v52 = vpop.f32.mrb[113].mxu1 }
0x1a40   :  { %v15415_v37 = vpop.f32.mrb[92].mxu0 }
0x1a41   :  { %v15416_v20 = vadd.f32 %v15415_v37, %v15336_v56  ;;  %v24838_v51 = vpop.f32.mrb[93].mxu0 }
0x1a42   :  { %v15492_v18 = vpop.f32.mrb[114].mxu1 }
0x1a43   :  { %v15493_v59 = vadd.f32 %v15492_v18, %v15416_v20  ;;  %v24849_v38 = vpop.f32.mrb[115].mxu1 }
0x1a48   :  { %v15575_v47 = vpop.f32.mrb[94].mxu0 }
0x1a49   :  { %v15576_v17 = vadd.f32 %v15575_v47, %v15493_v59  ;;  %v24860_v8 = vpop.f32.mrb[95].mxu0  ;;  %v28859_v59 = vld [vmem:[#allocation22_spill] sm:$0xff] }
0x1a4a   :  { %v15650_v13 = vpop.f32.mrb[116].mxu1  ;;  %v28861_v8 = vld [vmem:[#allocation13_spill] sm:$0xff] }
0x1a4b   :  { %v15651_v32 = vadd.f32 %v15650_v13, %v15576_v17  ;;  %v24871_v48 = vpop.f32.mrb[117].mxu1 }
0x1a4d   :  { %v15654_v50 = vadd.f32 %v15651_v32, %v28858_v34 }
0x1a4f   :  { %26222 = vtanh.f32 %v15654_v50  ;;  %v22817_v27 = vmul.f32 -1.442695, %v15654_v50 }
0x1a51   :  { %26224 = vpow2.f32 %v22817_v27 }
0x1a59   :  { %v26223_v46 = vpop.eup %26222 }
0x1a5a   :  { %15664 = vrot.lane.b32.xlu0 %v26223_v46, %s26378_s5 }
0x1a5b   :  { %v26225_v2 = vpop.eup %26224 }
0x1a5c   :  { %v15658_v31 = vadd.f32 1.0, %v26225_v2 }
0x1a5e   :  { %26226 = vrcp.f32 %v15658_v31 }
0x1a68   :  { %v26227_v6 = vpop.eup %26226 }
0x1a69   :  { %v15662_v47 = vmul.f32 %v26227_v6, %v28859_v59 }
0x1acc   :  { %v15665_v60 = vpop.permute.xlu0 %15664 }
0x1acd   :  { %v15667_v38 = vmul.f32 %v26227_v6, %v15665_v60 }
0x1acf   :  { %15669 = vrot.lane.b32.xlu1 %v15667_v38, %s26379_s9 }
0x1b41   :  { %v15670_v13 = vpop.permute.xlu1 %15669 }
0x1b42   :  { %v28137_v17 = vadd.f32 %v15670_v13, %v15662_v47 }
0x1b44   :  { %28860 = vst [vmem:[#allocation22_spill] sm:$0xff] %v28137_v17  ;;  %26228 = vtanh.f32 %v28137_v17 }
0x1b4e   :  { %v26229_v56 = vpop.eup %26228 }
0x1b4f   :  { %15675 = vrot.lane.b32.xlu1 %v26229_v56, %s26378_s5 }
0x1bc1   :  { %v15676_v52 = vpop.permute.xlu1 %15675 }
0x1bc2   :  { %v28141_v37 = vmul.f32 %v26227_v6, %v15676_v52  ;;  %v28862_v52 = vld [vmem:[#allocation15_spill] sm:$0xff] }
0x1bc4   :  { %v15686_v20 = vrot.slane %v28141_v37, %v26802_v58 }
0x1bc6   :  { %v15687_v51 = vcombine.high %v15686_v20, %v15686_v20  ;;  %v15694_v18 = vrot.slane %v15686_v20, %v26802_v58  ;;  %v28863_v20 = vld [vmem:[#allocation21_spill] sm:$0xff] }
0x1bc8   :  { %v15705_v32 = vrot.slane %v15694_v18, %v28861_v8  ;;  %v15701_v48 = vrot.slane %v15687_v51, %v26802_v58  ;;  %v28864_v18 = vld [vmem:[#allocation16_spill] sm:$0xff] }
0x1bca   :  { %15706 = vrot.lane.b32.xlu1 %v15705_v32, %s26379_s9  ;;  %v16159_v50 = vrot.slane %v15701_v48, %v28861_v8  ;;  %v28865_v32 = vld [vmem:[#allocation18_spill] sm:$0xff] }
0x1bce   :  { %16160 = vrot.lane.b32.xlu1 %v16159_v50, %s26379_s9 }
0x1c3c   :  { %v15707_v46 = vpop.permute.xlu1 %15706 }
0x1c3d   :  { %v15708_v27 = vsel %vm121_vm0, %v15707_v46, 0  ;;  %v28866_v46 = vld [vmem:[#allocation19_spill] sm:$0xff] }
0x1c3e   :  { %v28152_v2 = vand.u32 4294901760, %v15708_v27 }
0x1c40   :  { %v28155_v31 = vsub.f32 %v15708_v27, %v28152_v2  ;;  %24880 = vmatmul.mubr.f32.vlgmr.msra.gmra.mrb[118].mxu1 %v28152_v2  ;;  %v16161_v6 = vpop.permute.xlu1 %16160  ;;  %v28867_v27 = vld [vmem:[#allocation20_spill] sm:$0xff] }
0x1c41   :  { %24888 = vmatpush3.xpose.msra.mxu1 %v28856_v36  ;;  %v16162_v60 = vsel %vm121_vm0, %v16161_v6, 0  ;;  %24889 = vmatprep.mubr.msk.f32.mxu1 %vm26382_vm1, %v28811_v24 }
0x1c42   :  { %v28162_v38 = vand.u32 4294901760, %v16162_v60  ;;  %24897 = vmatprep.subr.mxu1 %v28811_v24  ;;  %v28166_v59 = vand.u32 4294901760, %v28155_v31 }
0x1c44   :  { %24890 = vmatmul.mubr.f32.vlgmr.msra.gmra.mrb[120].mxu1 %v28166_v59  ;;  %v15779_v47 = vsub.f32 %v28155_v31, %v28166_v59  ;;  %v28175_v13 = vsub.f32 %v16162_v60, %v28162_v38 }
0x1c45   :  { %24898 = vmatpush3.xpose.msra.mxu1 %v28856_v36  ;;  %24899 = vmatprep.mubr.msk.f32.mxu1 %vm26382_vm1, %v28811_v24 }
0x1c46   :  { %24907 = vmatprep.subr.mxu1 %v28811_v24  ;;  %v28178_v56 = vand.u32 4294901760, %v15779_v47  ;;  %v28188_v51 = vand.u32 4294901760, %v28175_v13 }
0x1c48   :  { %24875 = vmatmul.mubr.f32.vlgmr.msra.gmra.mrb[96].mxu0 %v28178_v56  ;;  %24900 = vmatmul.mubr.f32.vlgmr.msra.gmra.mrb[122].mxu1 %v28152_v2  ;;  %v16233_v48 = vsub.f32 %v28175_v13, %v28188_v51 }
0x1c49   :  { %24883 = vmatpush3.xpose.msra.mxu0 %v28862_v52  ;;  %24908 = vmatpush3.xpose.msra.mxu1 %v28863_v20 }
0x1c4a   :  { %24884 = vmatprep.mubr.msk.f32.mxu0 %vm26382_vm1, %v28811_v24  ;;  %24892 = vmatprep.subr.mxu0 %v28811_v24  ;;  %v28212_v50 = vand.u32 4294901760, %v16233_v48 }
0x1c4b   :  { %24909 = vmatprep.mubr.msk.f32.mxu1 %vm26382_vm1, %v28811_v24  ;;  %24917 = vmatprep.subr.mxu1 %v28811_v24 }
0x1c4c   :  { %24885 = vmatmul.mubr.f32.vlgmr.msra.gmra.mrb[98].mxu0 %v28155_v31  ;;  %24910 = vmatmul.mubr.f32.vlgmr.msra.gmra.mrb[124].mxu1 %v28162_v38 }
0x1c4d   :  { %24893 = vmatpush3.xpose.msra.mxu0 %v28864_v18  ;;  %24918 = vmatpush3.xpose.msra.mxu1 %v28865_v32 }
0x1c4e   :  { %24894 = vmatprep.mubr.msk.f32.mxu0 %vm26382_vm1, %v28811_v24  ;;  %24902 = vmatprep.subr.mxu0 %v28811_v24 }
0x1c4f   :  { %24919 = vmatprep.mubr.msk.f32.mxu1 %vm26382_vm1, %v28811_v24  ;;  %24927 = vmatprep.subr.mxu1 %v28811_v24 }
0x1c50   :  { %24895 = vmatmul.mubr.f32.vlgmr.msra.gmra.mrb[100].mxu0 %v28152_v2  ;;  %24920 = vmatmul.mubr.f32.vlgmr.msra.gmra.mrb[126].mxu1 %v28188_v51 }
0x1c51   :  { %24903 = vmatpush3.xpose.msra.mxu0 %v28865_v32  ;;  %24928 = vmatpush3.xpose.msra.mxu1 %v28865_v32 }
0x1c52   :  { %24904 = vmatprep.mubr.msk.f32.mxu0 %vm26382_vm1, %v28811_v24  ;;  %24912 = vmatprep.subr.mxu0 %v28811_v24 }
0x1c53   :  { %24929 = vmatprep.mubr.msk.f32.mxu1 %vm26382_vm1, %v28811_v24  ;;  %24962 = vmatprep.subr.mxu1 %v28811_v24 }
0x1c54   :  { %24905 = vmatmul.mubr.f32.vlgmr.msra.gmra.mrb[102].mxu0 %v28212_v50  ;;  %24930 = vmatmul.mubr.f32.vlgmr.msra.gmra.mrb[128].mxu1 %v28162_v38 }
0x1c55   :  { %24913 = vmatpush3.xpose.msra.mxu0 %v28866_v46  ;;  %24963 = vmatpush3.msra.mxu1 %v27055_v39 }
0x1c56   :  { %24914 = vmatprep.mubr.msk.f32.mxu0 %vm26382_vm1, %v28811_v24  ;;  %24922 = vmatprep.subr.mxu0 %v28811_v24 }
0x1c57   :  { %24964 = vmatprep.mubr.msk.f32.mxu1 %vm26382_vm1, %v28811_v24  ;;  %24967 = vmatprep.subr.mxu1 %v28811_v24 }
0x1c58   :  { %24915 = vmatmul.mubr.f32.vlgmr.msra.gmra.mrb[104].mxu0 %v28175_v13 }
0x1c59   :  { %24923 = vmatpush3.xpose.msra.mxu0 %v28867_v27  ;;  %24924 = vmatprep.mubr.msk.f32.mxu0 %vm26382_vm1, %v28811_v24 }
0x1c5a   :  { %24932 = vmatprep.subr.mxu0 %v28811_v24 }
0x1c5c   :  { %24925 = vmatmul.mubr.f32.vlgmr.msra.gmra.mrb[106].mxu0 %v28162_v38 }
0x1c5d   :  { %24933 = vmatpush3.msra.mxu0 %v27036_v29  ;;  %24934 = vmatprep.mubr.msk.f32.mxu0 %vm26382_vm1, %v28811_v24 }
0x1c5e   :  { %24937 = vmatprep.subr.mxu0 %v28811_v24 }
0x1d13   :  { %v15858_v6 = vpop.f32.mrb[118].mxu1 }
0x1d14   :  { %v24881_v60 = vpop.f32.mrb[119].mxu1 }
0x1d17   :  { %v16006_v47 = vpop.f32.mrb[120].mxu1 }
0x1d18   :  { %v24891_v48 = vpop.f32.mrb[121].mxu1 }
0x1d1b   :  { %v15782_v46 = vpop.f32.mrb[96].mxu0  ;;  %v16152_v27 = vpop.f32.mrb[122].mxu1 }
0x1d1c   :  { %v15859_v32 = vadd.f32 %v15858_v6, %v15782_v46  ;;  %v24876_v18 = vpop.f32.mrb[97].mxu0  ;;  %v24901_v20 = vpop.f32.mrb[123].mxu1 }
0x1d1f   :  { %v15932_v52 = vpop.f32.mrb[98].mxu0  ;;  %v16312_v8 = vpop.f32.mrb[124].mxu1 }
0x1d20   :  { %v15933_v17 = vadd.f32 %v15932_v52, %v15859_v32  ;;  %v24886_v34 = vpop.f32.mrb[99].mxu0  ;;  %v24911_v36 = vpop.f32.mrb[125].mxu1 }
0x1d22   :  { %v16007_v11 = vadd.f32 %v16006_v47, %v15933_v17 }
0x1d23   :  { %v16080_v14 = vpop.f32.mrb[100].mxu0  ;;  %v16460_v57 = vpop.f32.mrb[126].mxu1 }
0x1d24   :  { %v16081_v10 = vadd.f32 %v16080_v14, %v16007_v11  ;;  %v24896_v28 = vpop.f32.mrb[101].mxu0  ;;  %v24921_v5 = vpop.f32.mrb[127].mxu1 }
0x1d26   :  { %v16153_v62 = vadd.f32 %v16152_v27, %v16081_v10 }
0x1d27   :  { %v16236_v60 = vpop.f32.mrb[102].mxu0  ;;  %v16606_v41 = vpop.f32.mrb[128].mxu1 }
0x1d28   :  { %v16313_v48 = vadd.f32 %v16312_v8, %v16236_v60  ;;  %v24906_v25 = vpop.f32.mrb[103].mxu0  ;;  %v24931_v45 = vpop.f32.mrb[129].mxu1  ;;  %v16610_v14 = vadd.f32 %v16153_v62, %v27052_v16 }
0x1d2b   :  { %v16386_v46 = vpop.f32.mrb[104].mxu0 }
0x1d2c   :  { %v16387_v18 = vadd.f32 %v16386_v46, %v16313_v48  ;;  %v24916_v20 = vpop.f32.mrb[105].mxu0 }
0x1d2e   :  { %v16461_v6 = vadd.f32 %v16460_v57, %v16387_v18 }
0x1d2f   :  { %v16534_v1 = vpop.f32.mrb[106].mxu0 }
0x1d30   :  { %v16535_v52 = vadd.f32 %v16534_v1, %v16461_v6  ;;  %v24926_v34 = vpop.f32.mrb[107].mxu0 }
0x1d32   :  { %v16607_v36 = vadd.f32 %v16606_v41, %v16535_v52 }
0x1d34   :  { %v16611_v17 = vadd.f32 %v16607_v36, %v27048_v3 }
0x1d36   :  { %v16614_v28 = vrot.slane %v16611_v17, 7 }
0x1d38   :  { %v16615_v5 = vsel %vm3717_vm4, %v16614_v28, %v16610_v14 }
0x1d39   :  { %v16617_v10 = vsel %vm3720_vm5, %v16615_v5, -inf }
0x1d3a   :  { %16618 = vmax.xlane.f32.xlu1 %v16617_v10 }
0x1dc7   :  { %v16619_v25 = vpop.xlane.xlu1 %16618 }
0x1dc8   :  { %v16621_v45 = vrot.slane %v16619_v25, 1  ;;  %v16624_v11 = vsub.f32 %v16610_v14, %v16619_v25 }
0x1dca   :  { %v16625_v8 = vsub.f32 %v16611_v17, %v16621_v45  ;;  %v16626_v32 = vmul.f32 1.442695, %v16624_v11 }
0x1dcc   :  { %26230 = vpow2.f32 %v16626_v32  ;;  %v16628_v57 = vmul.f32 1.442695, %v16625_v8 }
0x1dce   :  { %26232 = vpow2.f32 %v16628_v57 }
0x1dd6   :  { %v26231_v1 = vpop.eup %26230 }
0x1dd7   :  { %v16631_v41 = vsel %vm1756_vm2, %v26231_v1, 0 }
0x1dd8   :  { %v26233_v27 = vpop.eup %26232  ;;  %v16699_v47 = vand.u32 4294901760, %v16631_v41 }
0x1dd9   :  { %v17080_v62 = vsel %vm1756_vm2, %v26233_v27, 0 }
0x1dda   :  { %v16700_v60 = vsub.f32 %v16631_v41, %v16699_v47  ;;  %v17148_v48 = vand.u32 4294901760, %v17080_v62 }
0x1ddc   :  { %v16701_v46 = vand.u32 4294901760, %v16700_v60  ;;  %v17149_v18 = vsub.f32 %v17080_v62, %v17148_v48 }
0x1dde   :  { %v16702_v20 = vsub.f32 %v16700_v60, %v16701_v46  ;;  %v17150_v6 = vand.u32 4294901760, %v17149_v18 }
0x1de0   :  { %v16703_v52 = vand.u32 4294901760, %v16702_v20  ;;  %v17151_v34 = vsub.f32 %v17149_v18, %v17150_v6 }
0x1de2   :  { %24935 = vmatmul.mubr.f32.vlgmr.msra.gmra.mrb[108].mxu0 %v16703_v52  ;;  %v17152_v36 = vand.u32 4294901760, %v17151_v34 }
0x1de3   :  { %24938 = vmatpush3.msra.mxu0 %v27087_v43  ;;  %24939 = vmatprep.mubr.msk.f32.mxu0 %vm26382_vm1, %v28811_v24 }
0x1de4   :  { %24965 = vmatmul.mubr.f32.vlgmr.msra.gmra.mrb[130].mxu1 %v17152_v36  ;;  %24942 = vmatprep.subr.mxu0 %v28811_v24 }
0x1de5   :  { %24968 = vmatpush3.msra.mxu1 %v27090_v33  ;;  %24969 = vmatprep.mubr.msk.f32.mxu1 %vm26382_vm1, %v28811_v24 }
0x1de6   :  { %24972 = vmatprep.subr.mxu1 %v28811_v24 }
0x1dea   :  { %24940 = vmatmul.mubr.f32.vlgmr.msra.gmra.mrb[108].mxu0 %v16699_v47 }
0x1deb   :  { %24943 = vmatpush3.msra.mxu0 %v27064_v15  ;;  %24944 = vmatprep.mubr.msk.f32.mxu0 %vm26382_vm1, %v28811_v24 }
0x1dec   :  { %24970 = vmatmul.mubr.f32.vlgmr.msra.gmra.mrb[130].mxu1 %v17148_v48  ;;  %24947 = vmatprep.subr.mxu0 %v28811_v24 }
0x1ded   :  { %24973 = vmatpush3.msra.mxu1 %v27067_v7  ;;  %24974 = vmatprep.mubr.msk.f32.mxu1 %vm26382_vm1, %v28811_v24 }
0x1dee   :  { %24977 = vmatprep.subr.mxu1 %v28811_v24 }
0x1df2   :  { %24945 = vmatmul.mubr.f32.vlgmr.msra.gmra.mrb[108].mxu0 %v16700_v60 }
0x1df3   :  { %24948 = vmatpush3.msra.mxu0 %v27036_v29  ;;  %24949 = vmatprep.mubr.msk.f32.mxu0 %vm26382_vm1, %v28811_v24 }
0x1df4   :  { %24975 = vmatmul.mubr.f32.vlgmr.msra.gmra.mrb[130].mxu1 %v17149_v18  ;;  %24952 = vmatprep.subr.mxu0 %v28811_v24 }
0x1df5   :  { %24978 = vmatpush3.msra.mxu1 %v27055_v39  ;;  %24979 = vmatprep.mubr.msk.f32.mxu1 %vm26382_vm1, %v28811_v24 }
0x1df6   :  { %24982 = vmatprep.subr.mxu1 %v28811_v24 }
0x1dfa   :  { %24950 = vmatmul.mubr.f32.vlgmr.msra.gmra.mrb[108].mxu0 %v16701_v46 }
0x1dfb   :  { %24953 = vmatpush3.msra.mxu0 %v27073_v35  ;;  %24954 = vmatprep.mubr.msk.f32.mxu0 %vm26382_vm1, %v28811_v24 }
0x1dfc   :  { %24980 = vmatmul.mubr.f32.vlgmr.msra.gmra.mrb[130].mxu1 %v17150_v6  ;;  %24957 = vmatprep.subr.mxu0 %v28811_v24 }
0x1dfd   :  { %24983 = vmatpush3.msra.mxu1 %v27080_v63  ;;  %24984 = vmatprep.mubr.msk.f32.mxu1 %vm26382_vm1, %v28811_v24 }
0x1dfe   :  { %24987 = vmatprep.subr.mxu1 %v28811_v24 }
0x1e02   :  { %24955 = vmatmul.mubr.f32.vlgmr.msra.gmra.mrb[108].mxu0 %v16699_v47 }
0x1e03   :  { %24958 = vmatpush3.msra.mxu0 %v27036_v29  ;;  %24959 = vmatprep.mubr.msk.f32.mxu0 %vm26382_vm1, %v28811_v24 }
0x1e04   :  { %24985 = vmatmul.mubr.f32.vlgmr.msra.gmra.mrb[130].mxu1 %v17148_v48  ;;  %25802 = vmatprep.subr.bf16.mxu0 %v28800_v53 }
0x1e05   :  { %24988 = vmatpush3.msra.mxu1 %v27055_v39  ;;  %24989 = vmatprep.mubr.msk.f32.mxu1 %vm26382_vm1, %v28811_v24 }
0x1e06   :  { %25805 = vmatprep.subr.bf16.mxu1 %v28800_v53 }
0x1e0a   :  { %24960 = vmatmul.mubr.f32.vlgmr.msra.gmra.mrb[108].mxu0 %v16699_v47 }
0x1e0b   :  { %25804 = vmatpush3.bf16.xpose.msra.mxu0 %v27146_v30  ;;  %24996 = vmatprep.mubr.msk.f32.mxu0 %vm26382_vm1, %v28811_v24 }
0x1e0c   :  { %24990 = vmatmul.mubr.f32.vlgmr.msra.gmra.mrb[130].mxu1 %v17148_v48  ;;  %25808 = vmatprep.subr.bf16.mxu0 %v28800_v53 }
0x1e0d   :  { %25807 = vmatpush3.bf16.xpose.msra.mxu1 %v27150_v19  ;;  %25003 = vmatprep.mubr.msk.f32.mxu1 %vm26382_vm1, %v28811_v24 }
0x1e0e   :  { %25811 = vmatprep.subr.bf16.mxu1 %v28800_v53 }
0x1e12   :  { %24997 = vmatmul.mubr.f32.vlgmr.msra.gmra.mrb[110].mxu0 %v28178_v56 }
0x1e13   :  { %25810 = vmatpush3.bf16.xpose.msra.mxu0 %v27163_v4  ;;  %25010 = vmatprep.mubr.msk.f32.mxu0 %vm26382_vm1, %v28811_v24 }
0x1e14   :  { %25004 = vmatmul.mubr.f32.vlgmr.msra.gmra.mrb[132].mxu1 %v28152_v2  ;;  %25814 = vmatprep.subr.bf16.mxu0 %v28800_v53 }
0x1e15   :  { %25813 = vmatpush3.bf16.xpose.msra.mxu1 %v27146_v30  ;;  %25017 = vmatprep.mubr.msk.f32.mxu1 %vm26382_vm1, %v28811_v24 }
0x1e16   :  { %25817 = vmatprep.subr.bf16.mxu1 %v28800_v53 }
0x1e1a   :  { %25011 = vmatmul.mubr.f32.vlgmr.msra.gmra.mrb[112].mxu0 %v28155_v31 }
0x1e1b   :  { %25816 = vmatpush3.bf16.xpose.msra.mxu0 %v27176_v40  ;;  %25024 = vmatprep.mubr.msk.f32.mxu0 %vm26382_vm1, %v28811_v24 }
0x1e1c   :  { %25018 = vmatmul.mubr.f32.vlgmr.msra.gmra.mrb[134].mxu1 %v28166_v59  ;;  %25820 = vmatprep.subr.bf16.mxu0 %v28800_v53 }
0x1e1d   :  { %25819 = vmatpush3.bf16.xpose.msra.mxu1 %v27146_v30  ;;  %25031 = vmatprep.mubr.msk.f32.mxu1 %vm26382_vm1, %v28811_v24 }
0x1e1e   :  { %25823 = vmatprep.subr.bf16.mxu1 %v28800_v53 }
0x1e22   :  { %25025 = vmatmul.mubr.f32.vlgmr.msra.gmra.mrb[114].mxu0 %v28152_v2 }
0x1e23   :  { %25822 = vmatpush3.bf16.xpose.msra.mxu0 %v27188_v0  ;;  %25038 = vmatprep.mubr.msk.f32.mxu0 %vm26382_vm1, %v28811_v24 }
0x1e24   :  { %25032 = vmatmul.mubr.f32.vlgmr.msra.gmra.mrb[136].mxu1 %v28152_v2  ;;  %25826 = vmatprep.subr.bf16.mxu0 %v28800_v53 }
0x1e25   :  { %25825 = vmatpush3.bf16.xpose.msra.mxu1 %v27192_v23  ;;  %25045 = vmatprep.mubr.msk.f32.mxu1 %vm26382_vm1, %v28811_v24 }
0x1e26   :  { %25829 = vmatprep.subr.bf16.mxu1 %v28800_v53 }
0x1e2a   :  { %25039 = vmatmul.mubr.f32.vlgmr.msra.gmra.mrb[116].mxu0 %v28212_v50 }
0x1e2b   :  { %25828 = vmatpush3.bf16.xpose.msra.mxu0 %v27203_v54  ;;  %25052 = vmatprep.mubr.msk.f32.mxu0 %vm26382_vm1, %v28811_v24 }
0x1e2c   :  { %25046 = vmatmul.mubr.f32.vlgmr.msra.gmra.mrb[138].mxu1 %v28162_v38  ;;  %25832 = vmatprep.subr.bf16.mxu0 %v28800_v53 }
0x1e2d   :  { %25831 = vmatpush3.bf16.xpose.msra.mxu1 %v27188_v0  ;;  %25059 = vmatprep.mubr.msk.f32.mxu1 %vm26382_vm1, %v28811_v24 }
0x1e2e   :  { %25835 = vmatprep.subr.bf16.mxu1 %v28800_v53 }
0x1e32   :  { %25053 = vmatmul.mubr.f32.vlgmr.msra.gmra.mrb[118].mxu0 %v28175_v13 }
0x1e33   :  { %25834 = vmatpush3.bf16.xpose.msra.mxu0 %v27216_v42  ;;  %25066 = vmatprep.mubr.msk.f32.mxu0 %vm26382_vm1, %v28811_v24 }
0x1e34   :  { %25060 = vmatmul.mubr.f32.vlgmr.msra.gmra.mrb[140].mxu1 %v28188_v51  ;;  %25076 = vmatprep.subr.mxu0 %v28811_v24 }
0x1e35   :  { %25837 = vmatpush3.bf16.xpose.msra.mxu1 %v27188_v0  ;;  %25073 = vmatprep.mubr.msk.f32.mxu1 %vm26382_vm1, %v28811_v24 }
0x1e36   :  { %25106 = vmatprep.subr.mxu1 %v28811_v24 }
0x1e3a   :  { %25067 = vmatmul.mubr.f32.vlgmr.msra.gmra.mrb[120].mxu0 %v28162_v38 }
0x1e3b   :  { %25077 = vmatpush3.msra.mxu0 %v27229_v9  ;;  %25078 = vmatprep.mubr.msk.f32.mxu0 %vm26382_vm1, %v28811_v24 }
0x1e3c   :  { %25074 = vmatmul.mubr.f32.vlgmr.msra.gmra.mrb[142].mxu1 %v28162_v38  ;;  %25081 = vmatprep.subr.mxu0 %v28811_v24 }
0x1e3d   :  { %25107 = vmatpush3.msra.mxu1 %v27233_v44  ;;  %25108 = vmatprep.mubr.msk.f32.mxu1 %vm26382_vm1, %v28811_v24 }
0x1e3e   :  { %25111 = vmatprep.subr.mxu1 %v28811_v24 }
0x1edd   :  { %v17075_v2 = vpop.f32.mrb[108].mxu0 }
0x1ede   :  { %26234 = vrcp.f32 %v17075_v2  ;;  %v24961_v31 = vpop.f32.mrb[109].mxu0 }
0x1edf   :  { %v17524_v59 = vpop.f32.mrb[130].mxu1 }
0x1ee0   :  { %26236 = vrcp.f32 %v17524_v59  ;;  %v24991_v13 = vpop.f32.mrb[131].mxu1 }
0x1ee5   :  { %v17609_v56 = vpop.f32.mrb[110].mxu0 }
0x1ee6   :  { %v24998_v51 = vpop.f32.mrb[111].mxu0 }
0x1ee7   :  { %v17690_v50 = vpop.f32.mrb[132].mxu1 }
0x1ee8   :  { %v26235_v17 = vpop.eup %26234  ;;  %v17691_v38 = vadd.f32 %v17690_v50, %v17609_v56  ;;  %v25005_v14 = vpop.f32.mrb[133].mxu1 }
0x1ee9   :  { %v17530_v5 = vmul.f32 %v26235_v17, %v17075_v2 }
0x1eea   :  { %v26237_v28 = vpop.eup %26236 }
0x1eeb   :  { %v17531_v10 = vmul.f32 %v26237_v28, %v17524_v59  ;;  %v17532_v32 = vsub.f32 2.0, %v17530_v5 }
0x1eed   :  { %v17533_v25 = vsub.f32 2.0, %v17531_v10  ;;  %v17766_v45 = vpop.f32.mrb[112].mxu0  ;;  %v17534_v47 = vmul.f32 %v26235_v17, %v17532_v32 }
0x1eee   :  { %v17767_v11 = vadd.f32 %v17766_v45, %v17691_v38  ;;  %v25012_v8 = vpop.f32.mrb[113].mxu0 }
0x1eef   :  { %v17841_v57 = vpop.f32.mrb[134].mxu1  ;;  %v17535_v1 = vmul.f32 %v26237_v28, %v17533_v25 }
0x1ef0   :  { %v17842_v41 = vadd.f32 %v17841_v57, %v17767_v11  ;;  %v25019_v27 = vpop.f32.mrb[135].mxu1 }
0x1ef1   :  { %18461 = vperm.xlu0 %26170, %v17535_v1  }
0x1ef5   :  { %v17918_v62 = vpop.f32.mrb[114].mxu0  ;;  %18456 = vperm.xlu0 %26170, %v17534_v47  }
0x1ef6   :  { %v17919_v60 = vadd.f32 %v17918_v62, %v17842_v41  ;;  %v25026_v48 = vpop.f32.mrb[115].mxu0 }
0x1ef7   :  { %v17991_v46 = vpop.f32.mrb[136].mxu1  ;;  %v28357_v48 = vmax.f32 %v28017_v12, %v28039_v49 }
0x1ef8   :  { %v17992_v18 = vadd.f32 %v17991_v46, %v17919_v60  ;;  %v25033_v20 = vpop.f32.mrb[137].mxu1 }
0x1ef9   :  { %26171 = vset.pattern.permute.xlu0 %v28812_v26 }
0x1efd   :  { %v18068_v6 = vpop.f32.mrb[116].mxu0 }
0x1efe   :  { %v25040_v52 = vpop.f32.mrb[117].mxu0 }
0x1eff   :  { %v18149_v34 = vpop.f32.mrb[138].mxu1 }
0x1f00   :  { %v18150_v36 = vadd.f32 %v18149_v34, %v18068_v6  ;;  %v25047_v31 = vpop.f32.mrb[139].mxu1 }
0x1f05   :  { %v18225_v13 = vpop.f32.mrb[118].mxu0 }
0x1f06   :  { %v18226_v56 = vadd.f32 %v18225_v13, %v18150_v36  ;;  %v25054_v51 = vpop.f32.mrb[119].mxu0 }
0x1f07   :  { %v18300_v50 = vpop.f32.mrb[140].mxu1 }
0x1f08   :  { %v18301_v38 = vadd.f32 %v18300_v50, %v18226_v56  ;;  %v25061_v17 = vpop.f32.mrb[141].mxu1 }
0x1f0d   :  { %v18377_v14 = vpop.f32.mrb[120].mxu0 }
0x1f0e   :  { %v18378_v28 = vadd.f32 %v18377_v14, %v18301_v38  ;;  %v25068_v5 = vpop.f32.mrb[121].mxu0 }
0x1f0f   :  { %v18450_v10 = vpop.f32.mrb[142].mxu1 }
0x1f10   :  { %v18451_v25 = vadd.f32 %v18450_v10, %v18378_v28  ;;  %v25075_v45 = vpop.f32.mrb[143].mxu1 }
0x1f70   :  { %v18462_v11 = vpop.permute.xlu0 %18461 }
0x1f71   :  { %v18465_v8 = vmul.f32 %v18462_v11, %v17524_v59 }
0x1f73   :  { %v18467_v32 = vadd.f32 %v18465_v8, %v18451_v25 }
0x1f74   :  { %v18457_v57 = vpop.permute.xlu0 %18456 }
0x1f75   :  { %v18464_v1 = vmul.f32 %v18457_v57, %v17075_v2  ;;  %v18469_v41 = vadd.f32 %v18467_v32, %v27263_v55 }
0x1f77   :  { %v18466_v27 = vadd.f32 %v18464_v1, %v17992_v18  ;;  %18476 = vperm.xlu0 %26171, %v18469_v41  }
0x1f79   :  { %v18468_v47 = vadd.f32 %v18466_v27, %v27267_v22 }
0x1f7b   :  { %18472 = vperm.xlu0 %26171, %v18468_v47  }
0x1f7f   :  { %26172 = vset.pattern.permute.xlu0 %v28813_v21 }
0x1ff6   :  { %v18477_v62 = vpop.permute.xlu0 %18476 }
0x1ff7   :  { %v18478_v60 = vrot.slane %v18477_v62, 7 }
0x1ffa   :  { %v18473_v46 = vpop.permute.xlu0 %18472 }
0x1ffb   :  { %v18479_v59 = vsel %vm3717_vm4, %v18478_v60, %v18473_v46 }
0x1ffc   :  { %v18481_v2 = vmul.f32 %v18479_v59, %v28357_v48 }
0x1ffe   :  { %v18483_v20 = vrot.slane %v18481_v2, 1  ;;  %v28363_v18 = vadd.f32 %v18481_v2, %v18468_v47 }
0x2000   :  { %v28361_v6 = vadd.f32 %v18483_v20, %v18469_v41 }
0x2002   :  { %v18490_v52 = vrot.slane %v28361_v6, 7 }
0x2004   :  { %v18491_v21 = vsel %vm3717_vm4, %v18490_v52, %v28363_v18 }
0x2005   :  { %v18493_v34 = vsel %vm3720_vm5, %v18491_v21, -inf }
0x2006   :  { %18494 = vmax.xlane.f32.xlu0 %v18493_v34 }
0x2093   :  { %v18495_v12 = vpop.xlane.xlu0 %18494 }
0x2094   :  { %v18497_v49 = vrot.slane %v18495_v12, 1  ;;  %vm18500_vm8 = vcmp.eq.f32.partialorder %v28363_v18, %v18495_v12  ;;  %v28868_v12 = vld [vmem:[#allocation29_spill] sm:$0xff] }
0x2095   :  { %v18502_v13 = vsel %vm18500_vm8, %v28816_v61, 8 }
0x2096   :  { %vm18501_vm9 = vcmp.eq.f32.partialorder %v28361_v6, %v18497_v49  ;;  %v28869_v49 = vld [vmem:[#allocation30_spill] sm:$0xff] }
0x2097   :  { %v18503_v36 = vsel %vm18501_vm9, %v28816_v61, 8 }
0x2098   :  { %v18504_v31 = vrot.slane %v18503_v36, 7  ;;  %v28870_v36 = vld [vmem:[#allocation25_spill] sm:$0xff] }
0x209a   :  { %v18505_v56 = vsel %vm3717_vm4, %v18504_v31, %v18502_v13  ;;  %v28871_v31 = vld [vmem:[#allocation26_spill] sm:$0xff] }
0x209b   :  { %v18506_v51 = vsel %vm3720_vm5, %v18505_v56, 2147483647  ;;  %v28872_v56 = vld [vmem:[#allocation27_spill] sm:$0xff] }
0x209c   :  { %v18508_v50 = vshra.s32 %v18506_v51, 16  ;;  %v18507_v17 = vand.u32 65535, %v18506_v51 }
0x209e   :  { %v18510_v38 = vcvt.s32.f32 %v18508_v50  ;;  %v18509_v28 = vcvt.s32.f32 %v18507_v17  ;;  %v28873_v50 = vld [vmem:[#allocation28_spill] sm:$0xff] }
0x20a0   :  { %18511 = vmin.xlane.f32.xlu1 %v18510_v38 }
0x212d   :  { %v18512_v14 = vpop.xlane.xlu1 %18511 }
0x212e   :  { %vm18513_vm10 = vcmp.eq.f32.partialorder %v18510_v38, %v18512_v14  ;;  %v18518_v10 = vcvt.f32.s32 %v18512_v14 }
0x212f   :  { %v18514_v5 = vsel %vm18513_vm10, %v18509_v28, inf  ;;  %v28874_v28 = vld [vmem:[#allocation31_spill] sm:$0xff] }
0x2130   :  { %18515 = vmin.xlane.f32.xlu1 %v18514_v5  ;;  %v18519_v45 = vshll.u32 %v18518_v10, 16  ;;  %v28875_v5 = vld [vmem:[#allocation32_spill] sm:$0xff] }
0x2141   :  { %19444 = vrot.lane.b32.xlu1 %v28141_v37, %s26379_s9 }
0x21bd   :  { %v18516_v25 = vpop.xlane.xlu1 %18515 }
0x21be   :  { %v18517_v11 = vcvt.f32.s32 %v18516_v25  ;;  %v28877_v25 = vld [vmem:[#allocation34_spill] sm:$0xff] }
0x21c0   :  { %v18520_v8 = vadd.s32 %v18519_v45, %v18517_v11  ;;  %v28878_v45 = vld [vmem:[#allocation35_spill] sm:$0xff]  ;;  %v28879_v11 = vld [vmem:[#allocation36_spill] sm:$0xff] }
0x21c1   :  { %v19445_v13 = vpop.permute.xlu1 %19444 }
0x21c2   :  { %vm18521_vm11 = vcmp.eq.s32.totalorder %v28816_v61, %v18520_v8  ;;  %v19451_v51 = vsel %vm121_vm0, %v19445_v13, 0  ;;  %v28880_v8 = vld [vmem:[#allocation37_spill] sm:$0xff] }
0x21c3   :  { %v28379_v32 = vsel %vm18521_vm11, 1.0, %v28811_v24  ;;  %v19522_v38 = vand.u32 4294901760, %v19451_v51 }
0x21c4   :  { %v18532_v57 = vrot.slane %v28379_v32, %v26802_v58 }
0x21c5   :  { %v19523_v17 = vsub.f32 %v19451_v51, %v19522_v38 }
0x21c6   :  { %v18533_v1 = vcombine.high %v18532_v57, %v18532_v57  ;;  %v18540_v41 = vrot.slane %v18532_v57, %v26802_v58  ;;  %v28881_v57 = vld [vmem:[#allocation38_spill] sm:$0xff] }
0x21c7   :  { %v19524_v14 = vand.u32 4294901760, %v19523_v17 }
0x21c8   :  { %v18547_v27 = vrot.slane %v18533_v1, %v26802_v58  ;;  %v18548_v37 = vsel %vm1756_vm2, %v18540_v41, 0  ;;  %v28882_v1 = vld [vmem:[#allocation14_spill] sm:$0xff]  ;;  %v28883_v41 = vld [vmem:[#allocation17_spill] sm:$0xff] }
0x21c9   :  { %v18616_v47 = vand.u32 4294901760, %v18548_v37 }
0x21ca   :  { %v18996_v62 = vsel %vm1756_vm2, %v18547_v27, 0 }
0x21cb   :  { %v18617_v60 = vsub.f32 %v18548_v37, %v18616_v47  ;;  %v19064_v46 = vand.u32 4294901760, %v18996_v62 }
0x21cd   :  { %v18618_v59 = vand.u32 4294901760, %v18617_v60  ;;  %v19065_v61 = vsub.f32 %v18996_v62, %v19064_v46 }
0x21cf   :  { %v18619_v2 = vsub.f32 %v18617_v60, %v18618_v59  ;;  %v19066_v20 = vand.u32 4294901760, %v19065_v61 }
0x21d1   :  { %v18620_v52 = vand.u32 4294901760, %v18619_v2  ;;  %v19067_v21 = vsub.f32 %v19065_v61, %v19066_v20 }
0x21d3   :  { %25079 = vmatmul.mubr.f32.vlgmr.msra.gmra.mrb[122].mxu0 %v18620_v52  ;;  %v19068_v34 = vand.u32 4294901760, %v19067_v21 }
0x21d4   :  { %25082 = vmatpush3.msra.mxu0 %v28868_v12  ;;  %25083 = vmatprep.mubr.msk.f32.mxu0 %vm26382_vm1, %v28811_v24 }
0x21d5   :  { %25109 = vmatmul.mubr.f32.vlgmr.msra.gmra.mrb[144].mxu1 %v19068_v34  ;;  %25086 = vmatprep.subr.mxu0 %v28811_v24 }
0x21d6   :  { %25112 = vmatpush3.msra.mxu1 %v28869_v49  ;;  %25113 = vmatprep.mubr.msk.f32.mxu1 %vm26382_vm1, %v28811_v24 }
0x21d7   :  { %25116 = vmatprep.subr.mxu1 %v28811_v24 }
0x21db   :  { %25084 = vmatmul.mubr.f32.vlgmr.msra.gmra.mrb[122].mxu0 %v18616_v47 }
0x21dc   :  { %25087 = vmatpush3.msra.mxu0 %v28870_v36  ;;  %25088 = vmatprep.mubr.msk.f32.mxu0 %vm26382_vm1, %v28811_v24 }
0x21dd   :  { %25114 = vmatmul.mubr.f32.vlgmr.msra.gmra.mrb[144].mxu1 %v19064_v46  ;;  %25091 = vmatprep.subr.mxu0 %v28811_v24 }
0x21de   :  { %25117 = vmatpush3.msra.mxu1 %v28871_v31  ;;  %25118 = vmatprep.mubr.msk.f32.mxu1 %vm26382_vm1, %v28811_v24 }
0x21df   :  { %25121 = vmatprep.subr.mxu1 %v28811_v24 }
0x21e3   :  { %25089 = vmatmul.mubr.f32.vlgmr.msra.gmra.mrb[122].mxu0 %v18617_v60 }
0x21e4   :  { %25092 = vmatpush3.msra.mxu0 %v27229_v9  ;;  %25093 = vmatprep.mubr.msk.f32.mxu0 %vm26382_vm1, %v28811_v24 }
0x21e5   :  { %25119 = vmatmul.mubr.f32.vlgmr.msra.gmra.mrb[144].mxu1 %v19065_v61  ;;  %25096 = vmatprep.subr.mxu0 %v28811_v24 }
0x21e6   :  { %25122 = vmatpush3.msra.mxu1 %v27233_v44  ;;  %25123 = vmatprep.mubr.msk.f32.mxu1 %vm26382_vm1, %v28811_v24 }
0x21e7   :  { %25126 = vmatprep.subr.mxu1 %v28811_v24 }
0x21eb   :  { %25094 = vmatmul.mubr.f32.vlgmr.msra.gmra.mrb[122].mxu0 %v18618_v59 }
0x21ec   :  { %25097 = vmatpush3.msra.mxu0 %v28872_v56  ;;  %25098 = vmatprep.mubr.msk.f32.mxu0 %vm26382_vm1, %v28811_v24 }
0x21ed   :  { %25124 = vmatmul.mubr.f32.vlgmr.msra.gmra.mrb[144].mxu1 %v19066_v20  ;;  %25101 = vmatprep.subr.mxu0 %v28811_v24 }
0x21ee   :  { %25127 = vmatpush3.msra.mxu1 %v28873_v50  ;;  %25128 = vmatprep.mubr.msk.f32.mxu1 %vm26382_vm1, %v28811_v24 }
0x21ef   :  { %25131 = vmatprep.subr.mxu1 %v28811_v24 }
0x21f3   :  { %25099 = vmatmul.mubr.f32.vlgmr.msra.gmra.mrb[122].mxu0 %v18616_v47 }
0x21f4   :  { %25102 = vmatpush3.msra.mxu0 %v27229_v9  ;;  %25103 = vmatprep.mubr.msk.f32.mxu0 %vm26382_vm1, %v28811_v24  ;;  %v19525_v9 = vsub.f32 %v19523_v17, %v19524_v14 }
0x21f5   :  { %25129 = vmatmul.mubr.f32.vlgmr.msra.gmra.mrb[144].mxu1 %v19064_v46  ;;  %25838 = vmatprep.subr.bf16.mxu0 %v28800_v53 }
0x21f6   :  { %25132 = vmatpush3.msra.mxu1 %v27233_v44  ;;  %25133 = vmatprep.mubr.msk.f32.mxu1 %vm26382_vm1, %v28811_v24  ;;  %v28876_v44 = vld [vmem:[#allocation33_spill] sm:$0xff]  ;;  %v19526_v10 = vand.u32 4294901760, %v19525_v9 }
0x21f7   :  { %25844 = vmatprep.subr.bf16.mxu1 %v28800_v53 }
0x21fb   :  { %25104 = vmatmul.mubr.f32.vlgmr.msra.gmra.mrb[122].mxu0 %v18616_v47 }
0x21fc   :  { %25840 = vmatpush3.bf16.msra.mxu0 %v28874_v28  ;;  %25144 = vmatprep.mubr.msk.f32.mxu0 %vm26382_vm1, %v28811_v24 }
0x21fd   :  { %25134 = vmatmul.mubr.f32.vlgmr.msra.gmra.mrb[144].mxu1 %v19064_v46  ;;  %25841 = vmatprep.subr.bf16.mxu0 %v28800_v53 }
0x21fe   :  { %25846 = vmatpush3.bf16.msra.mxu1 %v28875_v5  ;;  %25155 = vmatprep.mubr.msk.f32.mxu1 %vm26382_vm1, %v28811_v24 }
0x21ff   :  { %25847 = vmatprep.subr.bf16.mxu1 %v28800_v53 }
0x2200   :  { %25843 = vmatpush3.bf16.msra.mxu0 %v28876_v44 }
0x2201   :  { %25850 = vmatprep.subr.bf16.mxu0 %v28800_v53 }
0x2202   :  { %25849 = vmatpush3.bf16.msra.mxu1 %v28877_v25 }
0x2203   :  { %25145 = vmatmul.mubr.f32.vlgmr.msra.gmra.mrb[124].mxu0 %v19526_v10  ;;  %25856 = vmatprep.subr.bf16.mxu1 %v28800_v53 }
0x2204   :  { %25852 = vmatpush3.bf16.msra.mxu0 %v28878_v45  ;;  %25166 = vmatprep.mubr.msk.f32.mxu0 %vm26382_vm1, %v28811_v24 }
0x2205   :  { %25156 = vmatmul.mubr.f32.vlgmr.msra.gmra.mrb[146].mxu1 %v19522_v38  ;;  %25853 = vmatprep.subr.bf16.mxu0 %v28800_v53 }
0x2206   :  { %25858 = vmatpush3.bf16.msra.mxu1 %v28874_v28  ;;  %25177 = vmatprep.mubr.msk.f32.mxu1 %vm26382_vm1, %v28811_v24 }
0x2207   :  { %25859 = vmatprep.subr.bf16.mxu1 %v28800_v53 }
0x2208   :  { %25855 = vmatpush3.bf16.msra.mxu0 %v28879_v11 }
0x2209   :  { %25862 = vmatprep.subr.bf16.mxu0 %v28800_v53 }
0x220a   :  { %25861 = vmatpush3.bf16.msra.mxu1 %v28876_v44 }
0x220b   :  { %25167 = vmatmul.mubr.f32.vlgmr.msra.gmra.mrb[126].mxu0 %v19523_v17  ;;  %25868 = vmatprep.subr.bf16.mxu1 %v28800_v53 }
0x220c   :  { %25864 = vmatpush3.bf16.msra.mxu0 %v28880_v8  ;;  %25188 = vmatprep.mubr.msk.f32.mxu0 %vm26382_vm1, %v28811_v24 }
0x220d   :  { %25178 = vmatmul.mubr.f32.vlgmr.msra.gmra.mrb[148].mxu1 %v19524_v14  ;;  %25865 = vmatprep.subr.bf16.mxu0 %v28800_v53 }
0x220e   :  { %25870 = vmatpush3.bf16.msra.mxu1 %v28874_v28  ;;  %25199 = vmatprep.mubr.msk.f32.mxu1 %vm26382_vm1, %v28811_v24  ;;  %v28884_v28 = vld [vmem:[#allocation39_spill] sm:$0xff] }
0x220f   :  { %25871 = vmatprep.subr.bf16.mxu1 %v28800_v53 }
0x2210   :  { %25867 = vmatpush3.bf16.msra.mxu0 %v28881_v57  ;;  %v28885_v57 = vld [vmem:[#allocation22_spill] sm:$0xff] }
0x2211   :  { %25202 = vmatprep.subr.mxu0 %v28811_v24 }
0x2212   :  { %25873 = vmatpush3.bf16.msra.mxu1 %v28876_v44 }
0x2213   :  { %25189 = vmatmul.mubr.f32.vlgmr.msra.gmra.mrb[128].mxu0 %v19522_v38  ;;  %25207 = vmatprep.subr.mxu1 %v28811_v24 }
0x2214   :  { %25204 = vmatprep.mubr.msk.f32.mxu0 %vm26382_vm1, %v28811_v24 }
0x2215   :  { %25200 = vmatmul.mubr.f32.vlgmr.msra.gmra.mrb[150].mxu1 %v19522_v38 }
0x2216   :  { %25209 = vmatprep.mubr.msk.f32.mxu1 %vm26382_vm1, %v28811_v24 }
0x2219   :  { %25203 = vmatpush3.xpose.msra.mxu0 %v28882_v1 }
0x221a   :  { %25212 = vmatprep.subr.mxu0 %v28811_v24 }
0x221b   :  { %25208 = vmatpush3.xpose.msra.mxu1 %v28883_v41 }
0x221c   :  { %25217 = vmatprep.subr.mxu1 %v28811_v24 }
0x22ce   :  { %v18992_v27 = vpop.f32.mrb[122].mxu0 }
0x22cf   :  { %v25105_v37 = vpop.f32.mrb[123].mxu0 }
0x22d0   :  { %v19440_v47 = vpop.f32.mrb[144].mxu1 }
0x22d1   :  { %v19448_v62 = vrot.slane %v19440_v47, 7  ;;  %v25135_v60 = vpop.f32.mrb[145].mxu1 }
0x22d3   :  { %v19449_v46 = vsel %vm3717_vm4, %v19448_v62, %v18992_v27 }
0x22d6   :  { %v19528_v59 = vpop.f32.mrb[124].mxu0 }
0x22d7   :  { %v19529_v61 = vadd.f32 %v19528_v59, %v19449_v46  ;;  %v25146_v2 = vpop.f32.mrb[125].mxu0 }
0x22d8   :  { %v19619_v20 = vpop.f32.mrb[146].mxu1  ;;  %v28886_v2 = vld [vmem:[#allocation13_spill] sm:$0xff] }
0x22d9   :  { %v19620_v52 = vadd.f32 %v19619_v20, %v19529_v61  ;;  %v25157_v21 = vpop.f32.mrb[147].mxu1 }
0x22de   :  { %v19699_v34 = vpop.f32.mrb[126].mxu0 }
0x22df   :  { %v19700_v12 = vadd.f32 %v19699_v34, %v19620_v52  ;;  %v25168_v49 = vpop.f32.mrb[127].mxu0 }
0x22e0   :  { %v19776_v36 = vpop.f32.mrb[148].mxu1 }
0x22e1   :  { %v19777_v31 = vadd.f32 %v19776_v36, %v19700_v12  ;;  %v25179_v13 = vpop.f32.mrb[149].mxu1 }
0x22e6   :  { %v19859_v56 = vpop.f32.mrb[128].mxu0 }
0x22e7   :  { %v19860_v51 = vadd.f32 %v19859_v56, %v19777_v31  ;;  %v25190_v50 = vpop.f32.mrb[129].mxu0 }
0x22e8   :  { %v19934_v38 = vpop.f32.mrb[150].mxu1 }
0x22e9   :  { %v19935_v17 = vadd.f32 %v19934_v38, %v19860_v51  ;;  %v25201_v14 = vpop.f32.mrb[151].mxu1 }
0x22ea   :  { %v28888_v14 = vld [vmem:[#allocation21_spill] sm:$0xff] }
0x22eb   :  { %v19938_v9 = vadd.f32 %v19935_v17, %v28884_v28  ;;  %v28887_v17 = vld [vmem:[#allocation15_spill] sm:$0xff]  ;;  %v28889_v28 = vld [vmem:[#allocation16_spill] sm:$0xff] }
0x22ed   :  { %26238 = vtanh.f32 %v19938_v9  ;;  %v22819_v44 = vmul.f32 -1.442695, %v19938_v9  ;;  %v28890_v9 = vld [vmem:[#allocation18_spill] sm:$0xff] }
0x22ef   :  { %26240 = vpow2.f32 %v22819_v44 }
0x22f7   :  { %v26239_v5 = vpop.eup %26238 }
0x22f8   :  { %19948 = vrot.lane.b32.xlu0 %v26239_v5, %s26378_s5 }
0x22f9   :  { %v26241_v10 = vpop.eup %26240 }
0x22fa   :  { %v19942_v25 = vadd.f32 1.0, %v26241_v10  ;;  %v28891_v10 = vld [vmem:[#allocation19_spill] sm:$0xff] }
0x22fc   :  { %26242 = vrcp.f32 %v19942_v25  ;;  %v28892_v25 = vld [vmem:[#allocation20_spill] sm:$0xff] }
0x2306   :  { %v26243_v45 = vpop.eup %26242 }
0x2307   :  { %v19946_v41 = vmul.f32 %v26243_v45, %v28885_v57 }
0x236a   :  { %v19949_v11 = vpop.permute.xlu0 %19948 }
0x236b   :  { %v19951_v8 = vmul.f32 %v26243_v45, %v19949_v11 }
0x236d   :  { %19953 = vrot.lane.b32.xlu1 %v19951_v8, %s26379_s9 }
0x23df   :  { %v19954_v27 = vpop.permute.xlu1 %19953 }
0x23e0   :  { %v19956_v37 = vadd.f32 %v19954_v27, %v19946_v41 }
0x23e2   :  { %26244 = vtanh.f32 %v19956_v37 }
0x23ec   :  { %v26245_v47 = vpop.eup %26244 }
0x23ed   :  { %19959 = vrot.lane.b32.xlu1 %v26245_v47, %s26378_s5 }
0x245f   :  { %v19960_v62 = vpop.permute.xlu1 %19959 }
0x2460   :  { %v19962_v60 = vmul.f32 %v26243_v45, %v19960_v62 }
0x2462   :  { %v19970_v46 = vrot.slane %v19962_v60, %v26802_v58 }
0x2464   :  { %v19971_v59 = vcombine.high %v19970_v46, %v19970_v46  ;;  %v19978_v61 = vrot.slane %v19970_v46, %v26802_v58 }
0x2466   :  { %v19989_v20 = vrot.slane %v19978_v61, %v28886_v2  ;;  %v19985_v52 = vrot.slane %v19971_v59, %v26802_v58 }
0x2468   :  { %19990 = vrot.lane.b32.xlu1 %v19989_v20, %s26379_s9  ;;  %v20443_v21 = vrot.slane %v19985_v52, %v28886_v2 }
0x246c   :  { %20444 = vrot.lane.b32.xlu1 %v20443_v21, %s26379_s9 }
0x24da   :  { %v19991_v34 = vpop.permute.xlu1 %19990 }
0x24db   :  { %v19992_v12 = vsel %vm121_vm0, %v19991_v34, 0 }
0x24dc   :  { %v28486_v49 = vand.u32 4294901760, %v19992_v12 }
0x24de   :  { %v28489_v36 = vsub.f32 %v19992_v12, %v28486_v49  ;;  %25210 = vmatmul.mubr.f32.vlgmr.msra.gmra.mrb[152].mxu1 %v28486_v49  ;;  %v20445_v31 = vpop.permute.xlu1 %20444 }
0x24df   :  { %25218 = vmatpush3.xpose.msra.mxu1 %v28882_v1  ;;  %v20446_v58 = vsel %vm121_vm0, %v20445_v31, 0  ;;  %25219 = vmatprep.mubr.msk.f32.mxu1 %vm26382_vm1, %v28811_v24  ;;  %vm22789_vm0 = vcmask 1040384  }
0x24e0   :  { %v28496_v13 = vand.u32 4294901760, %v20446_v58  ;;  %25227 = vmatprep.subr.mxu1 %v28811_v24  ;;  %v28500_v56 = vand.u32 4294901760, %v28489_v36 }
0x24e2   :  { %25220 = vmatmul.mubr.f32.vlgmr.msra.gmra.mrb[154].mxu1 %v28500_v56  ;;  %v20063_v51 = vsub.f32 %v28489_v36, %v28500_v56  ;;  %v28509_v50 = vsub.f32 %v20446_v58, %v28496_v13 }
0x24e3   :  { %25228 = vmatpush3.xpose.msra.mxu1 %v28882_v1  ;;  %25229 = vmatprep.mubr.msk.f32.mxu1 %vm26382_vm1, %v28811_v24 }
0x24e4   :  { %25237 = vmatprep.subr.mxu1 %v28811_v24  ;;  %v28512_v38 = vand.u32 4294901760, %v20063_v51  ;;  %v28522_v1 = vand.u32 4294901760, %v28509_v50 }
0x24e6   :  { %25205 = vmatmul.mubr.f32.vlgmr.msra.gmra.mrb[130].mxu0 %v28512_v38  ;;  %25230 = vmatmul.mubr.f32.vlgmr.msra.gmra.mrb[156].mxu1 %v28486_v49  ;;  %v20517_v5 = vsub.f32 %v28509_v50, %v28522_v1 }
0x24e7   :  { %25213 = vmatpush3.xpose.msra.mxu0 %v28887_v17  ;;  %25238 = vmatpush3.xpose.msra.mxu1 %v28888_v14 }
0x24e8   :  { %25214 = vmatprep.mubr.msk.f32.mxu0 %vm26382_vm1, %v28811_v24  ;;  %25222 = vmatprep.subr.mxu0 %v28811_v24  ;;  %v28546_v44 = vand.u32 4294901760, %v20517_v5 }
0x24e9   :  { %25239 = vmatprep.mubr.msk.f32.mxu1 %vm26382_vm1, %v28811_v24  ;;  %25247 = vmatprep.subr.mxu1 %v28811_v24 }
0x24ea   :  { %25215 = vmatmul.mubr.f32.vlgmr.msra.gmra.mrb[132].mxu0 %v28489_v36  ;;  %25240 = vmatmul.mubr.f32.vlgmr.msra.gmra.mrb[158].mxu1 %v28496_v13 }
0x24eb   :  { %25223 = vmatpush3.xpose.msra.mxu0 %v28889_v28  ;;  %25248 = vmatpush3.xpose.msra.mxu1 %v28890_v9 }
0x24ec   :  { %25224 = vmatprep.mubr.msk.f32.mxu0 %vm26382_vm1, %v28811_v24  ;;  %25232 = vmatprep.subr.mxu0 %v28811_v24 }
0x24ed   :  { %25249 = vmatprep.mubr.msk.f32.mxu1 %vm26382_vm1, %v28811_v24  ;;  %25257 = vmatprep.subr.mxu1 %v28811_v24 }
0x24ee   :  { %25225 = vmatmul.mubr.f32.vlgmr.msra.gmra.mrb[134].mxu0 %v28486_v49  ;;  %25250 = vmatmul.mubr.f32.vlgmr.msra.gmra.mrb[160].mxu1 %v28522_v1 }
0x24ef   :  { %25233 = vmatpush3.xpose.msra.mxu0 %v28890_v9  ;;  %25258 = vmatpush3.xpose.msra.mxu1 %v28890_v9 }
0x24f0   :  { %25234 = vmatprep.mubr.msk.f32.mxu0 %vm26382_vm1, %v28811_v24  ;;  %25242 = vmatprep.subr.mxu0 %v28811_v24 }
0x24f1   :  { %25259 = vmatprep.mubr.msk.f32.mxu1 %vm26382_vm1, %v28811_v24  ;;  %25292 = vmatprep.subr.mxu1 %v28811_v24 }
0x24f2   :  { %25235 = vmatmul.mubr.f32.vlgmr.msra.gmra.mrb[136].mxu0 %v28546_v44  ;;  %25260 = vmatmul.mubr.f32.vlgmr.msra.gmra.mrb[162].mxu1 %v28496_v13 }
0x24f3   :  { %25243 = vmatpush3.xpose.msra.mxu0 %v28891_v10  ;;  %25293 = vmatpush3.msra.mxu1 %v27055_v39 }
0x24f4   :  { %25244 = vmatprep.mubr.msk.f32.mxu0 %vm26382_vm1, %v28811_v24  ;;  %25252 = vmatprep.subr.mxu0 %v28811_v24 }
0x24f5   :  { %25294 = vmatprep.mubr.msk.f32.mxu1 %vm26382_vm1, %v28811_v24  ;;  %25297 = vmatprep.subr.mxu1 %v28811_v24 }
0x24f6   :  { %25245 = vmatmul.mubr.f32.vlgmr.msra.gmra.mrb[138].mxu0 %v28509_v50 }
0x24f7   :  { %25253 = vmatpush3.xpose.msra.mxu0 %v28892_v25  ;;  %25254 = vmatprep.mubr.msk.f32.mxu0 %vm26382_vm1, %v28811_v24 }
0x24f8   :  { %25262 = vmatprep.subr.mxu0 %v28811_v24 }
0x24fa   :  { %25255 = vmatmul.mubr.f32.vlgmr.msra.gmra.mrb[140].mxu0 %v28496_v13 }
0x24fb   :  { %25263 = vmatpush3.msra.mxu0 %v27036_v29  ;;  %25264 = vmatprep.mubr.msk.f32.mxu0 %vm26382_vm1, %v28811_v24 }
0x24fc   :  { %25267 = vmatprep.subr.mxu0 %v28811_v24 }
0x25b1   :  { %v20142_v45 = vpop.f32.mrb[152].mxu1 }
0x25b2   :  { %v25211_v11 = vpop.f32.mrb[153].mxu1 }
0x25b5   :  { %v20290_v8 = vpop.f32.mrb[154].mxu1 }
0x25b6   :  { %v25221_v57 = vpop.f32.mrb[155].mxu1 }
0x25b9   :  { %v20066_v41 = vpop.f32.mrb[130].mxu0  ;;  %v20436_v27 = vpop.f32.mrb[156].mxu1 }
0x25ba   :  { %v20143_v37 = vadd.f32 %v20142_v45, %v20066_v41  ;;  %v25206_v47 = vpop.f32.mrb[131].mxu0  ;;  %v25231_v62 = vpop.f32.mrb[157].mxu1 }
0x25bd   :  { %v20216_v60 = vpop.f32.mrb[132].mxu0  ;;  %v20596_v46 = vpop.f32.mrb[158].mxu1 }
0x25be   :  { %v20217_v59 = vadd.f32 %v20216_v60, %v20143_v37  ;;  %v25216_v61 = vpop.f32.mrb[133].mxu0  ;;  %v25241_v2 = vpop.f32.mrb[159].mxu1 }
0x25c0   :  { %v20291_v20 = vadd.f32 %v20290_v8, %v20217_v59 }
0x25c1   :  { %v20364_v52 = vpop.f32.mrb[134].mxu0  ;;  %v20744_v21 = vpop.f32.mrb[160].mxu1 }
0x25c2   :  { %v20365_v34 = vadd.f32 %v20364_v52, %v20291_v20  ;;  %v25226_v12 = vpop.f32.mrb[135].mxu0  ;;  %v25251_v31 = vpop.f32.mrb[161].mxu1 }
0x25c4   :  { %v20437_v58 = vadd.f32 %v20436_v27, %v20365_v34 }
0x25c5   :  { %v20520_v51 = vpop.f32.mrb[136].mxu0  ;;  %v20890_v17 = vpop.f32.mrb[162].mxu1 }
0x25c6   :  { %v20597_v14 = vadd.f32 %v20596_v46, %v20520_v51  ;;  %v25236_v28 = vpop.f32.mrb[137].mxu0  ;;  %v25261_v9 = vpop.f32.mrb[163].mxu1  ;;  %v20894_v47 = vadd.f32 %v20437_v58, %v27052_v16 }
0x25c9   :  { %v20670_v5 = vpop.f32.mrb[138].mxu0 }
0x25ca   :  { %v20671_v10 = vadd.f32 %v20670_v5, %v20597_v14  ;;  %v25246_v25 = vpop.f32.mrb[139].mxu0 }
0x25cc   :  { %v20745_v45 = vadd.f32 %v20744_v21, %v20671_v10 }
0x25cd   :  { %v20818_v11 = vpop.f32.mrb[140].mxu0 }
0x25ce   :  { %v20819_v57 = vadd.f32 %v20818_v11, %v20745_v45  ;;  %v25256_v41 = vpop.f32.mrb[141].mxu0 }
0x25d0   :  { %v20891_v37 = vadd.f32 %v20890_v17, %v20819_v57 }
0x25d2   :  { %v20895_v8 = vadd.f32 %v20891_v37, %v27048_v3 }
0x25d4   :  { %v20898_v62 = vrot.slane %v20895_v8, 7 }
0x25d6   :  { %v20899_v27 = vsel %vm3717_vm4, %v20898_v62, %v20894_v47 }
0x25d7   :  { %v20901_v60 = vsel %vm3720_vm5, %v20899_v27, -inf  ;;  %vm22798_vm5 = vcmask 1043456  }
0x25d8   :  { %20902 = vmax.xlane.f32.xlu1 %v20901_v60 }
0x2665   :  { %v20903_v46 = vpop.xlane.xlu1 %20902 }
0x2666   :  { %v20905_v59 = vrot.slane %v20903_v46, 1  ;;  %v20908_v61 = vsub.f32 %v20894_v47, %v20903_v46 }
0x2668   :  { %v20909_v2 = vsub.f32 %v20895_v8, %v20905_v59  ;;  %v20910_v20 = vmul.f32 1.442695, %v20908_v61 }
0x266a   :  { %26246 = vpow2.f32 %v20910_v20  ;;  %v20912_v52 = vmul.f32 1.442695, %v20909_v2 }
0x266c   :  { %26248 = vpow2.f32 %v20912_v52 }
0x2674   :  { %v26247_v21 = vpop.eup %26246 }
0x2675   :  { %v20915_v34 = vsel %vm1756_vm2, %v26247_v21, 0 }
0x2676   :  { %v26249_v3 = vpop.eup %26248  ;;  %v20983_v12 = vand.u32 4294901760, %v20915_v34 }
0x2677   :  { %v21364_v16 = vsel %vm1756_vm2, %v26249_v3, 0  ;;  %vm22795_vm2 = vcmask 1042432  }
0x2678   :  { %v20984_v31 = vsub.f32 %v20915_v34, %v20983_v12  ;;  %v21432_v58 = vand.u32 4294901760, %v21364_v16 }
0x267a   :  { %v20985_v51 = vand.u32 4294901760, %v20984_v31  ;;  %v21433_v17 = vsub.f32 %v21364_v16, %v21432_v58 }
0x267c   :  { %v20986_v14 = vsub.f32 %v20984_v31, %v20985_v51  ;;  %v21434_v28 = vand.u32 4294901760, %v21433_v17 }
0x267e   :  { %v20987_v9 = vand.u32 4294901760, %v20986_v14  ;;  %v21435_v5 = vsub.f32 %v21433_v17, %v21434_v28 }
0x2680   :  { %25265 = vmatmul.mubr.f32.vlgmr.msra.gmra.mrb[142].mxu0 %v20987_v9  ;;  %v21436_v10 = vand.u32 4294901760, %v21435_v5  ;;  %v18524_v5 = vmax.f32 %v28357_v48, %v28379_v32  ;;  %v22780_v32 = vrot.slane %v28361_v6, 5 }
0x2681   :  { %25268 = vmatpush3.msra.mxu0 %v27087_v43  ;;  %25269 = vmatprep.mubr.msk.f32.mxu0 %vm26382_vm1, %v28811_v24 }
0x2682   :  { %25295 = vmatmul.mubr.f32.vlgmr.msra.gmra.mrb[164].mxu1 %v21436_v10  ;;  %25272 = vmatprep.subr.mxu0 %v28811_v24 }
0x2683   :  { %25298 = vmatpush3.msra.mxu1 %v27090_v33  ;;  %25299 = vmatprep.mubr.msk.f32.mxu1 %vm26382_vm1, %v28811_v24 }
0x2684   :  { %25302 = vmatprep.subr.mxu1 %v28811_v24 }
0x2688   :  { %25270 = vmatmul.mubr.f32.vlgmr.msra.gmra.mrb[142].mxu0 %v20983_v12 }
0x2689   :  { %25273 = vmatpush3.msra.mxu0 %v27064_v15  ;;  %25274 = vmatprep.mubr.msk.f32.mxu0 %vm26382_vm1, %v28811_v24 }
0x268a   :  { %25300 = vmatmul.mubr.f32.vlgmr.msra.gmra.mrb[164].mxu1 %v21432_v58  ;;  %25277 = vmatprep.subr.mxu0 %v28811_v24 }
0x268b   :  { %25303 = vmatpush3.msra.mxu1 %v27067_v7  ;;  %25304 = vmatprep.mubr.msk.f32.mxu1 %vm26382_vm1, %v28811_v24 }
0x268c   :  { %25307 = vmatprep.subr.mxu1 %v28811_v24 }
0x2690   :  { %25275 = vmatmul.mubr.f32.vlgmr.msra.gmra.mrb[142].mxu0 %v20984_v31 }
0x2691   :  { %25278 = vmatpush3.msra.mxu0 %v27036_v29  ;;  %25279 = vmatprep.mubr.msk.f32.mxu0 %vm26382_vm1, %v28811_v24 }
0x2692   :  { %25305 = vmatmul.mubr.f32.vlgmr.msra.gmra.mrb[164].mxu1 %v21433_v17  ;;  %25282 = vmatprep.subr.mxu0 %v28811_v24 }
0x2693   :  { %25308 = vmatpush3.msra.mxu1 %v27055_v39  ;;  %25309 = vmatprep.mubr.msk.f32.mxu1 %vm26382_vm1, %v28811_v24 }
0x2694   :  { %25312 = vmatprep.subr.mxu1 %v28811_v24 }
0x2698   :  { %25280 = vmatmul.mubr.f32.vlgmr.msra.gmra.mrb[142].mxu0 %v20985_v51 }
0x2699   :  { %25283 = vmatpush3.msra.mxu0 %v27073_v35  ;;  %25284 = vmatprep.mubr.msk.f32.mxu0 %vm26382_vm1, %v28811_v24 }
0x269a   :  { %25310 = vmatmul.mubr.f32.vlgmr.msra.gmra.mrb[164].mxu1 %v21434_v28  ;;  %25287 = vmatprep.subr.mxu0 %v28811_v24 }
0x269b   :  { %25313 = vmatpush3.msra.mxu1 %v27080_v63  ;;  %25314 = vmatprep.mubr.msk.f32.mxu1 %vm26382_vm1, %v28811_v24 }
0x269c   :  { %25317 = vmatprep.subr.mxu1 %v28811_v24 }
0x26a0   :  { %25285 = vmatmul.mubr.f32.vlgmr.msra.gmra.mrb[142].mxu0 %v20983_v12 }
0x26a1   :  { %25288 = vmatpush3.msra.mxu0 %v27036_v29  ;;  %25289 = vmatprep.mubr.msk.f32.mxu0 %vm26382_vm1, %v28811_v24 }
0x26a2   :  { %25315 = vmatmul.mubr.f32.vlgmr.msra.gmra.mrb[164].mxu1 %v21432_v58  ;;  %25874 = vmatprep.subr.bf16.mxu0 %v28800_v53 }
0x26a3   :  { %25318 = vmatpush3.msra.mxu1 %v27055_v39  ;;  %25319 = vmatprep.mubr.msk.f32.mxu1 %vm26382_vm1, %v28811_v24 }
0x26a4   :  { %25877 = vmatprep.subr.bf16.mxu1 %v28800_v53 }
0x26a8   :  { %25290 = vmatmul.mubr.f32.vlgmr.msra.gmra.mrb[142].mxu0 %v20983_v12 }
0x26a9   :  { %25876 = vmatpush3.bf16.xpose.msra.mxu0 %v27146_v30  ;;  %25326 = vmatprep.mubr.msk.f32.mxu0 %vm26382_vm1, %v28811_v24 }
0x26aa   :  { %25320 = vmatmul.mubr.f32.vlgmr.msra.gmra.mrb[164].mxu1 %v21432_v58  ;;  %25880 = vmatprep.subr.bf16.mxu0 %v28800_v53 }
0x26ab   :  { %25879 = vmatpush3.bf16.xpose.msra.mxu1 %v27150_v19  ;;  %25333 = vmatprep.mubr.msk.f32.mxu1 %vm26382_vm1, %v28811_v24 }
0x26ac   :  { %25883 = vmatprep.subr.bf16.mxu1 %v28800_v53 }
0x26b0   :  { %25327 = vmatmul.mubr.f32.vlgmr.msra.gmra.mrb[144].mxu0 %v28512_v38 }
0x26b1   :  { %25882 = vmatpush3.bf16.xpose.msra.mxu0 %v27163_v4  ;;  %25340 = vmatprep.mubr.msk.f32.mxu0 %vm26382_vm1, %v28811_v24 }
0x26b2   :  { %25334 = vmatmul.mubr.f32.vlgmr.msra.gmra.mrb[166].mxu1 %v28486_v49  ;;  %25886 = vmatprep.subr.bf16.mxu0 %v28800_v53 }
0x26b3   :  { %25885 = vmatpush3.bf16.xpose.msra.mxu1 %v27146_v30  ;;  %25347 = vmatprep.mubr.msk.f32.mxu1 %vm26382_vm1, %v28811_v24 }
0x26b4   :  { %25889 = vmatprep.subr.bf16.mxu1 %v28800_v53 }
0x26b8   :  { %25341 = vmatmul.mubr.f32.vlgmr.msra.gmra.mrb[146].mxu0 %v28489_v36 }
0x26b9   :  { %25888 = vmatpush3.bf16.xpose.msra.mxu0 %v27176_v40  ;;  %25354 = vmatprep.mubr.msk.f32.mxu0 %vm26382_vm1, %v28811_v24 }
0x26ba   :  { %25348 = vmatmul.mubr.f32.vlgmr.msra.gmra.mrb[168].mxu1 %v28500_v56  ;;  %25892 = vmatprep.subr.bf16.mxu0 %v28800_v53 }
0x26bb   :  { %25891 = vmatpush3.bf16.xpose.msra.mxu1 %v27146_v30  ;;  %25361 = vmatprep.mubr.msk.f32.mxu1 %vm26382_vm1, %v28811_v24 }
0x26bc   :  { %25895 = vmatprep.subr.bf16.mxu1 %v28800_v53 }
0x26c0   :  { %25355 = vmatmul.mubr.f32.vlgmr.msra.gmra.mrb[148].mxu0 %v28486_v49 }
0x26c1   :  { %25894 = vmatpush3.bf16.xpose.msra.mxu0 %v27188_v0  ;;  %25368 = vmatprep.mubr.msk.f32.mxu0 %vm26382_vm1, %v28811_v24 }
0x26c2   :  { %25362 = vmatmul.mubr.f32.vlgmr.msra.gmra.mrb[170].mxu1 %v28486_v49  ;;  %25898 = vmatprep.subr.bf16.mxu0 %v28800_v53 }
0x26c3   :  { %25897 = vmatpush3.bf16.xpose.msra.mxu1 %v27192_v23  ;;  %25375 = vmatprep.mubr.msk.f32.mxu1 %vm26382_vm1, %v28811_v24 }
0x26c4   :  { %25901 = vmatprep.subr.bf16.mxu1 %v28800_v53 }
0x26c8   :  { %25369 = vmatmul.mubr.f32.vlgmr.msra.gmra.mrb[150].mxu0 %v28546_v44 }
0x26c9   :  { %25900 = vmatpush3.bf16.xpose.msra.mxu0 %v27203_v54  ;;  %25382 = vmatprep.mubr.msk.f32.mxu0 %vm26382_vm1, %v28811_v24 }
0x26ca   :  { %25376 = vmatmul.mubr.f32.vlgmr.msra.gmra.mrb[172].mxu1 %v28496_v13  ;;  %25904 = vmatprep.subr.bf16.mxu0 %v28800_v53 }
0x26cb   :  { %25903 = vmatpush3.bf16.xpose.msra.mxu1 %v27188_v0  ;;  %25389 = vmatprep.mubr.msk.f32.mxu1 %vm26382_vm1, %v28811_v24 }
0x26cc   :  { %25907 = vmatprep.subr.bf16.mxu1 %v28800_v53 }
0x26d0   :  { %25383 = vmatmul.mubr.f32.vlgmr.msra.gmra.mrb[152].mxu0 %v28509_v50 }
0x26d1   :  { %25906 = vmatpush3.bf16.xpose.msra.mxu0 %v27216_v42  ;;  %25396 = vmatprep.mubr.msk.f32.mxu0 %vm26382_vm1, %v28811_v24 }
0x26d2   :  { %25390 = vmatmul.mubr.f32.vlgmr.msra.gmra.mrb[174].mxu1 %v28522_v1 }
0x26d3   :  { %25909 = vmatpush3.bf16.xpose.msra.mxu1 %v27188_v0  ;;  %25403 = vmatprep.mubr.msk.f32.mxu1 %vm26382_vm1, %v28811_v24  ;;  %vm22792_vm1 = vcmask 1041408  }
0x26d8   :  { %25397 = vmatmul.mubr.f32.vlgmr.msra.gmra.mrb[154].mxu0 %v28496_v13 }
0x26da   :  { %25404 = vmatmul.mubr.f32.vlgmr.msra.gmra.mrb[176].mxu1 %v28496_v13 }
0x277b   :  { %v21359_v29 = vpop.f32.mrb[142].mxu0 }
0x277c   :  { %26250 = vrcp.f32 %v21359_v29  ;;  %v25291_v39 = vpop.f32.mrb[143].mxu0 }
0x277d   :  { %v21808_v15 = vpop.f32.mrb[164].mxu1  ;;  %v28893_v39 = vld [vmem:[#allocation42_spill] sm:$0xff] }
0x277e   :  { %26252 = vrcp.f32 %v21808_v15  ;;  %v25321_v7 = vpop.f32.mrb[165].mxu1 }
0x277f   :  { %v22772_v7 = vrot.slane %v28893_v39, 7 }
0x2783   :  { %v21893_v35 = vpop.f32.mrb[144].mxu0 }
0x2784   :  { %v25328_v63 = vpop.f32.mrb[145].mxu0 }
0x2785   :  { %v21974_v43 = vpop.f32.mrb[166].mxu1 }
0x2786   :  { %v26251_v33 = vpop.eup %26250  ;;  %v21975_v30 = vadd.f32 %v21974_v43, %v21893_v35  ;;  %v25335_v19 = vpop.f32.mrb[167].mxu1  ;;  %v28894_v35 = vld [vmem:[#allocation43_spill] sm:$0xff]  ;;  %v28895_v43 = vld [vmem:[#allocation40_spill] sm:$0xff] }
0x2787   :  { %v21814_v40 = vmul.f32 %v26251_v33, %v21359_v29  ;;  %v28896_v19 = vld [vmem:[#allocation24_spill] sm:$0xff] }
0x2788   :  { %v26253_v4 = vpop.eup %26252  ;;  %v22790_v48 = vsel %vm22789_vm0, %v28896_v19, %v22772_v7 }
0x2789   :  { %v21815_v0 = vmul.f32 %v26253_v4, %v21808_v15  ;;  %v21816_v24 = vsub.f32 2.0, %v21814_v40 }
0x278b   :  { %v21817_v23 = vsub.f32 2.0, %v21815_v0  ;;  %v22050_v54 = vpop.f32.mrb[146].mxu0  ;;  %v21818_v50 = vmul.f32 %v26251_v33, %v21816_v24 }
0x278c   :  { %v22051_v42 = vadd.f32 %v22050_v54, %v21975_v30  ;;  %v25342_v53 = vpop.f32.mrb[147].mxu0 }
0x278d   :  { %v22125_v49 = vpop.f32.mrb[168].mxu1  ;;  %v21819_v36 = vmul.f32 %v26253_v4, %v21817_v23  ;;  %v28897_v23 = vld [vmem:[#allocation41_spill] sm:$0xff] }
0x278e   :  { %v22126_v13 = vadd.f32 %v22125_v49, %v22051_v42  ;;  %v25349_v56 = vpop.f32.mrb[169].mxu1  ;;  %v28898_v54 = vrot.slane %v28897_v23, 7  ;;  %v28899_v42 = vld [vmem:[#allocation23_spill] sm:$0xff] }
0x278f   :  { %22745 = vperm.xlu0 %26172, %v21819_v36  }
0x2793   :  { %v22202_v38 = vpop.f32.mrb[148].mxu0  ;;  %22740 = vperm.xlu0 %26172, %v21818_v50  }
0x2794   :  { %v22203_v1 = vadd.f32 %v22202_v38, %v22126_v13  ;;  %v25356_v44 = vpop.f32.mrb[149].mxu0 }
0x2795   :  { %v22275_v25 = vpop.f32.mrb[170].mxu1 }
0x2796   :  { %v22276_v45 = vadd.f32 %v22275_v25, %v22203_v1  ;;  %v25363_v11 = vpop.f32.mrb[171].mxu1 }
0x2797   :  { %26173 = vset.pattern.permute.xlu0 %v28812_v26 }
0x279b   :  { %v22352_v57 = vpop.f32.mrb[150].mxu0 }
0x279c   :  { %v25370_v41 = vpop.f32.mrb[151].mxu0 }
0x279d   :  { %v22433_v37 = vpop.f32.mrb[172].mxu1 }
0x279e   :  { %v22434_v8 = vadd.f32 %v22433_v37, %v22352_v57  ;;  %v25377_v47 = vpop.f32.mrb[173].mxu1 }
0x27a3   :  { %v22509_v62 = vpop.f32.mrb[152].mxu0 }
0x27a4   :  { %v22510_v27 = vadd.f32 %v22509_v62, %v22434_v8  ;;  %v25384_v60 = vpop.f32.mrb[153].mxu0 }
0x27a5   :  { %v22584_v46 = vpop.f32.mrb[174].mxu1 }
0x27a6   :  { %v22585_v59 = vadd.f32 %v22584_v46, %v22510_v27  ;;  %v25391_v61 = vpop.f32.mrb[175].mxu1 }
0x27ab   :  { %v22661_v2 = vpop.f32.mrb[154].mxu0 }
0x27ac   :  { %v22662_v20 = vadd.f32 %v22661_v2, %v22585_v59  ;;  %v25398_v52 = vpop.f32.mrb[155].mxu0 }
0x27ad   :  { %v22734_v21 = vpop.f32.mrb[176].mxu1 }
0x27ae   :  { %v22735_v34 = vadd.f32 %v22734_v21, %v22662_v20  ;;  %v25405_v3 = vpop.f32.mrb[177].mxu1 }
0x280e   :  { %v22746_v12 = vpop.permute.xlu0 %22745 }
0x280f   :  { %v22749_v16 = vmul.f32 %v22746_v12, %v21808_v15 }
0x2811   :  { %v22751_v26 = vadd.f32 %v22749_v16, %v22735_v34 }
0x2812   :  { %v22741_v31 = vpop.permute.xlu0 %22740 }
0x2813   :  { %v22748_v58 = vmul.f32 %v22741_v31, %v21359_v29  ;;  %v22753_v51 = vadd.f32 %v22751_v26, %v27263_v55  ;;  %v22775_v29 = vrot.slane %v28894_v35, 6  ;;  %v22779_v55 = vrot.slane %v28363_v18, 5 }
0x2814   :  { %v22791_v18 = vsel %vm22789_vm0, %v28899_v42, %v28898_v54 }
0x2815   :  { %v22750_v17 = vadd.f32 %v22748_v58, %v22276_v45  ;;  %22760 = vperm.xlu0 %26173, %v22753_v51   ;;  %v22793_v4 = vsel %vm22792_vm1, %v22790_v48, %v22775_v29 }
0x2816   :  { %v22796_v53 = vsel %vm22795_vm2, %v22793_v4, %v22779_v55 }
0x2817   :  { %v22752_v14 = vadd.f32 %v22750_v17, %v27267_v22  ;;  %v22776_v22 = vrot.slane %v28895_v43, 6 }
0x2819   :  { %22756 = vperm.xlu0 %26173, %v22752_v14   ;;  %v22794_v24 = vsel %vm22792_vm1, %v22791_v18, %v22776_v22 }
0x281a   :  { %v22797_v13 = vsel %vm22795_vm2, %v22794_v24, %v22780_v32 }
0x2894   :  { %v22761_v28 = vpop.permute.xlu0 %22760 }
0x2895   :  { %v22762_v9 = vrot.slane %v22761_v28, 7 }
0x2898   :  { %v22757_v10 = vpop.permute.xlu0 %22756 }
0x2899   :  { %v22763_v15 = vsel %vm3717_vm4, %v22762_v9, %v22757_v10  ;;  %vm22801_vm4 = vcmask 61440  }
0x289a   :  { %v22765_v63 = vmul.f32 %v22763_v15, %v18524_v5 }
0x289c   :  { %v22767_v33 = vrot.slane %v22765_v63, 1  ;;  %v22770_v30 = vadd.f32 %v22765_v63, %v22752_v14 }
0x289e   :  { %v22771_v40 = vadd.f32 %v22767_v33, %v22753_v51  ;;  %v22785_v0 = vrot.slane %v22770_v30, 4 }
0x28a0   :  { %v22786_v49 = vrot.slane %v22771_v40, 4  ;;  %v22799_v36 = vsel %vm22798_vm5, %v22796_v53, %v22785_v0 }
0x28a1   :  { %22802 = vst.msk [vmem:[%s28704_s6] sm:$0x1f] %vm22801_vm4, %v22799_v36 }
0x28a2   :  { %v22800_v6 = vsel %vm22798_vm5, %v22797_v13, %v22786_v49 }
0x28a3   :  { %22803 = vst.msk [vmem:[%s28704_s6 + $0x8] sm:$0x1f] %vm22801_vm4, %v22800_v6 }
0x28a4   :  { %22808 = vsyncpa [#allocation3], 1 }
0x28a5   :  { %22809 = vsyncpa [#allocation5], 1 }
0x28a6   :  { %22810 = vsyncpa [#allocation8], 1 }

</bundles_post_ra>
